<compile_context>
chip_gen: v7x
topology: tpu7x:2x2x1
jax: 0.10.0
libtpu: 0.0.40
codegen_flags: <defaults>
</compile_context>

<pallas_src>
import functools
import math

import jax
import jax.numpy as jnp
from jax.experimental import pallas as pl
from jax.experimental.pallas import tpu as pltpu

_VMEM_LIMIT = 48 * 1024 * 1024  # below v7x's 64 MiB physical VMEM, above 32 MiB scoped default


# ----------------------------------------------------------------------------
# Small helpers shared by Pallas kernels and the pure-JAX reference path
# ----------------------------------------------------------------------------
def _gelu_tanh(y):
    c = math.sqrt(2.0 / math.pi)
    return 0.5 * y * (1.0 + jnp.tanh(c * (y + 0.044715 * y * y * y)))


def _apply_act(y, act):
    if act == "relu":
        return jnp.maximum(y, 0.0)
    if act == "gelu":
        return _gelu_tanh(y)
    return y


def _bf16_dot(a, b):
    # Native MXU path on v5e/v6e/v7x: bf16 operands, f32 accumulation.
    return jnp.dot(a.astype(jnp.bfloat16), b.astype(jnp.bfloat16),
                   preferred_element_type=jnp.float32)


# ----------------------------------------------------------------------------
# Generic matmul (+bias +act) kernel: patch-embed im2col convs, S2DDown 1x1 conv
# ----------------------------------------------------------------------------
def _mm_bias_act_kernel(x_ref, w_ref, b_ref, o_ref, *, act):
    y = _bf16_dot(x_ref[...], w_ref[...]) + b_ref[...]
    o_ref[...] = _apply_act(y, act).astype(o_ref.dtype)


def matmul_bias_act(x, w, b, act="none"):
    """act(x @ w + b) with bf16-in / f32-acc MXU matmul and row tiling."""
    M, K = x.shape
    _, N = w.shape
    TM = min(256, M)
    grid = (pl.cdiv(M, TM),)
    return pl.pallas_call(
        functools.partial(_mm_bias_act_kernel, act=act),
        out_shape=jax.ShapeDtypeStruct((M, N), jnp.float32),
        grid=grid,
        in_specs=[
            pl.BlockSpec((TM, K), lambda i: (i, 0)),
            pl.BlockSpec((K, N), lambda i: (0, 0)),
            pl.BlockSpec((1, N), lambda i: (0, 0)),
        ],
        out_specs=pl.BlockSpec((TM, N), lambda i: (i, 0)),
        compiler_params=pltpu.CompilerParams(
            dimension_semantics=("parallel",),
            vmem_limit_bytes=_VMEM_LIMIT),
    )(x, w, b.reshape(1, N))


# ----------------------------------------------------------------------------
# Fused HENet stage kernel: all DWCB blocks of a stage in one pallas_call
# ----------------------------------------------------------------------------
def _dwcb_stage_kernel(x_ref, mask_l_ref, mask_r_ref, *rest, nblk, W, pad_front):
    """One batch image of one stage: `nblk` DWCB blocks, intermediates stay in VMEM.

    x_ref: (HW, C) activations in flat row layout r = i*W + j.
    """
    HW, C = x_ref.shape
    out_ref = rest[6 * nblk]
    pad_ref = rest[6 * nblk + 1]

    # Zero the halo scratch once; only the interior is rewritten per block.
    pad_ref[...] = jnp.zeros(pad_ref.shape, jnp.float32)
    mask_l = mask_l_ref[...]   # 0 where j == 0     (left neighbour is zero padding)
    mask_r = mask_r_ref[...]   # 0 where j == W - 1 (right neighbour is zero padding)

    cur = x_ref[...]
    for b in range(nblk):
        dw_w = rest[6 * b + 0]   # (9, C)   BN-folded depthwise weights
        dw_b = rest[6 * b + 1]   # (1, C)
        w1 = rest[6 * b + 2]     # (C, hid) 1x1 conv + BN folded
        b1 = rest[6 * b + 3]     # (1, hid)
        w2 = rest[6 * b + 4]     # (hid, C) 1x1 conv + BN + layer-scale folded
        b2 = rest[6 * b + 5]     # (1, C)

        # --- depthwise 3x3 (stride 1, pad 1): padding realised via the zeroed
        #     VMEM scratch (row halo) + column masks -> no HBM pad round trip.
        #     Elementwise math kept in f32 (VPU path; v5e has no bf16 VPU).
        pad_ref[pad_front:pad_front + HW, :] = cur
        acc = jnp.zeros((HW, C), jnp.float32)
        k = 0
        for dh in (-1, 0, 1):
            for dw_off in (-1, 0, 1):
                start = pad_front + dh * W + dw_off
                tap = pad_ref[start:start + HW, :]
                if dw_off == -1:
                    tap = tap * mask_l
                elif dw_off == 1:
                    tap = tap * mask_r
                acc = acc + tap * dw_w[k:k + 1, :]
                k += 1
        y = acc + dw_b[...]

        # --- 1x1 conv + BN + GELU, then 1x1 conv + BN (layer-scale folded),
        #     residual add.  MXU: bf16 x bf16 -> f32.
        h = _gelu_tanh(_bf16_dot(y, w1[...]) + b1[...])
        cur = cur + (_bf16_dot(h, w2[...]) + b2[...])

    out_ref[...] = cur


def dwcb_stage(x_flat, blocks, H, W, C):
    """Run all DWCB blocks of one stage as a single pallas_call (grid over batch)."""
    Nb, HW, _ = x_flat.shape
    nblk = len(blocks)
    pad_front = ((W + 1 + 7) // 8) * 8          # 8-aligned halo -> aligned scratch store
    pad_rows = pad_front + HW + pad_front

    j = jnp.arange(HW, dtype=jnp.int32) % W
    mask_l = (j >= 1).astype(jnp.float32).reshape(HW, 1)
    mask_r = (j <= W - 2).astype(jnp.float32).reshape(HW, 1)

    in_specs = [
        pl.BlockSpec((None, HW, C), lambda n: (n, 0, 0)),
        pl.BlockSpec((HW, 1), lambda n: (0, 0)),
        pl.BlockSpec((HW, 1), lambda n: (0, 0)),
    ]
    inputs = [x_flat, mask_l, mask_r]
    for blk in blocks:
        hid = blk["pw1_w"].shape[1]
        in_specs += [
            pl.BlockSpec((9, C), lambda n: (0, 0)),
            pl.BlockSpec((1, C), lambda n: (0, 0)),
            pl.BlockSpec((C, hid), lambda n: (0, 0)),
            pl.BlockSpec((1, hid), lambda n: (0, 0)),
            pl.BlockSpec((hid, C), lambda n: (0, 0)),
            pl.BlockSpec((1, C), lambda n: (0, 0)),
        ]
        inputs += [blk["dw_w9"], blk["dw_b"], blk["pw1_w"], blk["pw1_b"],
                   blk["pw2_w"], blk["pw2_b"]]

    return pl.pallas_call(
        functools.partial(_dwcb_stage_kernel, nblk=nblk, W=W, pad_front=pad_front),
        out_shape=jax.ShapeDtypeStruct((Nb, HW, C), jnp.float32),
        grid=(Nb,),
        in_specs=in_specs,
        out_specs=pl.BlockSpec((None, HW, C), lambda n: (n, 0, 0)),
        scratch_shapes=[pltpu.VMEM((pad_rows, C), jnp.float32)],
        compiler_params=pltpu.CompilerParams(
            dimension_semantics=("parallel",),
            vmem_limit_bytes=_VMEM_LIMIT),
    )(*inputs)


# ----------------------------------------------------------------------------
# Fused global-average-pool + classifier head (final BN folded into the head)
# ----------------------------------------------------------------------------
def _pool_head_kernel(x_ref, w_ref, b_ref, o_ref):
    pooled = jnp.mean(x_ref[...], axis=1)                       # (N, C)
    o_ref[...] = (_bf16_dot(pooled, w_ref[...]) + b_ref[...]).astype(o_ref.dtype)


def pool_head(x_flat, w, b):
    Nb, HW, C = x_flat.shape
    NC = w.shape[1]
    vmem = pl.BlockSpec(memory_space=pltpu.MemorySpace.VMEM)
    return pl.pallas_call(
        _pool_head_kernel,
        out_shape=jax.ShapeDtypeStruct((Nb, NC), jnp.float32),
        in_specs=[vmem, vmem, vmem],
        out_specs=vmem,
        compiler_params=pltpu.CompilerParams(vmem_limit_bytes=_VMEM_LIMIT),
    )(x_flat, w, b.reshape(1, NC))


PALLAS_OPS = {"matmul": matmul_bias_act, "stage": dwcb_stage, "pool_head": pool_head}


# ----------------------------------------------------------------------------
# Pure-JAX reference ops (same math, incl. bf16 matmul inputs) for self-check
# ----------------------------------------------------------------------------
def _ref_matmul(x, w, b, act="none"):
    return _apply_act(_bf16_dot(x, w) + b[None, :], act)


def _ref_stage(x_flat, blocks, H, W, C):
    Nb, HW, _ = x_flat.shape
    x = x_flat.reshape(Nb, H, W, C)
    for blk in blocks:
        xp = jnp.pad(x, ((0, 0), (1, 1), (1, 1), (0, 0)))
        acc = jnp.zeros_like(x)
        k = 0
        for dh in range(3):
            for dw in range(3):
                acc = acc + xp[:, dh:dh + H, dw:dw + W, :] * blk["dw_w9"][k]
                k += 1
        y = (acc + blk["dw_b"]).reshape(Nb * HW, C)
        h = _gelu_tanh(_bf16_dot(y, blk["pw1_w"]) + blk["pw1_b"])
        o = _bf16_dot(h, blk["pw2_w"]) + blk["pw2_b"]
        x = x + o.reshape(Nb, H, W, C)
    return x.reshape(Nb, HW, C)


def _ref_pool_head(x_flat, w, b):
    return _bf16_dot(jnp.mean(x_flat, axis=1), w) + b[None, :]


REF_OPS = {"matmul": _ref_matmul, "stage": _ref_stage, "pool_head": _ref_pool_head}


# ----------------------------------------------------------------------------
# Glue: im2col patch-embed convs, S2DDown rearrange, full forward
# ----------------------------------------------------------------------------
def im2col(x, k, stride, pad):
    x = jnp.pad(x, ((0, 0), (pad, pad), (pad, pad), (0, 0)))
    Nb, Hp, Wp, C = x.shape
    Ho = (Hp - k) // stride + 1
    Wo = (Wp - k) // stride + 1
    cols = []
    for dh in range(k):
        for dw in range(k):
            cols.append(x[:, dh:dh + Ho * stride:stride, dw:dw + Wo * stride:stride, :])
    cols = jnp.concatenate(cols, axis=-1)       # column order (kh, kw, cin)
    return cols, Ho, Wo


def conv_bn_act(x, p, k, stride, pad, act, ops):
    cols, Ho, Wo = im2col(x, k, stride, pad)
    Nb = x.shape[0]
    out = ops["matmul"](cols.reshape(Nb * Ho * Wo, -1), p["w"], p["b"], act=act)
    return out.reshape(Nb, Ho, Wo, -1)


def henet_forward(params, x_nchw, *, ops, num_classes):
    # QuantStub: identity in float mode.
    x = jnp.transpose(x_nchw, (0, 2, 3, 1)).astype(jnp.float32)     # NCHW -> NHWC
    # patch_embed ('origin'): two ConvModule2d(3x3, s2, p1, BN, ReLU)
    x = conv_bn_act(x, params["pe0"], 3, 2, 1, "relu", ops)
    x = conv_bn_act(x, params["pe1"], 3, 2, 1, "relu", ops)
    Nb, H, W, _ = x.shape
    xf = x.reshape(Nb, H * W, -1)               # flat (rows, C) layout for the stages

    nstage = len(params["stages"])
    for si in range(nstage):
        xf = ops["stage"](xf, params["stages"][si], H, W, xf.shape[-1])
        if si < nstage - 1:
            # S2DDown: space-to-depth (patch 2, PixelUnshuffle ordering) + 1x1 conv + BN
            C_cur = xf.shape[-1]
            x = xf.reshape(Nb, H, W, C_cur)
            x = x.reshape(Nb, H // 2, 2, W // 2, 2, C_cur)
            x = jnp.transpose(x, (0, 1, 3, 5, 2, 4)).reshape(
                Nb * (H // 2) * (W // 2), C_cur * 4)
            down = params["downs"][si]
            of = ops["matmul"](x, down["w"], down["b"], act="none")
            H, W = H // 2, W // 2
            xf = of.reshape(Nb, H * W, -1)

    # final_expand_channel == 0 -> BatchNorm2d folded through avgpool into the head;
    # feature_mix_layer = Identity; AdaptiveAvgPool2d((1,1)) + Linear fused.
    logits = ops["pool_head"](xf, params["head_w_eff"], params["head_b_eff"])
    # DeQuantStub identity; flat_output view(-1, num_classes)
    return logits.reshape(-1, num_classes)


# ----------------------------------------------------------------------------
# Deterministic parameters (eval-mode BN folded into conv weights)
# ----------------------------------------------------------------------------
class ParamGen:
    def __init__(self, key):
        self.key = key

    def next(self, shape, scale=0.1):
        self.key, sub = jax.random.split(self.key)
        return scale * jax.random.normal(sub, shape, dtype=jnp.float32)


def make_bn(gen, c):
    return {
        "gamma": 1.0 + gen.next((c,), 0.1),
        "beta": gen.next((c,), 0.1),
        "mean": gen.next((c,), 0.1),
        "var": 1.0 + jnp.abs(gen.next((c,), 0.1)),
    }


def bn_scale_bias(bn, eps=1e-5):
    s = bn["gamma"] / jnp.sqrt(bn["var"] + eps)
    return s, bn["beta"] - bn["mean"] * s


def make_conv_bn(gen, cin, cout, k):
    # torch (cout, cin, k, k) -> im2col matmul layout (k*k*cin, cout), BN folded
    w = gen.next((cout, cin, k, k))
    cb = gen.next((cout,), 0.05)
    s, b0 = bn_scale_bias(make_bn(gen, cout))
    w_f = w * s[:, None, None, None]
    w_mat = jnp.transpose(w_f, (2, 3, 1, 0)).reshape(k * k * cin, cout)
    return {"w": w_mat, "b": cb * s + b0}


def make_pw_bn(gen, cin, cout):
    w = gen.next((cout, cin, 1, 1))
    cb = gen.next((cout,), 0.05)
    s, b0 = bn_scale_bias(make_bn(gen, cout))
    w_f = w[:, :, 0, 0] * s[:, None]
    return {"w": w_f.T, "b": cb * s + b0}


def make_dw_bn(gen, c):
    w = gen.next((c, 1, 3, 3))
    cb = gen.next((c,), 0.05)
    s, b0 = bn_scale_bias(make_bn(gen, c))
    w_f = w * s[:, None, None, None]
    w9 = jnp.transpose(w_f[:, 0], (1, 2, 0)).reshape(9, c)      # tap order (kh, kw)
    return w9, (cb * s + b0).reshape(1, c)


def build_henet_params(key, in_channels, block_nums, embed_dims, mlp_ratios,
                       num_classes, layer_scale_init_value=1e-5):
    gen = ParamGen(key)
    params = {}
    params["pe0"] = make_conv_bn(gen, in_channels, embed_dims[0] // 2, 3)
    params["pe1"] = make_conv_bn(gen, embed_dims[0] // 2, embed_dims[0], 3)
    stages, downs = [], []
    for si, nblk in enumerate(block_nums):
        dim = embed_dims[si]
        hidden = dim * mlp_ratios[si]
        blocks = []
        for _ in range(nblk):
            dw_w9, dw_b = make_dw_bn(gen, dim)
            pw1 = make_pw_bn(gen, dim, hidden)
            pw2 = make_pw_bn(gen, hidden, dim)
            ls = jnp.full((dim,), layer_scale_init_value, jnp.float32)
            blocks.append({
                "dw_w9": dw_w9, "dw_b": dw_b,
                "pw1_w": pw1["w"], "pw1_b": pw1["b"].reshape(1, hidden),
                # layer_scale folded into pw2 (exact): w2*=ls, b2*=ls
                "pw2_w": pw2["w"] * ls[None, :],
                "pw2_b": (pw2["b"] * ls).reshape(1, dim),
            })
        stages.append(blocks)
        if si < len(block_nums) - 1:
            downs.append(make_pw_bn(gen, dim * 4, embed_dims[si + 1]))
    params["stages"] = stages
    params["downs"] = downs
    # final BatchNorm2d folded through the global average pool into the head (exact)
    s, b0 = bn_scale_bias(make_bn(gen, embed_dims[-1]))
    hw = gen.next((num_classes, embed_dims[-1]))
    hb = gen.next((num_classes,), 0.05)
    head_w = hw.T                                               # (C, num_classes)
    params["head_w_eff"] = head_w * s[:, None]
    params["head_b_eff"] = hb + b0 @ head_w
    return params


# ----------------------------------------------------------------------------
if __name__ == "__main__":
    in_channels = 3
    block_nums = (2, 2)
    embed_dims = (32, 64)
    mlp_ratios = (2, 2)
    num_classes = 10

    key = jax.random.PRNGKey(0)
    kp, kx = jax.random.split(key)
    # layer_scale_init_value=0.1 (a legal config choice) so the self-check actually
    # exercises the fused DWCB path instead of scaling it away by 1e-5.
    params = build_henet_params(kp, in_channels, block_nums, embed_dims, mlp_ratios,
                                num_classes, layer_scale_init_value=0.1)
    x = jax.random.normal(kx, (2, in_channels, 32, 32), dtype=jnp.float32)

    fwd_pallas = jax.jit(functools.partial(henet_forward, ops=PALLAS_OPS,
                                           num_classes=num_classes))
    out = fwd_pallas(params, x)
    jax.block_until_ready(out)
    assert out.shape == (2, num_classes), out.shape

    # Numerical self-check against a pure-JAX reference of the same graph
    # (same bf16-in / f32-acc matmuls, same tanh-GELU).
    fwd_ref = jax.jit(functools.partial(henet_forward, ops=REF_OPS,
                                        num_classes=num_classes))
    out_ref = fwd_ref(params, x)
    jax.block_until_ready(out_ref)
    assert jnp.allclose(out, out_ref, rtol=2e-2, atol=2e-2), (
        float(jnp.max(jnp.abs(out - out_ref))))

    print("KERNEL_OK")
</pallas_src>

<mosaic_0001>
module attributes {stable_mosaic.version = 11 : i64} {
  func.func @_mm_bias_act_kernel(%arg0: i32, %arg1: memref<256x27xf32, #tpu.memory_space<vmem>>, %arg2: memref<27x16xf32, #tpu.memory_space<vmem>>, %arg3: memref<1x16xf32, #tpu.memory_space<vmem>>, %arg4: memref<256x16xf32, #tpu.memory_space<vmem>>) attributes {dimension_semantics = [#tpu.dimension_semantics<parallel>], iteration_bounds = array<i64: 2>, scalar_prefetch = 0 : i64, scratch_operands = 0 : i64, tpu.core_type = #tpu.core_type<tc>, window_params = [{transform_indices = @transform_0, window_bounds = array<i64: 256, 27>}, {pipeline_mode = #tpu.pipeline_mode<synchronous>, transform_indices = @transform_1, window_bounds = array<i64: 27, 16>}, {pipeline_mode = #tpu.pipeline_mode<synchronous>, transform_indices = @transform_2, window_bounds = array<i64: 1, 16>}, {transform_indices = @transform_3, window_bounds = array<i64: 256, 16>}]} {
    %c0 = arith.constant 0 : index
    %c0_0 = arith.constant 0 : index
    %0 = vector.load %arg1[%c0, %c0_0] : memref<256x27xf32, #tpu.memory_space<vmem>>, vector<256x27xf32>
    %c0_1 = arith.constant 0 : index
    %c0_2 = arith.constant 0 : index
    %1 = vector.load %arg2[%c0_1, %c0_2] : memref<27x16xf32, #tpu.memory_space<vmem>>, vector<27x16xf32>
    %2 = arith.truncf %0 : vector<256x27xf32> to vector<256x27xbf16>
    %3 = arith.truncf %1 : vector<27x16xf32> to vector<27x16xbf16>
    %cst = arith.constant dense<0.000000e+00> : vector<256x16xf32>
    %4 = tpu.matmul %2, %3, %cst {dimension_numbers = #tpu.dot_dimension_numbers<[1], [0], [0], [1], [0, 0, 1, 1], [], []>} : vector<256x27xbf16>, vector<27x16xbf16>, vector<256x16xf32> -> vector<256x16xf32>
    %c0_3 = arith.constant 0 : index
    %c0_4 = arith.constant 0 : index
    %5 = vector.load %arg3[%c0_3, %c0_4] : memref<1x16xf32, #tpu.memory_space<vmem>>, vector<1x16xf32>
    %6 = vector.broadcast %5 : vector<1x16xf32> to vector<256x16xf32>
    %7 = arith.addf %4, %6 : vector<256x16xf32>
    %cst_5 = arith.constant 0.000000e+00 : f32
    %8 = vector.broadcast %cst_5 : f32 to vector<256x16xf32>
    %9 = arith.maximumf %7, %8 : vector<256x16xf32>
    %c0_6 = arith.constant 0 : index
    %c0_7 = arith.constant 0 : index
    %10 = vector.load %arg4[%c0_6, %c0_7] : memref<256x16xf32, #tpu.memory_space<vmem>>, vector<256x16xf32>
    tpu.vector_store %arg4[%c0_6, %c0_7], %9 {strides = array<i32>} : memref<256x16xf32, #tpu.memory_space<vmem>>, vector<256x16xf32>,
    return
  }
  func.func @transform_0(%arg0: i32) -> (i32, i32) {
    %c0_i32 = arith.constant 0 : i32
    %c0_i32_0 = arith.constant 0 : i32
    return %arg0, %c0_i32 : i32, i32
  }
  func.func @transform_1(%arg0: i32) -> (i32, i32) {
    %c0_i32 = arith.constant 0 : i32
    %c0_i32_0 = arith.constant 0 : i32
    %c0_i32_1 = arith.constant 0 : i32
    return %c0_i32, %c0_i32_0 : i32, i32
  }
  func.func @transform_2(%arg0: i32) -> (i32, i32) {
    %c0_i32 = arith.constant 0 : i32
    %c0_i32_0 = arith.constant 0 : i32
    %c0_i32_1 = arith.constant 0 : i32
    return %c0_i32, %c0_i32_0 : i32, i32
  }
  func.func @transform_3(%arg0: i32) -> (i32, i32) {
    %c0_i32 = arith.constant 0 : i32
    %c0_i32_0 = arith.constant 0 : i32
    return %arg0, %c0_i32 : i32, i32
  }
}

module attributes {stable_mosaic.version = 11 : i64} {
  func.func @_mm_bias_act_kernel(%arg0: i32, %arg1: memref<128x144xf32, #tpu.memory_space<vmem>>, %arg2: memref<144x32xf32, #tpu.memory_space<vmem>>, %arg3: memref<1x32xf32, #tpu.memory_space<vmem>>, %arg4: memref<128x32xf32, #tpu.memory_space<vmem>>) attributes {dimension_semantics = [#tpu.dimension_semantics<parallel>], iteration_bounds = array<i64: 1>, scalar_prefetch = 0 : i64, scratch_operands = 0 : i64, tpu.core_type = #tpu.core_type<tc>, window_params = [{transform_indices = @transform_0, window_bounds = array<i64: 128, 144>}, {pipeline_mode = #tpu.pipeline_mode<synchronous>, transform_indices = @transform_1, window_bounds = array<i64: 144, 32>}, {pipeline_mode = #tpu.pipeline_mode<synchronous>, transform_indices = @transform_2, window_bounds = array<i64: 1, 32>}, {transform_indices = @transform_3, window_bounds = array<i64: 128, 32>}]} {
    %c0 = arith.constant 0 : index
    %c0_0 = arith.constant 0 : index
    %0 = vector.load %arg1[%c0, %c0_0] : memref<128x144xf32, #tpu.memory_space<vmem>>, vector<128x144xf32>
    %c0_1 = arith.constant 0 : index
    %c0_2 = arith.constant 0 : index
    %1 = vector.load %arg2[%c0_1, %c0_2] : memref<144x32xf32, #tpu.memory_space<vmem>>, vector<144x32xf32>
    %2 = arith.truncf %0 : vector<128x144xf32> to vector<128x144xbf16>
    %3 = arith.truncf %1 : vector<144x32xf32> to vector<144x32xbf16>
    %cst = arith.constant dense<0.000000e+00> : vector<128x32xf32>
    %4 = tpu.matmul %2, %3, %cst {dimension_numbers = #tpu.dot_dimension_numbers<[1], [0], [0], [1], [0, 0, 1, 1], [], []>} : vector<128x144xbf16>, vector<144x32xbf16>, vector<128x32xf32> -> vector<128x32xf32>
    %c0_3 = arith.constant 0 : index
    %c0_4 = arith.constant 0 : index
    %5 = vector.load %arg3[%c0_3, %c0_4] : memref<1x32xf32, #tpu.memory_space<vmem>>, vector<1x32xf32>
    %6 = vector.broadcast %5 : vector<1x32xf32> to vector<128x32xf32>
    %7 = arith.addf %4, %6 : vector<128x32xf32>
    %cst_5 = arith.constant 0.000000e+00 : f32
    %8 = vector.broadcast %cst_5 : f32 to vector<128x32xf32>
    %9 = arith.maximumf %7, %8 : vector<128x32xf32>
    %c0_6 = arith.constant 0 : index
    %c0_7 = arith.constant 0 : index
    %10 = vector.load %arg4[%c0_6, %c0_7] : memref<128x32xf32, #tpu.memory_space<vmem>>, vector<128x32xf32>
    tpu.vector_store %arg4[%c0_6, %c0_7], %9 {strides = array<i32>} : memref<128x32xf32, #tpu.memory_space<vmem>>, vector<128x32xf32>,
    return
  }
  func.func @transform_0(%arg0: i32) -> (i32, i32) {
    %c0_i32 = arith.constant 0 : i32
    %c0_i32_0 = arith.constant 0 : i32
    return %arg0, %c0_i32 : i32, i32
  }
  func.func @transform_1(%arg0: i32) -> (i32, i32) {
    %c0_i32 = arith.constant 0 : i32
    %c0_i32_0 = arith.constant 0 : i32
    %c0_i32_1 = arith.constant 0 : i32
    return %c0_i32, %c0_i32_0 : i32, i32
  }
  func.func @transform_2(%arg0: i32) -> (i32, i32) {
    %c0_i32 = arith.constant 0 : i32
    %c0_i32_0 = arith.constant 0 : i32
    %c0_i32_1 = arith.constant 0 : i32
    return %c0_i32, %c0_i32_0 : i32, i32
  }
  func.func @transform_3(%arg0: i32) -> (i32, i32) {
    %c0_i32 = arith.constant 0 : i32
    %c0_i32_0 = arith.constant 0 : i32
    return %arg0, %c0_i32 : i32, i32
  }
}

module attributes {stable_mosaic.version = 11 : i64} {
  func.func @_dwcb_stage_kernel(%arg0: i32, %arg1: memref<1x64x32xf32, #tpu.memory_space<vmem>>, %arg2: memref<64x1xf32, #tpu.memory_space<vmem>>, %arg3: memref<64x1xf32, #tpu.memory_space<vmem>>, %arg4: memref<9x32xf32, #tpu.memory_space<vmem>>, %arg5: memref<1x32xf32, #tpu.memory_space<vmem>>, %arg6: memref<32x64xf32, #tpu.memory_space<vmem>>, %arg7: memref<1x64xf32, #tpu.memory_space<vmem>>, %arg8: memref<64x32xf32, #tpu.memory_space<vmem>>, %arg9: memref<1x32xf32, #tpu.memory_space<vmem>>, %arg10: memref<9x32xf32, #tpu.memory_space<vmem>>, %arg11: memref<1x32xf32, #tpu.memory_space<vmem>>, %arg12: memref<32x64xf32, #tpu.memory_space<vmem>>, %arg13: memref<1x64xf32, #tpu.memory_space<vmem>>, %arg14: memref<64x32xf32, #tpu.memory_space<vmem>>, %arg15: memref<1x32xf32, #tpu.memory_space<vmem>>, %arg16: memref<1x64x32xf32, #tpu.memory_space<vmem>>, %arg17: memref<96x32xf32, #tpu.memory_space<vmem>>) attributes {dimension_semantics = [#tpu.dimension_semantics<parallel>], iteration_bounds = array<i64: 2>, scalar_prefetch = 0 : i64, scratch_operands = 1 : i64, tpu.core_type = #tpu.core_type<tc>, window_params = [{transform_indices = @transform_0, window_bounds = array<i64: 1, 64, 32>}, {pipeline_mode = #tpu.pipeline_mode<synchronous>, transform_indices = @transform_1, window_bounds = array<i64: 64, 1>}, {pipeline_mode = #tpu.pipeline_mode<synchronous>, transform_indices = @transform_2, window_bounds = array<i64: 64, 1>}, {pipeline_mode = #tpu.pipeline_mode<synchronous>, transform_indices = @transform_3, window_bounds = array<i64: 9, 32>}, {pipeline_mode = #tpu.pipeline_mode<synchronous>, transform_indices = @transform_4, window_bounds = array<i64: 1, 32>}, {pipeline_mode = #tpu.pipeline_mode<synchronous>, transform_indices = @transform_5, window_bounds = array<i64: 32, 64>}, {pipeline_mode = #tpu.pipeline_mode<synchronous>, transform_indices = @transform_6, window_bounds = array<i64: 1, 64>}, {pipeline_mode = #tpu.pipeline_mode<synchronous>, transform_indices = @transform_7, window_bounds = array<i64: 64, 32>}, {pipeline_mode = #tpu.pipeline_mode<synchronous>, transform_indices = @transform_8, window_bounds = array<i64: 1, 32>}, {pipeline_mode = #tpu.pipeline_mode<synchronous>, transform_indices = @transform_9, window_bounds = array<i64: 9, 32>}, {pipeline_mode = #tpu.pipeline_mode<synchronous>, transform_indices = @transform_10, window_bounds = array<i64: 1, 32>}, {pipeline_mode = #tpu.pipeline_mode<synchronous>, transform_indices = @transform_11, window_bounds = array<i64: 32, 64>}, {pipeline_mode = #tpu.pipeline_mode<synchronous>, transform_indices = @transform_12, window_bounds = array<i64: 1, 64>}, {pipeline_mode = #tpu.pipeline_mode<synchronous>, transform_indices = @transform_13, window_bounds = array<i64: 64, 32>}, {pipeline_mode = #tpu.pipeline_mode<synchronous>, transform_indices = @transform_14, window_bounds = array<i64: 1, 32>}, {transform_indices = @transform_15, window_bounds = array<i64: 1, 64, 32>}]} {
    %cst = arith.constant 0.000000e+00 : f32
    %0 = vector.broadcast %cst : f32 to vector<96x32xf32>
    %c0 = arith.constant 0 : index
    %c0_0 = arith.constant 0 : index
    %1 = vector.load %arg17[%c0, %c0_0] : memref<96x32xf32, #tpu.memory_space<vmem>>, vector<96x32xf32>
    tpu.vector_store %arg17[%c0, %c0_0], %0 {strides = array<i32>} : memref<96x32xf32, #tpu.memory_space<vmem>>, vector<96x32xf32>,
    %c0_1 = arith.constant 0 : index
    %c0_2 = arith.constant 0 : index
    %2 = vector.load %arg2[%c0_1, %c0_2] : memref<64x1xf32, #tpu.memory_space<vmem>>, vector<64x1xf32>
    %c0_3 = arith.constant 0 : index
    %c0_4 = arith.constant 0 : index
    %3 = vector.load %arg3[%c0_3, %c0_4] : memref<64x1xf32, #tpu.memory_space<vmem>>, vector<64x1xf32>
    %c0_5 = arith.constant 0 : index
    %c0_6 = arith.constant 0 : index
    %c0_7 = arith.constant 0 : index
    %4 = vector.load %arg1[%c0_5, %c0_6, %c0_7] : memref<1x64x32xf32, #tpu.memory_space<vmem>>, vector<1x64x32xf32>
    %5 = vector.shape_cast %4 : vector<1x64x32xf32> to vector<64x32xf32>
    %c16 = arith.constant 16 : index
    %c0_8 = arith.constant 0 : index
    %6 = vector.load %arg17[%c16, %c0_8] : memref<96x32xf32, #tpu.memory_space<vmem>>, vector<64x32xf32>
    tpu.vector_store %arg17[%c16, %c0_8], %5 {strides = array<i32>} : memref<96x32xf32, #tpu.memory_space<vmem>>, vector<64x32xf32>,
    %cst_9 = arith.constant 0.000000e+00 : f32
    %7 = vector.broadcast %cst_9 : f32 to vector<64x32xf32>
    %c7 = arith.constant 7 : index
    %c0_10 = arith.constant 0 : index
    %8 = vector.load %arg17[%c7, %c0_10] : memref<96x32xf32, #tpu.memory_space<vmem>>, vector<64x32xf32>
    %9 = vector.broadcast %2 : vector<64x1xf32> to vector<64x32xf32>
    %10 = arith.mulf %8, %9 : vector<64x32xf32>
    %c0_11 = arith.constant 0 : index
    %c0_12 = arith.constant 0 : index
    %11 = vector.load %arg4[%c0_11, %c0_12] : memref<9x32xf32, #tpu.memory_space<vmem>>, vector<1x32xf32>
    %12 = vector.broadcast %11 : vector<1x32xf32> to vector<64x32xf32>
    %13 = arith.mulf %10, %12 : vector<64x32xf32>
    %14 = arith.addf %7, %13 : vector<64x32xf32>
    %c8 = arith.constant 8 : index
    %c0_13 = arith.constant 0 : index
    %15 = vector.load %arg17[%c8, %c0_13] : memref<96x32xf32, #tpu.memory_space<vmem>>, vector<64x32xf32>
    %c1 = arith.constant 1 : index
    %c0_14 = arith.constant 0 : index
    %16 = vector.load %arg4[%c1, %c0_14] : memref<9x32xf32, #tpu.memory_space<vmem>>, vector<1x32xf32>
    %17 = vector.broadcast %16 : vector<1x32xf32> to vector<64x32xf32>
    %18 = arith.mulf %15, %17 : vector<64x32xf32>
    %19 = arith.addf %14, %18 : vector<64x32xf32>
    %c9 = arith.constant 9 : index
    %c0_15 = arith.constant 0 : index
    %20 = vector.load %arg17[%c9, %c0_15] : memref<96x32xf32, #tpu.memory_space<vmem>>, vector<64x32xf32>
    %21 = vector.broadcast %3 : vector<64x1xf32> to vector<64x32xf32>
    %22 = arith.mulf %20, %21 : vector<64x32xf32>
    %c2 = arith.constant 2 : index
    %c0_16 = arith.constant 0 : index
    %23 = vector.load %arg4[%c2, %c0_16] : memref<9x32xf32, #tpu.memory_space<vmem>>, vector<1x32xf32>
    %24 = vector.broadcast %23 : vector<1x32xf32> to vector<64x32xf32>
    %25 = arith.mulf %22, %24 : vector<64x32xf32>
    %26 = arith.addf %19, %25 : vector<64x32xf32>
    %c15 = arith.constant 15 : index
    %c0_17 = arith.constant 0 : index
    %27 = vector.load %arg17[%c15, %c0_17] : memref<96x32xf32, #tpu.memory_space<vmem>>, vector<64x32xf32>
    %28 = vector.broadcast %2 : vector<64x1xf32> to vector<64x32xf32>
    %29 = arith.mulf %27, %28 : vector<64x32xf32>
    %c3 = arith.constant 3 : index
    %c0_18 = arith.constant 0 : index
    %30 = vector.load %arg4[%c3, %c0_18] : memref<9x32xf32, #tpu.memory_space<vmem>>, vector<1x32xf32>
    %31 = vector.broadcast %30 : vector<1x32xf32> to vector<64x32xf32>
    %32 = arith.mulf %29, %31 : vector<64x32xf32>
    %33 = arith.addf %26, %32 : vector<64x32xf32>
    %c16_19 = arith.constant 16 : index
    %c0_20 = arith.constant 0 : index
    %34 = vector.load %arg17[%c16_19, %c0_20] : memref<96x32xf32, #tpu.memory_space<vmem>>, vector<64x32xf32>
    %c4 = arith.constant 4 : index
    %c0_21 = arith.constant 0 : index
    %35 = vector.load %arg4[%c4, %c0_21] : memref<9x32xf32, #tpu.memory_space<vmem>>, vector<1x32xf32>
    %36 = vector.broadcast %35 : vector<1x32xf32> to vector<64x32xf32>
    %37 = arith.mulf %34, %36 : vector<64x32xf32>
    %38 = arith.addf %33, %37 : vector<64x32xf32>
    %c17 = arith.constant 17 : index
    %c0_22 = arith.constant 0 : index
    %39 = vector.load %arg17[%c17, %c0_22] : memref<96x32xf32, #tpu.memory_space<vmem>>, vector<64x32xf32>
    %40 = vector.broadcast %3 : vector<64x1xf32> to vector<64x32xf32>
    %41 = arith.mulf %39, %40 : vector<64x32xf32>
    %c5 = arith.constant 5 : index
    %c0_23 = arith.constant 0 : index
    %42 = vector.load %arg4[%c5, %c0_23] : memref<9x32xf32, #tpu.memory_space<vmem>>, vector<1x32xf32>
    %43 = vector.broadcast %42 : vector<1x32xf32> to vector<64x32xf32>
    %44 = arith.mulf %41, %43 : vector<64x32xf32>
    %45 = arith.addf %38, %44 : vector<64x32xf32>
    %c23 = arith.constant 23 : index
    %c0_24 = arith.constant 0 : index
    %46 = vector.load %arg17[%c23, %c0_24] : memref<96x32xf32, #tpu.memory_space<vmem>>, vector<64x32xf32>
    %47 = vector.broadcast %2 : vector<64x1xf32> to vector<64x32xf32>
    %48 = arith.mulf %46, %47 : vector<64x32xf32>
    %c6 = arith.constant 6 : index
    %c0_25 = arith.constant 0 : index
    %49 = vector.load %arg4[%c6, %c0_25] : memref<9x32xf32, #tpu.memory_space<vmem>>, vector<1x32xf32>
    %50 = vector.broadcast %49 : vector<1x32xf32> to vector<64x32xf32>
    %51 = arith.mulf %48, %50 : vector<64x32xf32>
    %52 = arith.addf %45, %51 : vector<64x32xf32>
    %c24 = arith.constant 24 : index
    %c0_26 = arith.constant 0 : index
    %53 = vector.load %arg17[%c24, %c0_26] : memref<96x32xf32, #tpu.memory_space<vmem>>, vector<64x32xf32>
    %c7_27 = arith.constant 7 : index
    %c0_28 = arith.constant 0 : index
    %54 = vector.load %arg4[%c7_27, %c0_28] : memref<9x32xf32, #tpu.memory_space<vmem>>, vector<1x32xf32>
    %55 = vector.broadcast %54 : vector<1x32xf32> to vector<64x32xf32>
    %56 = arith.mulf %53, %55 : vector<64x32xf32>
    %57 = arith.addf %52, %56 : vector<64x32xf32>
    %c25 = arith.constant 25 : index
    %c0_29 = arith.constant 0 : index
    %58 = vector.load %arg17[%c25, %c0_29] : memref<96x32xf32, #tpu.memory_space<vmem>>, vector<64x32xf32>
    %59 = vector.broadcast %3 : vector<64x1xf32> to vector<64x32xf32>
    %60 = arith.mulf %58, %59 : vector<64x32xf32>
    %c8_30 = arith.constant 8 : index
    %c0_31 = arith.constant 0 : index
    %61 = vector.load %arg4[%c8_30, %c0_31] : memref<9x32xf32, #tpu.memory_space<vmem>>, vector<1x32xf32>
    %62 = vector.broadcast %61 : vector<1x32xf32> to vector<64x32xf32>
    %63 = arith.mulf %60, %62 : vector<64x32xf32>
    %64 = arith.addf %57, %63 : vector<64x32xf32>
    %c0_32 = arith.constant 0 : index
    %c0_33 = arith.constant 0 : index
    %65 = vector.load %arg5[%c0_32, %c0_33] : memref<1x32xf32, #tpu.memory_space<vmem>>, vector<1x32xf32>
    %66 = vector.broadcast %65 : vector<1x32xf32> to vector<64x32xf32>
    %67 = arith.addf %64, %66 : vector<64x32xf32>
    %c0_34 = arith.constant 0 : index
    %c0_35 = arith.constant 0 : index
    %68 = vector.load %arg6[%c0_34, %c0_35] : memref<32x64xf32, #tpu.memory_space<vmem>>, vector<32x64xf32>
    %69 = arith.truncf %67 : vector<64x32xf32> to vector<64x32xbf16>
    %70 = arith.truncf %68 : vector<32x64xf32> to vector<32x64xbf16>
    %cst_36 = arith.constant dense<0.000000e+00> : vector<64x64xf32>
    %71 = tpu.matmul %69, %70, %cst_36 {dimension_numbers = #tpu.dot_dimension_numbers<[1], [0], [0], [1], [0, 0, 1, 1], [], []>} : vector<64x32xbf16>, vector<32x64xbf16>, vector<64x64xf32> -> vector<64x64xf32>
    %c0_37 = arith.constant 0 : index
    %c0_38 = arith.constant 0 : index
    %72 = vector.load %arg7[%c0_37, %c0_38] : memref<1x64xf32, #tpu.memory_space<vmem>>, vector<1x64xf32>
    %73 = vector.broadcast %72 : vector<1x64xf32> to vector<64x64xf32>
    %74 = arith.addf %71, %73 : vector<64x64xf32>
    %cst_39 = arith.constant 5.000000e-01 : f32
    %75 = vector.broadcast %cst_39 : f32 to vector<64x64xf32>
    %76 = arith.mulf %75, %74 : vector<64x64xf32>
    %cst_40 = arith.constant 4.471500e-02 : f32
    %77 = vector.broadcast %cst_40 : f32 to vector<64x64xf32>
    %78 = arith.mulf %77, %74 : vector<64x64xf32>
    %79 = arith.mulf %78, %74 : vector<64x64xf32>
    %80 = arith.mulf %79, %74 : vector<64x64xf32>
    %81 = arith.addf %74, %80 : vector<64x64xf32>
    %cst_41 = arith.constant 0.797884583 : f32
    %82 = vector.broadcast %cst_41 : f32 to vector<64x64xf32>
    %83 = arith.mulf %82, %81 : vector<64x64xf32>
    %84 = math.tanh %83 : vector<64x64xf32>
    %cst_42 = arith.constant 1.000000e+00 : f32
    %85 = vector.broadcast %cst_42 : f32 to vector<64x64xf32>
    %86 = arith.addf %85, %84 : vector<64x64xf32>
    %87 = arith.mulf %76, %86 : vector<64x64xf32>
    %c0_43 = arith.constant 0 : index
    %c0_44 = arith.constant 0 : index
    %88 = vector.load %arg8[%c0_43, %c0_44] : memref<64x32xf32, #tpu.memory_space<vmem>>, vector<64x32xf32>
    %89 = arith.truncf %87 : vector<64x64xf32> to vector<64x64xbf16>
    %90 = arith.truncf %88 : vector<64x32xf32> to vector<64x32xbf16>
    %cst_45 = arith.constant dense<0.000000e+00> : vector<64x32xf32>
    %91 = tpu.matmul %89, %90, %cst_45 {dimension_numbers = #tpu.dot_dimension_numbers<[1], [0], [0], [1], [0, 0, 1, 1], [], []>} : vector<64x64xbf16>, vector<64x32xbf16>, vector<64x32xf32> -> vector<64x32xf32>
    %c0_46 = arith.constant 0 : index
    %c0_47 = arith.constant 0 : index
    %92 = vector.load %arg9[%c0_46, %c0_47] : memref<1x32xf32, #tpu.memory_space<vmem>>, vector<1x32xf32>
    %93 = vector.broadcast %92 : vector<1x32xf32> to vector<64x32xf32>
    %94 = arith.addf %91, %93 : vector<64x32xf32>
    %95 = arith.addf %5, %94 : vector<64x32xf32>
    %c16_48 = arith.constant 16 : index
    %c0_49 = arith.constant 0 : index
    %96 = vector.load %arg17[%c16_48, %c0_49] : memref<96x32xf32, #tpu.memory_space<vmem>>, vector<64x32xf32>
    tpu.vector_store %arg17[%c16_48, %c0_49], %95 {strides = array<i32>} : memref<96x32xf32, #tpu.memory_space<vmem>>, vector<64x32xf32>,
    %cst_50 = arith.constant 0.000000e+00 : f32
    %97 = vector.broadcast %cst_50 : f32 to vector<64x32xf32>
    %c7_51 = arith.constant 7 : index
    %c0_52 = arith.constant 0 : index
    %98 = vector.load %arg17[%c7_51, %c0_52] : memref<96x32xf32, #tpu.memory_space<vmem>>, vector<64x32xf32>
    %99 = vector.broadcast %2 : vector<64x1xf32> to vector<64x32xf32>
    %100 = arith.mulf %98, %99 : vector<64x32xf32>
    %c0_53 = arith.constant 0 : index
    %c0_54 = arith.constant 0 : index
    %101 = vector.load %arg10[%c0_53, %c0_54] : memref<9x32xf32, #tpu.memory_space<vmem>>, vector<1x32xf32>
    %102 = vector.broadcast %101 : vector<1x32xf32> to vector<64x32xf32>
    %103 = arith.mulf %100, %102 : vector<64x32xf32>
    %104 = arith.addf %97, %103 : vector<64x32xf32>
    %c8_55 = arith.constant 8 : index
    %c0_56 = arith.constant 0 : index
    %105 = vector.load %arg17[%c8_55, %c0_56] : memref<96x32xf32, #tpu.memory_space<vmem>>, vector<64x32xf32>
    %c1_57 = arith.constant 1 : index
    %c0_58 = arith.constant 0 : index
    %106 = vector.load %arg10[%c1_57, %c0_58] : memref<9x32xf32, #tpu.memory_space<vmem>>, vector<1x32xf32>
    %107 = vector.broadcast %106 : vector<1x32xf32> to vector<64x32xf32>
    %108 = arith.mulf %105, %107 : vector<64x32xf32>
    %109 = arith.addf %104, %108 : vector<64x32xf32>
    %c9_59 = arith.constant 9 : index
    %c0_60 = arith.constant 0 : index
    %110 = vector.load %arg17[%c9_59, %c0_60] : memref<96x32xf32, #tpu.memory_space<vmem>>, vector<64x32xf32>
    %111 = vector.broadcast %3 : vector<64x1xf32> to vector<64x32xf32>
    %112 = arith.mulf %110, %111 : vector<64x32xf32>
    %c2_61 = arith.constant 2 : index
    %c0_62 = arith.constant 0 : index
    %113 = vector.load %arg10[%c2_61, %c0_62] : memref<9x32xf32, #tpu.memory_space<vmem>>, vector<1x32xf32>
    %114 = vector.broadcast %113 : vector<1x32xf32> to vector<64x32xf32>
    %115 = arith.mulf %112, %114 : vector<64x32xf32>
    %116 = arith.addf %109, %115 : vector<64x32xf32>
    %c15_63 = arith.constant 15 : index
    %c0_64 = arith.constant 0 : index
    %117 = vector.load %arg17[%c15_63, %c0_64] : memref<96x32xf32, #tpu.memory_space<vmem>>, vector<64x32xf32>
    %118 = vector.broadcast %2 : vector<64x1xf32> to vector<64x32xf32>
    %119 = arith.mulf %117, %118 : vector<64x32xf32>
    %c3_65 = arith.constant 3 : index
    %c0_66 = arith.constant 0 : index
    %120 = vector.load %arg10[%c3_65, %c0_66] : memref<9x32xf32, #tpu.memory_space<vmem>>, vector<1x32xf32>
    %121 = vector.broadcast %120 : vector<1x32xf32> to vector<64x32xf32>
    %122 = arith.mulf %119, %121 : vector<64x32xf32>
    %123 = arith.addf %116, %122 : vector<64x32xf32>
    %c16_67 = arith.constant 16 : index
    %c0_68 = arith.constant 0 : index
    %124 = vector.load %arg17[%c16_67, %c0_68] : memref<96x32xf32, #tpu.memory_space<vmem>>, vector<64x32xf32>
    %c4_69 = arith.constant 4 : index
    %c0_70 = arith.constant 0 : index
    %125 = vector.load %arg10[%c4_69, %c0_70] : memref<9x32xf32, #tpu.memory_space<vmem>>, vector<1x32xf32>
    %126 = vector.broadcast %125 : vector<1x32xf32> to vector<64x32xf32>
    %127 = arith.mulf %124, %126 : vector<64x32xf32>
    %128 = arith.addf %123, %127 : vector<64x32xf32>
    %c17_71 = arith.constant 17 : index
    %c0_72 = arith.constant 0 : index
    %129 = vector.load %arg17[%c17_71, %c0_72] : memref<96x32xf32, #tpu.memory_space<vmem>>, vector<64x32xf32>
    %130 = vector.broadcast %3 : vector<64x1xf32> to vector<64x32xf32>
    %131 = arith.mulf %129, %130 : vector<64x32xf32>
    %c5_73 = arith.constant 5 : index
    %c0_74 = arith.constant 0 : index
    %132 = vector.load %arg10[%c5_73, %c0_74] : memref<9x32xf32, #tpu.memory_space<vmem>>, vector<1x32xf32>
    %133 = vector.broadcast %132 : vector<1x32xf32> to vector<64x32xf32>
    %134 = arith.mulf %131, %133 : vector<64x32xf32>
    %135 = arith.addf %128, %134 : vector<64x32xf32>
    %c23_75 = arith.constant 23 : index
    %c0_76 = arith.constant 0 : index
    %136 = vector.load %arg17[%c23_75, %c0_76] : memref<96x32xf32, #tpu.memory_space<vmem>>, vector<64x32xf32>
    %137 = vector.broadcast %2 : vector<64x1xf32> to vector<64x32xf32>
    %138 = arith.mulf %136, %137 : vector<64x32xf32>
    %c6_77 = arith.constant 6 : index
    %c0_78 = arith.constant 0 : index
    %139 = vector.load %arg10[%c6_77, %c0_78] : memref<9x32xf32, #tpu.memory_space<vmem>>, vector<1x32xf32>
    %140 = vector.broadcast %139 : vector<1x32xf32> to vector<64x32xf32>
    %141 = arith.mulf %138, %140 : vector<64x32xf32>
    %142 = arith.addf %135, %141 : vector<64x32xf32>
    %c24_79 = arith.constant 24 : index
    %c0_80 = arith.constant 0 : index
    %143 = vector.load %arg17[%c24_79, %c0_80] : memref<96x32xf32, #tpu.memory_space<vmem>>, vector<64x32xf32>
    %c7_81 = arith.constant 7 : index
    %c0_82 = arith.constant 0 : index
    %144 = vector.load %arg10[%c7_81, %c0_82] : memref<9x32xf32, #tpu.memory_space<vmem>>, vector<1x32xf32>
    %145 = vector.broadcast %144 : vector<1x32xf32> to vector<64x32xf32>
    %146 = arith.mulf %143, %145 : vector<64x32xf32>
    %147 = arith.addf %142, %146 : vector<64x32xf32>
    %c25_83 = arith.constant 25 : index
    %c0_84 = arith.constant 0 : index
    %148 = vector.load %arg17[%c25_83, %c0_84] : memref<96x32xf32, #tpu.memory_space<vmem>>, vector<64x32xf32>
    %149 = vector.broadcast %3 : vector<64x1xf32> to vector<64x32xf32>
    %150 = arith.mulf %148, %149 : vector<64x32xf32>
    %c8_85 = arith.constant 8 : index
    %c0_86 = arith.constant 0 : index
    %151 = vector.load %arg10[%c8_85, %c0_86] : memref<9x32xf32, #tpu.memory_space<vmem>>, vector<1x32xf32>
    %152 = vector.broadcast %151 : vector<1x32xf32> to vector<64x32xf32>
    %153 = arith.mulf %150, %152 : vector<64x32xf32>
    %154 = arith.addf %147, %153 : vector<64x32xf32>
    %c0_87 = arith.constant 0 : index
    %c0_88 = arith.constant 0 : index
    %155 = vector.load %arg11[%c0_87, %c0_88] : memref<1x32xf32, #tpu.memory_space<vmem>>, vector<1x32xf32>
    %156 = vector.broadcast %155 : vector<1x32xf32> to vector<64x32xf32>
    %157 = arith.addf %154, %156 : vector<64x32xf32>
    %c0_89 = arith.constant 0 : index
    %c0_90 = arith.constant 0 : index
    %158 = vector.load %arg12[%c0_89, %c0_90] : memref<32x64xf32, #tpu.memory_space<vmem>>, vector<32x64xf32>
    %159 = arith.truncf %157 : vector<64x32xf32> to vector<64x32xbf16>
    %160 = arith.truncf %158 : vector<32x64xf32> to vector<32x64xbf16>
    %cst_91 = arith.constant dense<0.000000e+00> : vector<64x64xf32>
    %161 = tpu.matmul %159, %160, %cst_91 {dimension_numbers = #tpu.dot_dimension_numbers<[1], [0], [0], [1], [0, 0, 1, 1], [], []>} : vector<64x32xbf16>, vector<32x64xbf16>, vector<64x64xf32> -> vector<64x64xf32>
    %c0_92 = arith.constant 0 : index
    %c0_93 = arith.constant 0 : index
    %162 = vector.load %arg13[%c0_92, %c0_93] : memref<1x64xf32, #tpu.memory_space<vmem>>, vector<1x64xf32>
    %163 = vector.broadcast %162 : vector<1x64xf32> to vector<64x64xf32>
    %164 = arith.addf %161, %163 : vector<64x64xf32>
    %cst_94 = arith.constant 5.000000e-01 : f32
    %165 = vector.broadcast %cst_94 : f32 to vector<64x64xf32>
    %166 = arith.mulf %165, %164 : vector<64x64xf32>
    %cst_95 = arith.constant 4.471500e-02 : f32
    %167 = vector.broadcast %cst_95 : f32 to vector<64x64xf32>
    %168 = arith.mulf %167, %164 : vector<64x64xf32>
    %169 = arith.mulf %168, %164 : vector<64x64xf32>
    %170 = arith.mulf %169, %164 : vector<64x64xf32>
    %171 = arith.addf %164, %170 : vector<64x64xf32>
    %cst_96 = arith.constant 0.797884583 : f32
    %172 = vector.broadcast %cst_96 : f32 to vector<64x64xf32>
    %173 = arith.mulf %172, %171 : vector<64x64xf32>
    %174 = math.tanh %173 : vector<64x64xf32>
    %cst_97 = arith.constant 1.000000e+00 : f32
    %175 = vector.broadcast %cst_97 : f32 to vector<64x64xf32>
    %176 = arith.addf %175, %174 : vector<64x64xf32>
    %177 = arith.mulf %166, %176 : vector<64x64xf32>
    %c0_98 = arith.constant 0 : index
    %c0_99 = arith.constant 0 : index
    %178 = vector.load %arg14[%c0_98, %c0_99] : memref<64x32xf32, #tpu.memory_space<vmem>>, vector<64x32xf32>
    %179 = arith.truncf %177 : vector<64x64xf32> to vector<64x64xbf16>
    %180 = arith.truncf %178 : vector<64x32xf32> to vector<64x32xbf16>
    %cst_100 = arith.constant dense<0.000000e+00> : vector<64x32xf32>
    %181 = tpu.matmul %179, %180, %cst_100 {dimension_numbers = #tpu.dot_dimension_numbers<[1], [0], [0], [1], [0, 0, 1, 1], [], []>} : vector<64x64xbf16>, vector<64x32xbf16>, vector<64x32xf32> -> vector<64x32xf32>
    %c0_101 = arith.constant 0 : index
    %c0_102 = arith.constant 0 : index
    %182 = vector.load %arg15[%c0_101, %c0_102] : memref<1x32xf32, #tpu.memory_space<vmem>>, vector<1x32xf32>
    %183 = vector.broadcast %182 : vector<1x32xf32> to vector<64x32xf32>
    %184 = arith.addf %181, %183 : vector<64x32xf32>
    %185 = arith.addf %95, %184 : vector<64x32xf32>
    %c0_103 = arith.constant 0 : index
    %c0_104 = arith.constant 0 : index
    %c0_105 = arith.constant 0 : index
    %186 = vector.load %arg16[%c0_103, %c0_104, %c0_105] : memref<1x64x32xf32, #tpu.memory_space<vmem>>, vector<1x64x32xf32>
    %187 = vector.shape_cast %186 : vector<1x64x32xf32> to vector<64x32xf32>
    %188 = vector.shape_cast %185 : vector<64x32xf32> to vector<1x64x32xf32>
    tpu.vector_store %arg16[%c0_103, %c0_104, %c0_105], %188 {strides = array<i32>} : memref<1x64x32xf32, #tpu.memory_space<vmem>>, vector<1x64x32xf32>,
    return
  }
  func.func @transform_0(%arg0: i32) -> (i32, i32, i32) {
    %c0_i32 = arith.constant 0 : i32
    %c0_i32_0 = arith.constant 0 : i32
    %c0_i32_1 = arith.constant 0 : i32
    return %arg0, %c0_i32, %c0_i32_0 : i32, i32, i32
  }
  func.func @transform_1(%arg0: i32) -> (i32, i32) {
    %c0_i32 = arith.constant 0 : i32
    %c0_i32_0 = arith.constant 0 : i32
    %c0_i32_1 = arith.constant 0 : i32
    return %c0_i32, %c0_i32_0 : i32, i32
  }
  func.func @transform_2(%arg0: i32) -> (i32, i32) {
    %c0_i32 = arith.constant 0 : i32
    %c0_i32_0 = arith.constant 0 : i32
    %c0_i32_1 = arith.constant 0 : i32
    return %c0_i32, %c0_i32_0 : i32, i32
  }
  func.func @transform_3(%arg0: i32) -> (i32, i32) {
    %c0_i32 = arith.constant 0 : i32
    %c0_i32_0 = arith.constant 0 : i32
    %c0_i32_1 = arith.constant 0 : i32
    return %c0_i32, %c0_i32_0 : i32, i32
  }
  func.func @transform_4(%arg0: i32) -> (i32, i32) {
    %c0_i32 = arith.constant 0 : i32
    %c0_i32_0 = arith.constant 0 : i32
    %c0_i32_1 = arith.constant 0 : i32
    return %c0_i32, %c0_i32_0 : i32, i32
  }
  func.func @transform_5(%arg0: i32) -> (i32, i32) {
    %c0_i32 = arith.constant 0 : i32
    %c0_i32_0 = arith.constant 0 : i32
    %c0_i32_1 = arith.constant 0 : i32
    return %c0_i32, %c0_i32_0 : i32, i32
  }
  func.func @transform_6(%arg0: i32) -> (i32, i32) {
    %c0_i32 = arith.constant 0 : i32
    %c0_i32_0 = arith.constant 0 : i32
    %c0_i32_1 = arith.constant 0 : i32
    return %c0_i32, %c0_i32_0 : i32, i32
  }
  func.func @transform_7(%arg0: i32) -> (i32, i32) {
    %c0_i32 = arith.constant 0 : i32
    %c0_i32_0 = arith.constant 0 : i32
    %c0_i32_1 = arith.constant 0 : i32
    return %c0_i32, %c0_i32_0 : i32, i32
  }
  func.func @transform_8(%arg0: i32) -> (i32, i32) {
    %c0_i32 = arith.constant 0 : i32
    %c0_i32_0 = arith.constant 0 : i32
    %c0_i32_1 = arith.constant 0 : i32
    return %c0_i32, %c0_i32_0 : i32, i32
  }
  func.func @transform_9(%arg0: i32) -> (i32, i32) {
    %c0_i32 = arith.constant 0 : i32
    %c0_i32_0 = arith.constant 0 : i32
    %c0_i32_1 = arith.constant 0 : i32
    return %c0_i32, %c0_i32_0 : i32, i32
  }
  func.func @transform_10(%arg0: i32) -> (i32, i32) {
    %c0_i32 = arith.constant 0 : i32
    %c0_i32_0 = arith.constant 0 : i32
    %c0_i32_1 = arith.constant 0 : i32
    return %c0_i32, %c0_i32_0 : i32, i32
  }
  func.func @transform_11(%arg0: i32) -> (i32, i32) {
    %c0_i32 = arith.constant 0 : i32
    %c0_i32_0 = arith.constant 0 : i32
    %c0_i32_1 = arith.constant 0 : i32
    return %c0_i32, %c0_i32_0 : i32, i32
  }
  func.func @transform_12(%arg0: i32) -> (i32, i32) {
    %c0_i32 = arith.constant 0 : i32
    %c0_i32_0 = arith.constant 0 : i32
    %c0_i32_1 = arith.constant 0 : i32
    return %c0_i32, %c0_i32_0 : i32, i32
  }
  func.func @transform_13(%arg0: i32) -> (i32, i32) {
    %c0_i32 = arith.constant 0 : i32
    %c0_i32_0 = arith.constant 0 : i32
    %c0_i32_1 = arith.constant 0 : i32
    return %c0_i32, %c0_i32_0 : i32, i32
  }
  func.func @transform_14(%arg0: i32) -> (i32, i32) {
    %c0_i32 = arith.constant 0 : i32
    %c0_i32_0 = arith.constant 0 : i32
    %c0_i32_1 = arith.constant 0 : i32
    return %c0_i32, %c0_i32_0 : i32, i32
  }
  func.func @transform_15(%arg0: i32) -> (i32, i32, i32) {
    %c0_i32 = arith.constant 0 : i32
    %c0_i32_0 = arith.constant 0 : i32
    %c0_i32_1 = arith.constant 0 : i32
    return %arg0, %c0_i32, %c0_i32_0 : i32, i32, i32
  }
}

module attributes {stable_mosaic.version = 11 : i64} {
  func.func @_mm_bias_act_kernel(%arg0: i32, %arg1: memref<32x128xf32, #tpu.memory_space<vmem>>, %arg2: memref<128x64xf32, #tpu.memory_space<vmem>>, %arg3: memref<1x64xf32, #tpu.memory_space<vmem>>, %arg4: memref<32x64xf32, #tpu.memory_space<vmem>>) attributes {dimension_semantics = [#tpu.dimension_semantics<parallel>], iteration_bounds = array<i64: 1>, scalar_prefetch = 0 : i64, scratch_operands = 0 : i64, tpu.core_type = #tpu.core_type<tc>, window_params = [{transform_indices = @transform_0, window_bounds = array<i64: 32, 128>}, {pipeline_mode = #tpu.pipeline_mode<synchronous>, transform_indices = @transform_1, window_bounds = array<i64: 128, 64>}, {pipeline_mode = #tpu.pipeline_mode<synchronous>, transform_indices = @transform_2, window_bounds = array<i64: 1, 64>}, {transform_indices = @transform_3, window_bounds = array<i64: 32, 64>}]} {
    %c0 = arith.constant 0 : index
    %c0_0 = arith.constant 0 : index
    %0 = vector.load %arg1[%c0, %c0_0] : memref<32x128xf32, #tpu.memory_space<vmem>>, vector<32x128xf32>
    %c0_1 = arith.constant 0 : index
    %c0_2 = arith.constant 0 : index
    %1 = vector.load %arg2[%c0_1, %c0_2] : memref<128x64xf32, #tpu.memory_space<vmem>>, vector<128x64xf32>
    %2 = arith.truncf %0 : vector<32x128xf32> to vector<32x128xbf16>
    %3 = arith.truncf %1 : vector<128x64xf32> to vector<128x64xbf16>
    %cst = arith.constant dense<0.000000e+00> : vector<32x64xf32>
    %4 = tpu.matmul %2, %3, %cst {dimension_numbers = #tpu.dot_dimension_numbers<[1], [0], [0], [1], [0, 0, 1, 1], [], []>} : vector<32x128xbf16>, vector<128x64xbf16>, vector<32x64xf32> -> vector<32x64xf32>
    %c0_3 = arith.constant 0 : index
    %c0_4 = arith.constant 0 : index
    %5 = vector.load %arg3[%c0_3, %c0_4] : memref<1x64xf32, #tpu.memory_space<vmem>>, vector<1x64xf32>
    %6 = vector.broadcast %5 : vector<1x64xf32> to vector<32x64xf32>
    %7 = arith.addf %4, %6 : vector<32x64xf32>
    %c0_5 = arith.constant 0 : index
    %c0_6 = arith.constant 0 : index
    %8 = vector.load %arg4[%c0_5, %c0_6] : memref<32x64xf32, #tpu.memory_space<vmem>>, vector<32x64xf32>
    tpu.vector_store %arg4[%c0_5, %c0_6], %7 {strides = array<i32>} : memref<32x64xf32, #tpu.memory_space<vmem>>, vector<32x64xf32>,
    return
  }
  func.func @transform_0(%arg0: i32) -> (i32, i32) {
    %c0_i32 = arith.constant 0 : i32
    %c0_i32_0 = arith.constant 0 : i32
    return %arg0, %c0_i32 : i32, i32
  }
  func.func @transform_1(%arg0: i32) -> (i32, i32) {
    %c0_i32 = arith.constant 0 : i32
    %c0_i32_0 = arith.constant 0 : i32
    %c0_i32_1 = arith.constant 0 : i32
    return %c0_i32, %c0_i32_0 : i32, i32
  }
  func.func @transform_2(%arg0: i32) -> (i32, i32) {
    %c0_i32 = arith.constant 0 : i32
    %c0_i32_0 = arith.constant 0 : i32
    %c0_i32_1 = arith.constant 0 : i32
    return %c0_i32, %c0_i32_0 : i32, i32
  }
  func.func @transform_3(%arg0: i32) -> (i32, i32) {
    %c0_i32 = arith.constant 0 : i32
    %c0_i32_0 = arith.constant 0 : i32
    return %arg0, %c0_i32 : i32, i32
  }
}

module attributes {stable_mosaic.version = 11 : i64} {
  func.func @_dwcb_stage_kernel(%arg0: i32, %arg1: memref<1x16x64xf32, #tpu.memory_space<vmem>>, %arg2: memref<16x1xf32, #tpu.memory_space<vmem>>, %arg3: memref<16x1xf32, #tpu.memory_space<vmem>>, %arg4: memref<9x64xf32, #tpu.memory_space<vmem>>, %arg5: memref<1x64xf32, #tpu.memory_space<vmem>>, %arg6: memref<64x128xf32, #tpu.memory_space<vmem>>, %arg7: memref<1x128xf32, #tpu.memory_space<vmem>>, %arg8: memref<128x64xf32, #tpu.memory_space<vmem>>, %arg9: memref<1x64xf32, #tpu.memory_space<vmem>>, %arg10: memref<9x64xf32, #tpu.memory_space<vmem>>, %arg11: memref<1x64xf32, #tpu.memory_space<vmem>>, %arg12: memref<64x128xf32, #tpu.memory_space<vmem>>, %arg13: memref<1x128xf32, #tpu.memory_space<vmem>>, %arg14: memref<128x64xf32, #tpu.memory_space<vmem>>, %arg15: memref<1x64xf32, #tpu.memory_space<vmem>>, %arg16: memref<1x16x64xf32, #tpu.memory_space<vmem>>, %arg17: memref<32x64xf32, #tpu.memory_space<vmem>>) attributes {dimension_semantics = [#tpu.dimension_semantics<parallel>], iteration_bounds = array<i64: 2>, scalar_prefetch = 0 : i64, scratch_operands = 1 : i64, tpu.core_type = #tpu.core_type<tc>, window_params = [{transform_indices = @transform_0, window_bounds = array<i64: 1, 16, 64>}, {pipeline_mode = #tpu.pipeline_mode<synchronous>, transform_indices = @transform_1, window_bounds = array<i64: 16, 1>}, {pipeline_mode = #tpu.pipeline_mode<synchronous>, transform_indices = @transform_2, window_bounds = array<i64: 16, 1>}, {pipeline_mode = #tpu.pipeline_mode<synchronous>, transform_indices = @transform_3, window_bounds = array<i64: 9, 64>}, {pipeline_mode = #tpu.pipeline_mode<synchronous>, transform_indices = @transform_4, window_bounds = array<i64: 1, 64>}, {pipeline_mode = #tpu.pipeline_mode<synchronous>, transform_indices = @transform_5, window_bounds = array<i64: 64, 128>}, {pipeline_mode = #tpu.pipeline_mode<synchronous>, transform_indices = @transform_6, window_bounds = array<i64: 1, 128>}, {pipeline_mode = #tpu.pipeline_mode<synchronous>, transform_indices = @transform_7, window_bounds = array<i64: 128, 64>}, {pipeline_mode = #tpu.pipeline_mode<synchronous>, transform_indices = @transform_8, window_bounds = array<i64: 1, 64>}, {pipeline_mode = #tpu.pipeline_mode<synchronous>, transform_indices = @transform_9, window_bounds = array<i64: 9, 64>}, {pipeline_mode = #tpu.pipeline_mode<synchronous>, transform_indices = @transform_10, window_bounds = array<i64: 1, 64>}, {pipeline_mode = #tpu.pipeline_mode<synchronous>, transform_indices = @transform_11, window_bounds = array<i64: 64, 128>}, {pipeline_mode = #tpu.pipeline_mode<synchronous>, transform_indices = @transform_12, window_bounds = array<i64: 1, 128>}, {pipeline_mode = #tpu.pipeline_mode<synchronous>, transform_indices = @transform_13, window_bounds = array<i64: 128, 64>}, {pipeline_mode = #tpu.pipeline_mode<synchronous>, transform_indices = @transform_14, window_bounds = array<i64: 1, 64>}, {transform_indices = @transform_15, window_bounds = array<i64: 1, 16, 64>}]} {
    %cst = arith.constant 0.000000e+00 : f32
    %0 = vector.broadcast %cst : f32 to vector<32x64xf32>
    %c0 = arith.constant 0 : index
    %c0_0 = arith.constant 0 : index
    %1 = vector.load %arg17[%c0, %c0_0] : memref<32x64xf32, #tpu.memory_space<vmem>>, vector<32x64xf32>
    tpu.vector_store %arg17[%c0, %c0_0], %0 {strides = array<i32>} : memref<32x64xf32, #tpu.memory_space<vmem>>, vector<32x64xf32>,
    %c0_1 = arith.constant 0 : index
    %c0_2 = arith.constant 0 : index
    %2 = vector.load %arg2[%c0_1, %c0_2] : memref<16x1xf32, #tpu.memory_space<vmem>>, vector<16x1xf32>
    %c0_3 = arith.constant 0 : index
    %c0_4 = arith.constant 0 : index
    %3 = vector.load %arg3[%c0_3, %c0_4] : memref<16x1xf32, #tpu.memory_space<vmem>>, vector<16x1xf32>
    %c0_5 = arith.constant 0 : index
    %c0_6 = arith.constant 0 : index
    %c0_7 = arith.constant 0 : index
    %4 = vector.load %arg1[%c0_5, %c0_6, %c0_7] : memref<1x16x64xf32, #tpu.memory_space<vmem>>, vector<1x16x64xf32>
    %5 = vector.shape_cast %4 : vector<1x16x64xf32> to vector<16x64xf32>
    %c8 = arith.constant 8 : index
    %c0_8 = arith.constant 0 : index
    %6 = vector.load %arg17[%c8, %c0_8] : memref<32x64xf32, #tpu.memory_space<vmem>>, vector<16x64xf32>
    tpu.vector_store %arg17[%c8, %c0_8], %5 {strides = array<i32>} : memref<32x64xf32, #tpu.memory_space<vmem>>, vector<16x64xf32>,
    %cst_9 = arith.constant 0.000000e+00 : f32
    %7 = vector.broadcast %cst_9 : f32 to vector<16x64xf32>
    %c3 = arith.constant 3 : index
    %c0_10 = arith.constant 0 : index
    %8 = vector.load %arg17[%c3, %c0_10] : memref<32x64xf32, #tpu.memory_space<vmem>>, vector<16x64xf32>
    %9 = vector.broadcast %2 : vector<16x1xf32> to vector<16x64xf32>
    %10 = arith.mulf %8, %9 : vector<16x64xf32>
    %c0_11 = arith.constant 0 : index
    %c0_12 = arith.constant 0 : index
    %11 = vector.load %arg4[%c0_11, %c0_12] : memref<9x64xf32, #tpu.memory_space<vmem>>, vector<1x64xf32>
    %12 = vector.broadcast %11 : vector<1x64xf32> to vector<16x64xf32>
    %13 = arith.mulf %10, %12 : vector<16x64xf32>
    %14 = arith.addf %7, %13 : vector<16x64xf32>
    %c4 = arith.constant 4 : index
    %c0_13 = arith.constant 0 : index
    %15 = vector.load %arg17[%c4, %c0_13] : memref<32x64xf32, #tpu.memory_space<vmem>>, vector<16x64xf32>
    %c1 = arith.constant 1 : index
    %c0_14 = arith.constant 0 : index
    %16 = vector.load %arg4[%c1, %c0_14] : memref<9x64xf32, #tpu.memory_space<vmem>>, vector<1x64xf32>
    %17 = vector.broadcast %16 : vector<1x64xf32> to vector<16x64xf32>
    %18 = arith.mulf %15, %17 : vector<16x64xf32>
    %19 = arith.addf %14, %18 : vector<16x64xf32>
    %c5 = arith.constant 5 : index
    %c0_15 = arith.constant 0 : index
    %20 = vector.load %arg17[%c5, %c0_15] : memref<32x64xf32, #tpu.memory_space<vmem>>, vector<16x64xf32>
    %21 = vector.broadcast %3 : vector<16x1xf32> to vector<16x64xf32>
    %22 = arith.mulf %20, %21 : vector<16x64xf32>
    %c2 = arith.constant 2 : index
    %c0_16 = arith.constant 0 : index
    %23 = vector.load %arg4[%c2, %c0_16] : memref<9x64xf32, #tpu.memory_space<vmem>>, vector<1x64xf32>
    %24 = vector.broadcast %23 : vector<1x64xf32> to vector<16x64xf32>
    %25 = arith.mulf %22, %24 : vector<16x64xf32>
    %26 = arith.addf %19, %25 : vector<16x64xf32>
    %c7 = arith.constant 7 : index
    %c0_17 = arith.constant 0 : index
    %27 = vector.load %arg17[%c7, %c0_17] : memref<32x64xf32, #tpu.memory_space<vmem>>, vector<16x64xf32>
    %28 = vector.broadcast %2 : vector<16x1xf32> to vector<16x64xf32>
    %29 = arith.mulf %27, %28 : vector<16x64xf32>
    %c3_18 = arith.constant 3 : index
    %c0_19 = arith.constant 0 : index
    %30 = vector.load %arg4[%c3_18, %c0_19] : memref<9x64xf32, #tpu.memory_space<vmem>>, vector<1x64xf32>
    %31 = vector.broadcast %30 : vector<1x64xf32> to vector<16x64xf32>
    %32 = arith.mulf %29, %31 : vector<16x64xf32>
    %33 = arith.addf %26, %32 : vector<16x64xf32>
    %c8_20 = arith.constant 8 : index
    %c0_21 = arith.constant 0 : index
    %34 = vector.load %arg17[%c8_20, %c0_21] : memref<32x64xf32, #tpu.memory_space<vmem>>, vector<16x64xf32>
    %c4_22 = arith.constant 4 : index
    %c0_23 = arith.constant 0 : index
    %35 = vector.load %arg4[%c4_22, %c0_23] : memref<9x64xf32, #tpu.memory_space<vmem>>, vector<1x64xf32>
    %36 = vector.broadcast %35 : vector<1x64xf32> to vector<16x64xf32>
    %37 = arith.mulf %34, %36 : vector<16x64xf32>
    %38 = arith.addf %33, %37 : vector<16x64xf32>
    %c9 = arith.constant 9 : index
    %c0_24 = arith.constant 0 : index
    %39 = vector.load %arg17[%c9, %c0_24] : memref<32x64xf32, #tpu.memory_space<vmem>>, vector<16x64xf32>
    %40 = vector.broadcast %3 : vector<16x1xf32> to vector<16x64xf32>
    %41 = arith.mulf %39, %40 : vector<16x64xf32>
    %c5_25 = arith.constant 5 : index
    %c0_26 = arith.constant 0 : index
    %42 = vector.load %arg4[%c5_25, %c0_26] : memref<9x64xf32, #tpu.memory_space<vmem>>, vector<1x64xf32>
    %43 = vector.broadcast %42 : vector<1x64xf32> to vector<16x64xf32>
    %44 = arith.mulf %41, %43 : vector<16x64xf32>
    %45 = arith.addf %38, %44 : vector<16x64xf32>
    %c11 = arith.constant 11 : index
    %c0_27 = arith.constant 0 : index
    %46 = vector.load %arg17[%c11, %c0_27] : memref<32x64xf32, #tpu.memory_space<vmem>>, vector<16x64xf32>
    %47 = vector.broadcast %2 : vector<16x1xf32> to vector<16x64xf32>
    %48 = arith.mulf %46, %47 : vector<16x64xf32>
    %c6 = arith.constant 6 : index
    %c0_28 = arith.constant 0 : index
    %49 = vector.load %arg4[%c6, %c0_28] : memref<9x64xf32, #tpu.memory_space<vmem>>, vector<1x64xf32>
    %50 = vector.broadcast %49 : vector<1x64xf32> to vector<16x64xf32>
    %51 = arith.mulf %48, %50 : vector<16x64xf32>
    %52 = arith.addf %45, %51 : vector<16x64xf32>
    %c12 = arith.constant 12 : index
    %c0_29 = arith.constant 0 : index
    %53 = vector.load %arg17[%c12, %c0_29] : memref<32x64xf32, #tpu.memory_space<vmem>>, vector<16x64xf32>
    %c7_30 = arith.constant 7 : index
    %c0_31 = arith.constant 0 : index
    %54 = vector.load %arg4[%c7_30, %c0_31] : memref<9x64xf32, #tpu.memory_space<vmem>>, vector<1x64xf32>
    %55 = vector.broadcast %54 : vector<1x64xf32> to vector<16x64xf32>
    %56 = arith.mulf %53, %55 : vector<16x64xf32>
    %57 = arith.addf %52, %56 : vector<16x64xf32>
    %c13 = arith.constant 13 : index
    %c0_32 = arith.constant 0 : index
    %58 = vector.load %arg17[%c13, %c0_32] : memref<32x64xf32, #tpu.memory_space<vmem>>, vector<16x64xf32>
    %59 = vector.broadcast %3 : vector<16x1xf32> to vector<16x64xf32>
    %60 = arith.mulf %58, %59 : vector<16x64xf32>
    %c8_33 = arith.constant 8 : index
    %c0_34 = arith.constant 0 : index
    %61 = vector.load %arg4[%c8_33, %c0_34] : memref<9x64xf32, #tpu.memory_space<vmem>>, vector<1x64xf32>
    %62 = vector.broadcast %61 : vector<1x64xf32> to vector<16x64xf32>
    %63 = arith.mulf %60, %62 : vector<16x64xf32>
    %64 = arith.addf %57, %63 : vector<16x64xf32>
    %c0_35 = arith.constant 0 : index
    %c0_36 = arith.constant 0 : index
    %65 = vector.load %arg5[%c0_35, %c0_36] : memref<1x64xf32, #tpu.memory_space<vmem>>, vector<1x64xf32>
    %66 = vector.broadcast %65 : vector<1x64xf32> to vector<16x64xf32>
    %67 = arith.addf %64, %66 : vector<16x64xf32>
    %c0_37 = arith.constant 0 : index
    %c0_38 = arith.constant 0 : index
    %68 = vector.load %arg6[%c0_37, %c0_38] : memref<64x128xf32, #tpu.memory_space<vmem>>, vector<64x128xf32>
    %69 = arith.truncf %67 : vector<16x64xf32> to vector<16x64xbf16>
    %70 = arith.truncf %68 : vector<64x128xf32> to vector<64x128xbf16>
    %cst_39 = arith.constant dense<0.000000e+00> : vector<16x128xf32>
    %71 = tpu.matmul %69, %70, %cst_39 {dimension_numbers = #tpu.dot_dimension_numbers<[1], [0], [0], [1], [0, 0, 1, 1], [], []>} : vector<16x64xbf16>, vector<64x128xbf16>, vector<16x128xf32> -> vector<16x128xf32>
    %c0_40 = arith.constant 0 : index
    %c0_41 = arith.constant 0 : index
    %72 = vector.load %arg7[%c0_40, %c0_41] : memref<1x128xf32, #tpu.memory_space<vmem>>, vector<1x128xf32>
    %73 = vector.broadcast %72 : vector<1x128xf32> to vector<16x128xf32>
    %74 = arith.addf %71, %73 : vector<16x128xf32>
    %cst_42 = arith.constant 5.000000e-01 : f32
    %75 = vector.broadcast %cst_42 : f32 to vector<16x128xf32>
    %76 = arith.mulf %75, %74 : vector<16x128xf32>
    %cst_43 = arith.constant 4.471500e-02 : f32
    %77 = vector.broadcast %cst_43 : f32 to vector<16x128xf32>
    %78 = arith.mulf %77, %74 : vector<16x128xf32>
    %79 = arith.mulf %78, %74 : vector<16x128xf32>
    %80 = arith.mulf %79, %74 : vector<16x128xf32>
    %81 = arith.addf %74, %80 : vector<16x128xf32>
    %cst_44 = arith.constant 0.797884583 : f32
    %82 = vector.broadcast %cst_44 : f32 to vector<16x128xf32>
    %83 = arith.mulf %82, %81 : vector<16x128xf32>
    %84 = math.tanh %83 : vector<16x128xf32>
    %cst_45 = arith.constant 1.000000e+00 : f32
    %85 = vector.broadcast %cst_45 : f32 to vector<16x128xf32>
    %86 = arith.addf %85, %84 : vector<16x128xf32>
    %87 = arith.mulf %76, %86 : vector<16x128xf32>
    %c0_46 = arith.constant 0 : index
    %c0_47 = arith.constant 0 : index
    %88 = vector.load %arg8[%c0_46, %c0_47] : memref<128x64xf32, #tpu.memory_space<vmem>>, vector<128x64xf32>
    %89 = arith.truncf %87 : vector<16x128xf32> to vector<16x128xbf16>
    %90 = arith.truncf %88 : vector<128x64xf32> to vector<128x64xbf16>
    %cst_48 = arith.constant dense<0.000000e+00> : vector<16x64xf32>
    %91 = tpu.matmul %89, %90, %cst_48 {dimension_numbers = #tpu.dot_dimension_numbers<[1], [0], [0], [1], [0, 0, 1, 1], [], []>} : vector<16x128xbf16>, vector<128x64xbf16>, vector<16x64xf32> -> vector<16x64xf32>
    %c0_49 = arith.constant 0 : index
    %c0_50 = arith.constant 0 : index
    %92 = vector.load %arg9[%c0_49, %c0_50] : memref<1x64xf32, #tpu.memory_space<vmem>>, vector<1x64xf32>
    %93 = vector.broadcast %92 : vector<1x64xf32> to vector<16x64xf32>
    %94 = arith.addf %91, %93 : vector<16x64xf32>
    %95 = arith.addf %5, %94 : vector<16x64xf32>
    %c8_51 = arith.constant 8 : index
    %c0_52 = arith.constant 0 : index
    %96 = vector.load %arg17[%c8_51, %c0_52] : memref<32x64xf32, #tpu.memory_space<vmem>>, vector<16x64xf32>
    tpu.vector_store %arg17[%c8_51, %c0_52], %95 {strides = array<i32>} : memref<32x64xf32, #tpu.memory_space<vmem>>, vector<16x64xf32>,
    %cst_53 = arith.constant 0.000000e+00 : f32
    %97 = vector.broadcast %cst_53 : f32 to vector<16x64xf32>
    %c3_54 = arith.constant 3 : index
    %c0_55 = arith.constant 0 : index
    %98 = vector.load %arg17[%c3_54, %c0_55] : memref<32x64xf32, #tpu.memory_space<vmem>>, vector<16x64xf32>
    %99 = vector.broadcast %2 : vector<16x1xf32> to vector<16x64xf32>
    %100 = arith.mulf %98, %99 : vector<16x64xf32>
    %c0_56 = arith.constant 0 : index
    %c0_57 = arith.constant 0 : index
    %101 = vector.load %arg10[%c0_56, %c0_57] : memref<9x64xf32, #tpu.memory_space<vmem>>, vector<1x64xf32>
    %102 = vector.broadcast %101 : vector<1x64xf32> to vector<16x64xf32>
    %103 = arith.mulf %100, %102 : vector<16x64xf32>
    %104 = arith.addf %97, %103 : vector<16x64xf32>
    %c4_58 = arith.constant 4 : index
    %c0_59 = arith.constant 0 : index
    %105 = vector.load %arg17[%c4_58, %c0_59] : memref<32x64xf32, #tpu.memory_space<vmem>>, vector<16x64xf32>
    %c1_60 = arith.constant 1 : index
    %c0_61 = arith.constant 0 : index
    %106 = vector.load %arg10[%c1_60, %c0_61] : memref<9x64xf32, #tpu.memory_space<vmem>>, vector<1x64xf32>
    %107 = vector.broadcast %106 : vector<1x64xf32> to vector<16x64xf32>
    %108 = arith.mulf %105, %107 : vector<16x64xf32>
    %109 = arith.addf %104, %108 : vector<16x64xf32>
    %c5_62 = arith.constant 5 : index
    %c0_63 = arith.constant 0 : index
    %110 = vector.load %arg17[%c5_62, %c0_63] : memref<32x64xf32, #tpu.memory_space<vmem>>, vector<16x64xf32>
    %111 = vector.broadcast %3 : vector<16x1xf32> to vector<16x64xf32>
    %112 = arith.mulf %110, %111 : vector<16x64xf32>
    %c2_64 = arith.constant 2 : index
    %c0_65 = arith.constant 0 : index
    %113 = vector.load %arg10[%c2_64, %c0_65] : memref<9x64xf32, #tpu.memory_space<vmem>>, vector<1x64xf32>
    %114 = vector.broadcast %113 : vector<1x64xf32> to vector<16x64xf32>
    %115 = arith.mulf %112, %114 : vector<16x64xf32>
    %116 = arith.addf %109, %115 : vector<16x64xf32>
    %c7_66 = arith.constant 7 : index
    %c0_67 = arith.constant 0 : index
    %117 = vector.load %arg17[%c7_66, %c0_67] : memref<32x64xf32, #tpu.memory_space<vmem>>, vector<16x64xf32>
    %118 = vector.broadcast %2 : vector<16x1xf32> to vector<16x64xf32>
    %119 = arith.mulf %117, %118 : vector<16x64xf32>
    %c3_68 = arith.constant 3 : index
    %c0_69 = arith.constant 0 : index
    %120 = vector.load %arg10[%c3_68, %c0_69] : memref<9x64xf32, #tpu.memory_space<vmem>>, vector<1x64xf32>
    %121 = vector.broadcast %120 : vector<1x64xf32> to vector<16x64xf32>
    %122 = arith.mulf %119, %121 : vector<16x64xf32>
    %123 = arith.addf %116, %122 : vector<16x64xf32>
    %c8_70 = arith.constant 8 : index
    %c0_71 = arith.constant 0 : index
    %124 = vector.load %arg17[%c8_70, %c0_71] : memref<32x64xf32, #tpu.memory_space<vmem>>, vector<16x64xf32>
    %c4_72 = arith.constant 4 : index
    %c0_73 = arith.constant 0 : index
    %125 = vector.load %arg10[%c4_72, %c0_73] : memref<9x64xf32, #tpu.memory_space<vmem>>, vector<1x64xf32>
    %126 = vector.broadcast %125 : vector<1x64xf32> to vector<16x64xf32>
    %127 = arith.mulf %124, %126 : vector<16x64xf32>
    %128 = arith.addf %123, %127 : vector<16x64xf32>
    %c9_74 = arith.constant 9 : index
    %c0_75 = arith.constant 0 : index
    %129 = vector.load %arg17[%c9_74, %c0_75] : memref<32x64xf32, #tpu.memory_space<vmem>>, vector<16x64xf32>
    %130 = vector.broadcast %3 : vector<16x1xf32> to vector<16x64xf32>
    %131 = arith.mulf %129, %130 : vector<16x64xf32>
    %c5_76 = arith.constant 5 : index
    %c0_77 = arith.constant 0 : index
    %132 = vector.load %arg10[%c5_76, %c0_77] : memref<9x64xf32, #tpu.memory_space<vmem>>, vector<1x64xf32>
    %133 = vector.broadcast %132 : vector<1x64xf32> to vector<16x64xf32>
    %134 = arith.mulf %131, %133 : vector<16x64xf32>
    %135 = arith.addf %128, %134 : vector<16x64xf32>
    %c11_78 = arith.constant 11 : index
    %c0_79 = arith.constant 0 : index
    %136 = vector.load %arg17[%c11_78, %c0_79] : memref<32x64xf32, #tpu.memory_space<vmem>>, vector<16x64xf32>
    %137 = vector.broadcast %2 : vector<16x1xf32> to vector<16x64xf32>
    %138 = arith.mulf %136, %137 : vector<16x64xf32>
    %c6_80 = arith.constant 6 : index
    %c0_81 = arith.constant 0 : index
    %139 = vector.load %arg10[%c6_80, %c0_81] : memref<9x64xf32, #tpu.memory_space<vmem>>, vector<1x64xf32>
    %140 = vector.broadcast %139 : vector<1x64xf32> to vector<16x64xf32>
    %141 = arith.mulf %138, %140 : vector<16x64xf32>
    %142 = arith.addf %135, %141 : vector<16x64xf32>
    %c12_82 = arith.constant 12 : index
    %c0_83 = arith.constant 0 : index
    %143 = vector.load %arg17[%c12_82, %c0_83] : memref<32x64xf32, #tpu.memory_space<vmem>>, vector<16x64xf32>
    %c7_84 = arith.constant 7 : index
    %c0_85 = arith.constant 0 : index
    %144 = vector.load %arg10[%c7_84, %c0_85] : memref<9x64xf32, #tpu.memory_space<vmem>>, vector<1x64xf32>
    %145 = vector.broadcast %144 : vector<1x64xf32> to vector<16x64xf32>
    %146 = arith.mulf %143, %145 : vector<16x64xf32>
    %147 = arith.addf %142, %146 : vector<16x64xf32>
    %c13_86 = arith.constant 13 : index
    %c0_87 = arith.constant 0 : index
    %148 = vector.load %arg17[%c13_86, %c0_87] : memref<32x64xf32, #tpu.memory_space<vmem>>, vector<16x64xf32>
    %149 = vector.broadcast %3 : vector<16x1xf32> to vector<16x64xf32>
    %150 = arith.mulf %148, %149 : vector<16x64xf32>
    %c8_88 = arith.constant 8 : index
    %c0_89 = arith.constant 0 : index
    %151 = vector.load %arg10[%c8_88, %c0_89] : memref<9x64xf32, #tpu.memory_space<vmem>>, vector<1x64xf32>
    %152 = vector.broadcast %151 : vector<1x64xf32> to vector<16x64xf32>
    %153 = arith.mulf %150, %152 : vector<16x64xf32>
    %154 = arith.addf %147, %153 : vector<16x64xf32>
    %c0_90 = arith.constant 0 : index
    %c0_91 = arith.constant 0 : index
    %155 = vector.load %arg11[%c0_90, %c0_91] : memref<1x64xf32, #tpu.memory_space<vmem>>, vector<1x64xf32>
    %156 = vector.broadcast %155 : vector<1x64xf32> to vector<16x64xf32>
    %157 = arith.addf %154, %156 : vector<16x64xf32>
    %c0_92 = arith.constant 0 : index
    %c0_93 = arith.constant 0 : index
    %158 = vector.load %arg12[%c0_92, %c0_93] : memref<64x128xf32, #tpu.memory_space<vmem>>, vector<64x128xf32>
    %159 = arith.truncf %157 : vector<16x64xf32> to vector<16x64xbf16>
    %160 = arith.truncf %158 : vector<64x128xf32> to vector<64x128xbf16>
    %cst_94 = arith.constant dense<0.000000e+00> : vector<16x128xf32>
    %161 = tpu.matmul %159, %160, %cst_94 {dimension_numbers = #tpu.dot_dimension_numbers<[1], [0], [0], [1], [0, 0, 1, 1], [], []>} : vector<16x64xbf16>, vector<64x128xbf16>, vector<16x128xf32> -> vector<16x128xf32>
    %c0_95 = arith.constant 0 : index
    %c0_96 = arith.constant 0 : index
    %162 = vector.load %arg13[%c0_95, %c0_96] : memref<1x128xf32, #tpu.memory_space<vmem>>, vector<1x128xf32>
    %163 = vector.broadcast %162 : vector<1x128xf32> to vector<16x128xf32>
    %164 = arith.addf %161, %163 : vector<16x128xf32>
    %cst_97 = arith.constant 5.000000e-01 : f32
    %165 = vector.broadcast %cst_97 : f32 to vector<16x128xf32>
    %166 = arith.mulf %165, %164 : vector<16x128xf32>
    %cst_98 = arith.constant 4.471500e-02 : f32
    %167 = vector.broadcast %cst_98 : f32 to vector<16x128xf32>
    %168 = arith.mulf %167, %164 : vector<16x128xf32>
    %169 = arith.mulf %168, %164 : vector<16x128xf32>
    %170 = arith.mulf %169, %164 : vector<16x128xf32>
    %171 = arith.addf %164, %170 : vector<16x128xf32>
    %cst_99 = arith.constant 0.797884583 : f32
    %172 = vector.broadcast %cst_99 : f32 to vector<16x128xf32>
    %173 = arith.mulf %172, %171 : vector<16x128xf32>
    %174 = math.tanh %173 : vector<16x128xf32>
    %cst_100 = arith.constant 1.000000e+00 : f32
    %175 = vector.broadcast %cst_100 : f32 to vector<16x128xf32>
    %176 = arith.addf %175, %174 : vector<16x128xf32>
    %177 = arith.mulf %166, %176 : vector<16x128xf32>
    %c0_101 = arith.constant 0 : index
    %c0_102 = arith.constant 0 : index
    %178 = vector.load %arg14[%c0_101, %c0_102] : memref<128x64xf32, #tpu.memory_space<vmem>>, vector<128x64xf32>
    %179 = arith.truncf %177 : vector<16x128xf32> to vector<16x128xbf16>
    %180 = arith.truncf %178 : vector<128x64xf32> to vector<128x64xbf16>
    %cst_103 = arith.constant dense<0.000000e+00> : vector<16x64xf32>
    %181 = tpu.matmul %179, %180, %cst_103 {dimension_numbers = #tpu.dot_dimension_numbers<[1], [0], [0], [1], [0, 0, 1, 1], [], []>} : vector<16x128xbf16>, vector<128x64xbf16>, vector<16x64xf32> -> vector<16x64xf32>
    %c0_104 = arith.constant 0 : index
    %c0_105 = arith.constant 0 : index
    %182 = vector.load %arg15[%c0_104, %c0_105] : memref<1x64xf32, #tpu.memory_space<vmem>>, vector<1x64xf32>
    %183 = vector.broadcast %182 : vector<1x64xf32> to vector<16x64xf32>
    %184 = arith.addf %181, %183 : vector<16x64xf32>
    %185 = arith.addf %95, %184 : vector<16x64xf32>
    %c0_106 = arith.constant 0 : index
    %c0_107 = arith.constant 0 : index
    %c0_108 = arith.constant 0 : index
    %186 = vector.load %arg16[%c0_106, %c0_107, %c0_108] : memref<1x16x64xf32, #tpu.memory_space<vmem>>, vector<1x16x64xf32>
    %187 = vector.shape_cast %186 : vector<1x16x64xf32> to vector<16x64xf32>
    %188 = vector.shape_cast %185 : vector<16x64xf32> to vector<1x16x64xf32>
    tpu.vector_store %arg16[%c0_106, %c0_107, %c0_108], %188 {strides = array<i32>} : memref<1x16x64xf32, #tpu.memory_space<vmem>>, vector<1x16x64xf32>,
    return
  }
  func.func @transform_0(%arg0: i32) -> (i32, i32, i32) {
    %c0_i32 = arith.constant 0 : i32
    %c0_i32_0 = arith.constant 0 : i32
    %c0_i32_1 = arith.constant 0 : i32
    return %arg0, %c0_i32, %c0_i32_0 : i32, i32, i32
  }
  func.func @transform_1(%arg0: i32) -> (i32, i32) {
    %c0_i32 = arith.constant 0 : i32
    %c0_i32_0 = arith.constant 0 : i32
    %c0_i32_1 = arith.constant 0 : i32
    return %c0_i32, %c0_i32_0 : i32, i32
  }
  func.func @transform_2(%arg0: i32) -> (i32, i32) {
    %c0_i32 = arith.constant 0 : i32
    %c0_i32_0 = arith.constant 0 : i32
    %c0_i32_1 = arith.constant 0 : i32
    return %c0_i32, %c0_i32_0 : i32, i32
  }
  func.func @transform_3(%arg0: i32) -> (i32, i32) {
    %c0_i32 = arith.constant 0 : i32
    %c0_i32_0 = arith.constant 0 : i32
    %c0_i32_1 = arith.constant 0 : i32
    return %c0_i32, %c0_i32_0 : i32, i32
  }
  func.func @transform_4(%arg0: i32) -> (i32, i32) {
    %c0_i32 = arith.constant 0 : i32
    %c0_i32_0 = arith.constant 0 : i32
    %c0_i32_1 = arith.constant 0 : i32
    return %c0_i32, %c0_i32_0 : i32, i32
  }
  func.func @transform_5(%arg0: i32) -> (i32, i32) {
    %c0_i32 = arith.constant 0 : i32
    %c0_i32_0 = arith.constant 0 : i32
    %c0_i32_1 = arith.constant 0 : i32
    return %c0_i32, %c0_i32_0 : i32, i32
  }
  func.func @transform_6(%arg0: i32) -> (i32, i32) {
    %c0_i32 = arith.constant 0 : i32
    %c0_i32_0 = arith.constant 0 : i32
    %c0_i32_1 = arith.constant 0 : i32
    return %c0_i32, %c0_i32_0 : i32, i32
  }
  func.func @transform_7(%arg0: i32) -> (i32, i32) {
    %c0_i32 = arith.constant 0 : i32
    %c0_i32_0 = arith.constant 0 : i32
    %c0_i32_1 = arith.constant 0 : i32
    return %c0_i32, %c0_i32_0 : i32, i32
  }
  func.func @transform_8(%arg0: i32) -> (i32, i32) {
    %c0_i32 = arith.constant 0 : i32
    %c0_i32_0 = arith.constant 0 : i32
    %c0_i32_1 = arith.constant 0 : i32
    return %c0_i32, %c0_i32_0 : i32, i32
  }
  func.func @transform_9(%arg0: i32) -> (i32, i32) {
    %c0_i32 = arith.constant 0 : i32
    %c0_i32_0 = arith.constant 0 : i32
    %c0_i32_1 = arith.constant 0 : i32
    return %c0_i32, %c0_i32_0 : i32, i32
  }
  func.func @transform_10(%arg0: i32) -> (i32, i32) {
    %c0_i32 = arith.constant 0 : i32
    %c0_i32_0 = arith.constant 0 : i32
    %c0_i32_1 = arith.constant 0 : i32
    return %c0_i32, %c0_i32_0 : i32, i32
  }
  func.func @transform_11(%arg0: i32) -> (i32, i32) {
    %c0_i32 = arith.constant 0 : i32
    %c0_i32_0 = arith.constant 0 : i32
    %c0_i32_1 = arith.constant 0 : i32
    return %c0_i32, %c0_i32_0 : i32, i32
  }
  func.func @transform_12(%arg0: i32) -> (i32, i32) {
    %c0_i32 = arith.constant 0 : i32
    %c0_i32_0 = arith.constant 0 : i32
    %c0_i32_1 = arith.constant 0 : i32
    return %c0_i32, %c0_i32_0 : i32, i32
  }
  func.func @transform_13(%arg0: i32) -> (i32, i32) {
    %c0_i32 = arith.constant 0 : i32
    %c0_i32_0 = arith.constant 0 : i32
    %c0_i32_1 = arith.constant 0 : i32
    return %c0_i32, %c0_i32_0 : i32, i32
  }
  func.func @transform_14(%arg0: i32) -> (i32, i32) {
    %c0_i32 = arith.constant 0 : i32
    %c0_i32_0 = arith.constant 0 : i32
    %c0_i32_1 = arith.constant 0 : i32
    return %c0_i32, %c0_i32_0 : i32, i32
  }
  func.func @transform_15(%arg0: i32) -> (i32, i32, i32) {
    %c0_i32 = arith.constant 0 : i32
    %c0_i32_0 = arith.constant 0 : i32
    %c0_i32_1 = arith.constant 0 : i32
    return %arg0, %c0_i32, %c0_i32_0 : i32, i32, i32
  }
}

module attributes {stable_mosaic.version = 11 : i64} {
  func.func @_pool_head_kernel(%arg0: memref<2x16x64xf32, #tpu.memory_space<vmem>>, %arg1: memref<64x10xf32, #tpu.memory_space<vmem>>, %arg2: memref<1x10xf32, #tpu.memory_space<vmem>>, %arg3: memref<2x10xf32, #tpu.memory_space<vmem>>) attributes {dimension_semantics = [], scalar_prefetch = 0 : i64, scratch_operands = 0 : i64, tpu.core_type = #tpu.core_type<tc>} {
    %c0 = arith.constant 0 : index
    %c0_0 = arith.constant 0 : index
    %c0_1 = arith.constant 0 : index
    %0 = vector.load %arg0[%c0, %c0_0, %c0_1] : memref<2x16x64xf32, #tpu.memory_space<vmem>>, vector<2x16x64xf32>
    %cst = arith.constant dense<0.000000e+00> : vector<2x64xf32>
    %1 = vector.multi_reduction <add>, %0, %cst [1] : vector<2x16x64xf32> to vector<2x64xf32>
    %cst_2 = arith.constant 1.600000e+01 : f32
    %2 = vector.broadcast %cst_2 : f32 to vector<2x64xf32>
    %3 = arith.divf %1, %2 : vector<2x64xf32>
    %c0_3 = arith.constant 0 : index
    %c0_4 = arith.constant 0 : index
    %4 = vector.load %arg1[%c0_3, %c0_4] : memref<64x10xf32, #tpu.memory_space<vmem>>, vector<64x10xf32>
    %5 = arith.truncf %3 : vector<2x64xf32> to vector<2x64xbf16>
    %6 = arith.truncf %4 : vector<64x10xf32> to vector<64x10xbf16>
    %cst_5 = arith.constant dense<0.000000e+00> : vector<2x10xf32>
    %7 = tpu.matmul %5, %6, %cst_5 {dimension_numbers = #tpu.dot_dimension_numbers<[1], [0], [0], [1], [0, 0, 1, 1], [], []>} : vector<2x64xbf16>, vector<64x10xbf16>, vector<2x10xf32> -> vector<2x10xf32>
    %c0_6 = arith.constant 0 : index
    %c0_7 = arith.constant 0 : index
    %8 = vector.load %arg2[%c0_6, %c0_7] : memref<1x10xf32, #tpu.memory_space<vmem>>, vector<1x10xf32>
    %9 = vector.broadcast %8 : vector<1x10xf32> to vector<2x10xf32>
    %10 = arith.addf %7, %9 : vector<2x10xf32>
    %c0_8 = arith.constant 0 : index
    %c0_9 = arith.constant 0 : index
    %11 = vector.load %arg3[%c0_8, %c0_9] : memref<2x10xf32, #tpu.memory_space<vmem>>, vector<2x10xf32>
    tpu.vector_store %arg3[%c0_8, %c0_9], %10 {strides = array<i32>} : memref<2x10xf32, #tpu.memory_space<vmem>>, vector<2x10xf32>,
    return
  }
}

</mosaic_0001>

<bundles_post_ra>
// kernel: henet_forward.6
= control target key start
LH: loop header
LB: loop body
LE: loop exit
PB: predicated region body
PF: predicated region fallthrough
CT: control target
= control target key end

     0   :  { %s698_s12 = smov 0   ;;  %s887_s0 = inlined_call_operand.vmem [shape: f32[512,27], index: 0, kind: input, shape index: {}]   ;;  %s888_s1 = inlined_call_operand.vmem [shape: f32[27,16], index: 1, kind: input, shape index: {}]   ;;  %s889_s2 = inlined_call_operand.vmem [shape: f32[1,16], index: 2, kind: input, shape index: {}]   ;;  %s890_s3 = inlined_call_operand.vmem [shape: f32[512,16], index: 3, kind: output, shape index: {}]  }
   0x1 LB: > { %s574_s13 = sadd.s32 4294967295, %s675_s12   ;;  %p578_p0 = scmp.ge.s32.totalorder %s675_s12, 1  ;;  %s675_s12 = sphi %s698_s12, %s13_s12  }
   0x2   : > { %p138_p1 = scmp.lt.s32.totalorder %s675_s12, 3 }
   0x4   : > { %p139_p2 = pnand %p578_p0, %p138_p1 }
   0x5   : > { %v207_v0 = vld [vmem:[%s888_s1] sm:$0xff] (!%p139_p2)  ;;  %v208_v1 = vld [vmem:[%s888_s1 + $0x8] sm:$0xff] (!%p139_p2)  ;;  %v209_v2 = vld [vmem:[%s888_s1 + $0x10] sm:$0xff] (!%p139_p2)  ;;  %vm285_vm0 = vcmask (!%p139_p2), 1044480   ;;  %vm286_vm1 = vcmask (!%p139_p2), 1045504   ;;  %v677_v5 = vmov (!%p139_p2), 65535  }
   0x6   : > { %142 = sbr.rel (%p139_p2) target bundleno = 265 (0x109), region = 32  ;;  %v227_v3 = vpack.c.bf16 (!%p139_p2), %v208_v1, %v207_v0  ;;  %v210_v4 = vld [vmem:[%s888_s1 + $0x18] sm:$0x7] (!%p139_p2)  ;;  %v287_v6 = vsel (!%p139_p2), %vm285_vm0, 4294967295, %v677_v5  ;;  %s579_s22 = sshll.u32 (!%p139_p2), %s574_s13, 5  ;;  %vm236_vm2 = vcmask (!%p139_p2), 220160  }
   0x7   : > { %v228_v7 = vpack.c.bf16 (!%p139_p2), %v210_v4, %v209_v2  ;;  %v288_v8 = vsel (!%p139_p2), %vm286_vm1, %v287_v6, 0  ;;  %p163_p3 = scmp.lt.s32.totalorder (!%p139_p2), %s579_s22, 63  ;;  %v779_v58 = vld [vmem:[%s889_s2] ss:$0 sm:$0xff] (!%p139_p2)  ;;  %vm485_vm3 = vcmask (!%p139_p2), 130048  }
   0x8   : > { %620 = vmatprep.subr.bf16.mxu0 (!%p139_p2), %v227_v3  ;;  %656 = vmatprep.subr.bf16.mxu1 (!%p139_p2), %v227_v3 }
   0x9   : > { %621 = vmatpush3.bf16.msra.mxu0 (!%p139_p2), %v227_v3  ;;  %658 = vmatpush3.bf16.msra.mxu1 (!%p139_p2), %v227_v3  ;;  %v290_v9 = vand.u32 (!%p139_p2), %v288_v8, %v228_v7 }
   0xb   : > { %622 = vmatprep.subr.bf16.mxu0 (!%p139_p2), %v290_v9  ;;  %657 = vmatprep.subr.bf16.mxu1 (!%p139_p2), %v290_v9 }
   0xd   : > { %s892_s22 = smov (!%p163_p3, %s579_s22), 63  ;;  %623 = vmatpush3.bf16.msra.mxu0 %v290_v9  ;;  %659 = vmatpush3.bf16.msra.mxu1 %v290_v9 }
   0xe   : > { %s580_s23 = sshll.u32 %s892_s22, 3 }
   0xf   : > { %s726_s26 = scalar_lea.vmem %s887_s0, %s580_s23  ;;  %s787_s4 = scalar_lea.vmem %s890_s3, %s580_s23 }
  0x10   : > { %v175_v10 = vld [vmem:[%s726_s26] sm:$0xff]  ;;  %v176_v11 = vld [vmem:[%s726_s26 + $0x8] sm:$0xff]  ;;  %v177_v15 = vld [vmem:[%s726_s26 + $0x10] sm:$0xff] }
  0x11   : > { %v191_v12 = vld [vmem:[%s726_s26 + $0x80] sm:$0xff]  ;;  %v211_v13 = vpack.c.bf16 %v176_v11, %v175_v10  ;;  %v192_v14 = vld [vmem:[%s726_s26 + $0x88] sm:$0xff]  ;;  %v178_v16 = vld [vmem:[%s726_s26 + $0x18] sm:$0xff] }
  0x12   : > { %v219_v17 = vpack.c.bf16 %v192_v14, %v191_v12  ;;  %v212_v18 = vpack.c.bf16 %v178_v16, %v177_v15  ;;  %v193_v19 = vld [vmem:[%s726_s26 + $0x90] sm:$0xff]  ;;  %v194_v20 = vld [vmem:[%s726_s26 + $0x98] sm:$0xff]  ;;  %v179_v21 = vld [vmem:[%s726_s26 + $0x20] sm:$0xff] }
  0x13   : > { %624 = vmatprep.mubr.msk.bf16.mxu0 %vm236_vm2, %v211_v13  ;;  %v220_v22 = vpack.c.bf16 %v194_v20, %v193_v19  ;;  %v180_v23 = vld [vmem:[%s726_s26 + $0x28] sm:$0xff]  ;;  %v195_v24 = vld [vmem:[%s726_s26 + $0xa0] sm:$0xff]  ;;  %v181_v28 = vld [vmem:[%s726_s26 + $0x30] sm:$0xff] }
  0x14   : > { %v196_v25 = vld [vmem:[%s726_s26 + $0xa8] sm:$0xff]  ;;  %640 = vmatprep.mubr.msk.bf16.mxu1 %vm236_vm2, %v219_v17  ;;  %625 = vmatmul.mubr.msk.bf16.vlgmr.msra.gmra.mrb[0].mxu0 %vm236_vm2, %v212_v18  ;;  %v213_v26 = vpack.c.bf16 %v180_v23, %v179_v21  ;;  %v182_v29 = vld [vmem:[%s726_s26 + $0x38] sm:$0xff]  ;;  %v197_v30 = vld [vmem:[%s726_s26 + $0xb0] sm:$0xff] }
  0x15   : > { %v221_v27 = vpack.c.bf16 %v196_v25, %v195_v24  ;;  %641 = vmatmul.mubr.msk.bf16.vlgmr.msra.gmra.mrb[0].mxu1 %vm236_vm2, %v220_v22  ;;  %v198_v31 = vld [vmem:[%s726_s26 + $0xb8] sm:$0xff]  ;;  %v183_v32 = vld [vmem:[%s726_s26 + $0x40] sm:$0xff]  ;;  %v184_v33 = vld [vmem:[%s726_s26 + $0x48] sm:$0xff]  ;;  %v214_v36 = vpack.c.bf16 %v182_v29, %v181_v28 }
  0x16   : > { %628 = vmatprep.mubr.msk.bf16.mxu0 %vm236_vm2, %v213_v26  ;;  %v199_v34 = vld [vmem:[%s726_s26 + $0xc0] sm:$0xff]  ;;  %v200_v35 = vld [vmem:[%s726_s26 + $0xc8] sm:$0xff]  ;;  %v222_v37 = vpack.c.bf16 %v198_v31, %v197_v30  ;;  %v215_v38 = vpack.c.bf16 %v184_v33, %v183_v32  ;;  %v185_v40 = vld [vmem:[%s726_s26 + $0x50] sm:$0xff] }
  0x17   : > { %644 = vmatprep.mubr.msk.bf16.mxu1 %vm236_vm2, %v221_v27  ;;  %v223_v39 = vpack.c.bf16 %v200_v35, %v199_v34  ;;  %v186_v41 = vld [vmem:[%s726_s26 + $0x58] sm:$0xff]  ;;  %v201_v42 = vld [vmem:[%s726_s26 + $0xd0] sm:$0xff]  ;;  %v187_v44 = vld [vmem:[%s726_s26 + $0x60] sm:$0xff] }
  0x18   : > { %v202_v43 = vld [vmem:[%s726_s26 + $0xd8] sm:$0xff]  ;;  %v188_v45 = vld [vmem:[%s726_s26 + $0x68] sm:$0xff]  ;;  %v203_v46 = vld [vmem:[%s726_s26 + $0xe0] sm:$0xff]  ;;  %v216_v48 = vpack.c.bf16 %v186_v41, %v185_v40 }
  0x19   : > { %v204_v47 = vld [vmem:[%s726_s26 + $0xe8] sm:$0xff]  ;;  %v224_v49 = vpack.c.bf16 %v202_v43, %v201_v42  ;;  %v217_v50 = vpack.c.bf16 %v188_v45, %v187_v44  ;;  %v189_v52 = vld [vmem:[%s726_s26 + $0x70] sm:$0xff]  ;;  %v190_v53 = vld [vmem:[%s726_s26 + $0x78] sm:$0xff] }
  0x1a   : > { %v225_v51 = vpack.c.bf16 %v204_v47, %v203_v46  ;;  %v205_v54 = vld [vmem:[%s726_s26 + $0xf0] sm:$0xff]  ;;  %v206_v55 = vld [vmem:[%s726_s26 + $0xf8] sm:$0xff]  ;;  %v218_v56 = vpack.c.bf16 %v190_v53, %v189_v52 }
  0x1b   : > { %v226_v57 = vpack.c.bf16 %v206_v55, %v205_v54 }
  0x1c   : > { %629 = vmatmul.mubr.msk.bf16.gmra.mrb[4].mxu0 %vm236_vm2, %v214_v36 }
  0x1d   : > { %645 = vmatmul.mubr.msk.bf16.gmra.mrb[4].mxu1 %vm236_vm2, %v222_v37  ;;  %632 = vmatprep.mubr.msk.bf16.mxu0 %vm236_vm2, %v215_v38 }
  0x1e   : > { %648 = vmatprep.mubr.msk.bf16.mxu1 %vm236_vm2, %v223_v39 }
  0x24   : > { %633 = vmatmul.mubr.msk.bf16.gmra.mrb[8].mxu0 %vm236_vm2, %v216_v48 }
  0x25   : > { %649 = vmatmul.mubr.msk.bf16.gmra.mrb[8].mxu1 %vm236_vm2, %v224_v49  ;;  %636 = vmatprep.mubr.msk.bf16.mxu0 %vm236_vm2, %v217_v50 }
  0x26   : > { %652 = vmatprep.mubr.msk.bf16.mxu1 %vm236_vm2, %v225_v51 }
  0x2c   : > { %637 = vmatmul.mubr.msk.bf16.gmra.mrb[12].mxu0 %vm236_vm2, %v218_v56 }
  0x2d   : > { %653 = vmatmul.mubr.msk.bf16.gmra.mrb[12].mxu1 %vm236_vm2, %v226_v57 }
  0xe7   : > { %v626_v59 = vpop.f32.mrb[0].mxu0 }
  0xe8   : > { %v335_v60 = vadd.f32 %v626_v59, %v779_v58  ;;  %v642_v61 = vpop.f32.mrb[0].mxu1  ;;  %v326_v62 = vpop.f32.mrb[1].mxu0 }
  0xe9   : > { %v399_v63 = vadd.f32 %v642_v61, %v779_v58  ;;  %v327_v0 = vadd.f32 %v779_v58, %v326_v62  ;;  %v390_v1 = vpop.f32.mrb[1].mxu1  ;;  %v627_v2 = vpop.f32.mrb[2].mxu0 }
  0xea   : > { %v455_v3 = vmax.f32 %v335_v60, 0.0  ;;  %v391_v4 = vadd.f32 %v779_v58, %v390_v1  ;;  %v338_v5 = vadd.f32 %v627_v2, %v779_v58  ;;  %v643_v6 = vpop.f32.mrb[2].mxu1  ;;  %v329_v7 = vpop.f32.mrb[3].mxu0 }
  0xeb   : > { %v471_v8 = vmax.f32 %v399_v63, 0.0  ;;  %v453_v9 = vmax.f32 %v327_v0, 0.0  ;;  %v402_v10 = vadd.f32 %v643_v6, %v779_v58  ;;  %v330_v11 = vadd.f32 %v779_v58, %v329_v7  ;;  %v393_v12 = vpop.f32.mrb[3].mxu1 }
  0xec   : > { %488 = vst.msk [vmem:[%s787_s4 + $0x10] sm:$0xff] %vm485_vm3, %v455_v3  ;;  %v469_v13 = vmax.f32 %v391_v4, 0.0  ;;  %v456_v14 = vmax.f32 %v338_v5, 0.0  ;;  %v394_v15 = vadd.f32 %v779_v58, %v393_v12 }
  0xed   : > { %504 = vst.msk [vmem:[%s787_s4 + $0x90] sm:$0xff] %vm485_vm3, %v471_v8  ;;  %486 = vst.msk [vmem:[%s787_s4] sm:$0xff] %vm485_vm3, %v453_v9  ;;  %v472_v16 = vmax.f32 %v402_v10, 0.0  ;;  %v454_v17 = vmax.f32 %v330_v11, 0.0 }
  0xee   : > { %502 = vst.msk [vmem:[%s787_s4 + $0x80] sm:$0xff] %vm485_vm3, %v469_v13  ;;  %489 = vst.msk [vmem:[%s787_s4 + $0x18] sm:$0xff] %vm485_vm3, %v456_v14  ;;  %v470_v18 = vmax.f32 %v394_v15, 0.0 }
  0xef   : > { %505 = vst.msk [vmem:[%s787_s4 + $0x98] sm:$0xff] %vm485_vm3, %v472_v16  ;;  %487 = vst.msk [vmem:[%s787_s4 + $0x8] sm:$0xff] %vm485_vm3, %v454_v17  ;;  %v630_v19 = vpop.f32.mrb[4].mxu0 }
  0xf0   : > { %503 = vst.msk [vmem:[%s787_s4 + $0x88] sm:$0xff] %vm485_vm3, %v470_v18  ;;  %v351_v20 = vadd.f32 %v630_v19, %v779_v58  ;;  %v646_v21 = vpop.f32.mrb[4].mxu1  ;;  %v342_v22 = vpop.f32.mrb[5].mxu0 }
  0xf1   : > { %v415_v23 = vadd.f32 %v646_v21, %v779_v58  ;;  %v343_v24 = vadd.f32 %v779_v58, %v342_v22  ;;  %v406_v25 = vpop.f32.mrb[5].mxu1  ;;  %v631_v26 = vpop.f32.mrb[6].mxu0 }
  0xf2   : > { %v459_v27 = vmax.f32 %v351_v20, 0.0  ;;  %v407_v28 = vadd.f32 %v779_v58, %v406_v25  ;;  %v354_v29 = vadd.f32 %v631_v26, %v779_v58  ;;  %v647_v30 = vpop.f32.mrb[6].mxu1  ;;  %v345_v31 = vpop.f32.mrb[7].mxu0 }
  0xf3   : > { %v475_v32 = vmax.f32 %v415_v23, 0.0  ;;  %v457_v33 = vmax.f32 %v343_v24, 0.0  ;;  %v418_v34 = vadd.f32 %v647_v30, %v779_v58  ;;  %v346_v35 = vadd.f32 %v779_v58, %v345_v31  ;;  %v409_v36 = vpop.f32.mrb[7].mxu1 }
  0xf4   : > { %492 = vst.msk [vmem:[%s787_s4 + $0x30] sm:$0xff] %vm485_vm3, %v459_v27  ;;  %v473_v37 = vmax.f32 %v407_v28, 0.0  ;;  %v460_v38 = vmax.f32 %v354_v29, 0.0  ;;  %v410_v39 = vadd.f32 %v779_v58, %v409_v36 }
  0xf5   : > { %508 = vst.msk [vmem:[%s787_s4 + $0xb0] sm:$0xff] %vm485_vm3, %v475_v32  ;;  %490 = vst.msk [vmem:[%s787_s4 + $0x20] sm:$0xff] %vm485_vm3, %v457_v33  ;;  %v476_v40 = vmax.f32 %v418_v34, 0.0  ;;  %v458_v41 = vmax.f32 %v346_v35, 0.0 }
  0xf6   : > { %506 = vst.msk [vmem:[%s787_s4 + $0xa0] sm:$0xff] %vm485_vm3, %v473_v37  ;;  %493 = vst.msk [vmem:[%s787_s4 + $0x38] sm:$0xff] %vm485_vm3, %v460_v38  ;;  %v474_v42 = vmax.f32 %v410_v39, 0.0 }
  0xf7   : > { %509 = vst.msk [vmem:[%s787_s4 + $0xb8] sm:$0xff] %vm485_vm3, %v476_v40  ;;  %491 = vst.msk [vmem:[%s787_s4 + $0x28] sm:$0xff] %vm485_vm3, %v458_v41  ;;  %v634_v43 = vpop.f32.mrb[8].mxu0 }
  0xf8   : > { %507 = vst.msk [vmem:[%s787_s4 + $0xa8] sm:$0xff] %vm485_vm3, %v474_v42  ;;  %v367_v44 = vadd.f32 %v634_v43, %v779_v58  ;;  %v650_v45 = vpop.f32.mrb[8].mxu1  ;;  %v358_v46 = vpop.f32.mrb[9].mxu0 }
  0xf9   : > { %v431_v47 = vadd.f32 %v650_v45, %v779_v58  ;;  %v359_v48 = vadd.f32 %v779_v58, %v358_v46  ;;  %v422_v49 = vpop.f32.mrb[9].mxu1  ;;  %v635_v50 = vpop.f32.mrb[10].mxu0 }
  0xfa   : > { %v463_v51 = vmax.f32 %v367_v44, 0.0  ;;  %v423_v52 = vadd.f32 %v779_v58, %v422_v49  ;;  %v370_v53 = vadd.f32 %v635_v50, %v779_v58  ;;  %v651_v54 = vpop.f32.mrb[10].mxu1  ;;  %v361_v55 = vpop.f32.mrb[11].mxu0 }
  0xfb   : > { %v479_v56 = vmax.f32 %v431_v47, 0.0  ;;  %v461_v57 = vmax.f32 %v359_v48, 0.0  ;;  %v434_v59 = vadd.f32 %v651_v54, %v779_v58  ;;  %v362_v60 = vadd.f32 %v779_v58, %v361_v55  ;;  %v425_v61 = vpop.f32.mrb[11].mxu1 }
  0xfc   : > { %496 = vst.msk [vmem:[%s787_s4 + $0x50] sm:$0xff] %vm485_vm3, %v463_v51  ;;  %v477_v62 = vmax.f32 %v423_v52, 0.0  ;;  %v464_v63 = vmax.f32 %v370_v53, 0.0  ;;  %v426_v0 = vadd.f32 %v779_v58, %v425_v61 }
  0xfd   : > { %512 = vst.msk [vmem:[%s787_s4 + $0xd0] sm:$0xff] %vm485_vm3, %v479_v56  ;;  %494 = vst.msk [vmem:[%s787_s4 + $0x40] sm:$0xff] %vm485_vm3, %v461_v57  ;;  %v480_v1 = vmax.f32 %v434_v59, 0.0  ;;  %v462_v2 = vmax.f32 %v362_v60, 0.0 }
  0xfe   : > { %510 = vst.msk [vmem:[%s787_s4 + $0xc0] sm:$0xff] %vm485_vm3, %v477_v62  ;;  %497 = vst.msk [vmem:[%s787_s4 + $0x58] sm:$0xff] %vm485_vm3, %v464_v63  ;;  %v478_v3 = vmax.f32 %v426_v0, 0.0 }
  0xff   : > { %513 = vst.msk [vmem:[%s787_s4 + $0xd8] sm:$0xff] %vm485_vm3, %v480_v1  ;;  %495 = vst.msk [vmem:[%s787_s4 + $0x48] sm:$0xff] %vm485_vm3, %v462_v2  ;;  %v638_v4 = vpop.f32.mrb[12].mxu0 }
 0x100   : > { %511 = vst.msk [vmem:[%s787_s4 + $0xc8] sm:$0xff] %vm485_vm3, %v478_v3  ;;  %v383_v5 = vadd.f32 %v638_v4, %v779_v58  ;;  %v654_v6 = vpop.f32.mrb[12].mxu1  ;;  %v374_v7 = vpop.f32.mrb[13].mxu0 }
 0x101   : > { %v447_v8 = vadd.f32 %v654_v6, %v779_v58  ;;  %v375_v9 = vadd.f32 %v779_v58, %v374_v7  ;;  %v438_v10 = vpop.f32.mrb[13].mxu1  ;;  %v639_v11 = vpop.f32.mrb[14].mxu0 }
 0x102   : > { %v467_v12 = vmax.f32 %v383_v5, 0.0  ;;  %v439_v13 = vadd.f32 %v779_v58, %v438_v10  ;;  %v386_v14 = vadd.f32 %v639_v11, %v779_v58  ;;  %v655_v15 = vpop.f32.mrb[14].mxu1  ;;  %v377_v16 = vpop.f32.mrb[15].mxu0 }
 0x103   : > { %v483_v17 = vmax.f32 %v447_v8, 0.0  ;;  %v465_v18 = vmax.f32 %v375_v9, 0.0  ;;  %v450_v19 = vadd.f32 %v655_v15, %v779_v58  ;;  %v378_v20 = vadd.f32 %v779_v58, %v377_v16  ;;  %v441_v21 = vpop.f32.mrb[15].mxu1 }
 0x104   : > { %500 = vst.msk [vmem:[%s787_s4 + $0x70] sm:$0xff] %vm485_vm3, %v467_v12  ;;  %v481_v22 = vmax.f32 %v439_v13, 0.0  ;;  %v468_v23 = vmax.f32 %v386_v14, 0.0  ;;  %v442_v24 = vadd.f32 %v779_v58, %v441_v21 }
 0x105   : > { %516 = vst.msk [vmem:[%s787_s4 + $0xf0] sm:$0xff] %vm485_vm3, %v483_v17  ;;  %498 = vst.msk [vmem:[%s787_s4 + $0x60] sm:$0xff] %vm485_vm3, %v465_v18  ;;  %v484_v25 = vmax.f32 %v450_v19, 0.0  ;;  %v466_v26 = vmax.f32 %v378_v20, 0.0 }
 0x106   : > { %514 = vst.msk [vmem:[%s787_s4 + $0xe0] sm:$0xff] %vm485_vm3, %v481_v22  ;;  %501 = vst.msk [vmem:[%s787_s4 + $0x78] sm:$0xff] %vm485_vm3, %v468_v23  ;;  %v482_v27 = vmax.f32 %v442_v24, 0.0 }
 0x107   : > { %517 = vst.msk [vmem:[%s787_s4 + $0xf8] sm:$0xff] %vm485_vm3, %v484_v25  ;;  %499 = vst.msk [vmem:[%s787_s4 + $0x68] sm:$0xff] %vm485_vm3, %v466_v26 }
 0x108   : > { %515 = vst.msk [vmem:[%s787_s4 + $0xe8] sm:$0xff] %vm485_vm3, %v482_v27 }
 0x109 PF: > { %s13_s12 = sadd.s32 1, %s675_s12  }
 0x10a   : > { %p10_p4 = scmp.ge.s32.totalorder %s13_s12, 4  }
 0x10c   :  { %12 = sbr.rel (!%p10_p4) target bundleno = 1 (0x1), region = 62 }

// kernel: henet_forward.7
= control target key start
LH: loop header
LB: loop body
LE: loop exit
PB: predicated region body
PF: predicated region fallthrough
CT: control target
= control target key end

     0   :  { %v284_v0 = vmov 0   ;;  %vm97_vm0 = vcmask 130048   ;;  %vm235_vm1 = vcmask 261120   ;;  %s566_s1 = inlined_call_operand.vmem [shape: f32[144,32], index: 1, kind: input, shape index: {}]   ;;  %s567_s0 = inlined_call_operand.vmem [shape: f32[128,144], index: 0, kind: input, shape index: {}]   ;;  %s568_s2 = inlined_call_operand.vmem [shape: f32[1,32], index: 2, kind: input, shape index: {}]   ;;  %s569_s3 = inlined_call_operand.vmem [shape: f32[128,32], index: 3, kind: output, shape index: {}]  }
   0x1   :  { %122 = vmatprep.subr.bf16.mxu0 %v284_v0  ;;  %265 = vmatprep.subr.bf16.mxu1 %v284_v0  ;;  %v47_v1 = vld [vmem:[%s566_s1] sm:$0xff]  ;;  %v48_v2 = vld [vmem:[%s566_s1 + $0x8] sm:$0xff]  ;;  %v49_v3 = vld [vmem:[%s566_s1 + $0x10] sm:$0xff] }
   0x2   :  { %v81_v4 = vpack.c.bf16 %v48_v2, %v47_v1  ;;  %v50_v5 = vld [vmem:[%s566_s1 + $0x18] sm:$0xff]  ;;  %v51_v7 = vld [vmem:[%s566_s1 + $0x20] sm:$0xff]  ;;  %v52_v8 = vld [vmem:[%s566_s1 + $0x28] sm:$0xff] }
   0x3   :  { %v82_v6 = vpack.c.bf16 %v50_v5, %v49_v3  ;;  %v16_v9 = vld [vmem:[%s567_s0 + $0x8] sm:$0xff]  ;;  %v18_v10 = vld [vmem:[%s567_s0 + $0x18] sm:$0xff]  ;;  %v83_v12 = vpack.c.bf16 %v52_v8, %v51_v7  ;;  %v53_v15 = vld [vmem:[%s566_s1 + $0x30] sm:$0xff] }
   0x4   :  { %123 = vmatpush1.bf16.msra.mxu0 %v81_v4  ;;  %274 = vmatpush1.bf16.msra.mxu1 %v81_v4  ;;  %v32_v11 = vld [vmem:[%s567_s0 + $0x88] sm:$0xff]  ;;  %v66_v13 = vpack.c.bf16 %v18_v10, %v16_v9  ;;  %v34_v14 = vld [vmem:[%s567_s0 + $0x98] sm:$0xff]  ;;  %v55_v19 = vld [vmem:[%s566_s1 + $0x40] sm:$0xff] }
   0x5   :  { %124 = vmatprep.subr.bf16.mxu0 %v284_v0  ;;  %266 = vmatprep.subr.bf16.mxu1 %v284_v0  ;;  %v54_v16 = vld [vmem:[%s566_s1 + $0x38] sm:$0xff]  ;;  %v74_v17 = vpack.c.bf16 %v34_v14, %v32_v11  ;;  %v56_v20 = vld [vmem:[%s566_s1 + $0x48] sm:$0xff]  ;;  %v57_v22 = vld [vmem:[%s566_s1 + $0x50] sm:$0xff] }
   0x6   :  { %257 = vmatprep.mubr.msk.bf16.mxu0 %vm97_vm0, %v66_v13  ;;  %v84_v18 = vpack.c.bf16 %v54_v16, %v53_v15  ;;  %v85_v21 = vpack.c.bf16 %v56_v20, %v55_v19  ;;  %v58_v23 = vld [vmem:[%s566_s1 + $0x58] sm:$0xff]  ;;  %v59_v25 = vld [vmem:[%s566_s1 + $0x60] sm:$0xff]  ;;  %v60_v26 = vld [vmem:[%s566_s1 + $0x68] sm:$0xff] }
   0x7   :  { %261 = vmatprep.mubr.msk.bf16.mxu1 %vm97_vm0, %v74_v17  ;;  %v86_v24 = vpack.c.bf16 %v58_v23, %v57_v22  ;;  %v87_v27 = vpack.c.bf16 %v60_v26, %v59_v25  ;;  %v61_v28 = vld [vmem:[%s566_s1 + $0x70] sm:$0xff]  ;;  %v62_v29 = vld [vmem:[%s566_s1 + $0x78] sm:$0xff]  ;;  %v63_v31 = vld [vmem:[%s566_s1 + $0x80] sm:$0xff] }
   0x8   :  { %125 = vmatpush1.bf16.msra.mxu0 %v82_v6  ;;  %275 = vmatpush1.bf16.msra.mxu1 %v82_v6  ;;  %v88_v30 = vpack.c.bf16 %v62_v29, %v61_v28  ;;  %v64_v32 = vld [vmem:[%s566_s1 + $0x88] sm:$0xff]  ;;  %v15_v33 = vld [vmem:[%s567_s0] sm:$0xff]  ;;  %v17_v34 = vld [vmem:[%s567_s0 + $0x10] sm:$0xff] }
   0x9   :  { %126 = vmatprep.subr.bf16.mxu0 %v284_v0  ;;  %267 = vmatprep.subr.bf16.mxu1 %v284_v0  ;;  %v89_v35 = vpack.c.bf16 %v64_v32, %v63_v31  ;;  %v31_v36 = vld [vmem:[%s567_s0 + $0x80] sm:$0xff]  ;;  %v33_v37 = vld [vmem:[%s567_s0 + $0x90] sm:$0xff]  ;;  %v20_v38 = vld [vmem:[%s567_s0 + $0x28] sm:$0xff]  ;;  %v65_v42 = vpack.c.bf16 %v17_v34, %v15_v33 }
   0xa   :  { %v22_v39 = vld [vmem:[%s567_s0 + $0x38] sm:$0xff]  ;;  %v36_v40 = vld [vmem:[%s567_s0 + $0xa8] sm:$0xff]  ;;  %v73_v43 = vpack.c.bf16 %v33_v37, %v31_v36  ;;  %v19_v46 = vld [vmem:[%s567_s0 + $0x20] sm:$0xff] }
   0xb   :  { %v38_v41 = vld [vmem:[%s567_s0 + $0xb8] sm:$0xff]  ;;  %v68_v44 = vpack.c.bf16 %v22_v39, %v20_v38  ;;  %v21_v47 = vld [vmem:[%s567_s0 + $0x30] sm:$0xff]  ;;  %v35_v48 = vld [vmem:[%s567_s0 + $0xa0] sm:$0xff] }
   0xc   :  { %127 = vmatpush1.bf16.msra.mxu0 %v83_v12  ;;  %276 = vmatpush1.bf16.msra.mxu1 %v83_v12  ;;  %v76_v45 = vpack.c.bf16 %v38_v41, %v36_v40  ;;  %v37_v49 = vld [vmem:[%s567_s0 + $0xb0] sm:$0xff]  ;;  %v24_v50 = vld [vmem:[%s567_s0 + $0x48] sm:$0xff]  ;;  %v26_v51 = vld [vmem:[%s567_s0 + $0x58] sm:$0xff]  ;;  %v67_v54 = vpack.c.bf16 %v21_v47, %v19_v46 }
   0xd   :  { %128 = vmatprep.subr.bf16.mxu0 %v284_v0  ;;  %268 = vmatprep.subr.bf16.mxu1 %v284_v0  ;;  %v40_v52 = vld [vmem:[%s567_s0 + $0xc8] sm:$0xff]  ;;  %v42_v53 = vld [vmem:[%s567_s0 + $0xd8] sm:$0xff]  ;;  %v75_v55 = vpack.c.bf16 %v37_v49, %v35_v48  ;;  %v70_v56 = vpack.c.bf16 %v26_v51, %v24_v50  ;;  %v23_v58 = vld [vmem:[%s567_s0 + $0x40] sm:$0xff] }
   0xe   :  { %v78_v57 = vpack.c.bf16 %v42_v53, %v40_v52  ;;  %v25_v59 = vld [vmem:[%s567_s0 + $0x50] sm:$0xff]  ;;  %v39_v60 = vld [vmem:[%s567_s0 + $0xc0] sm:$0xff]  ;;  %v28_v62 = vld [vmem:[%s567_s0 + $0x68] sm:$0xff] }
   0xf   :  { %v41_v61 = vld [vmem:[%s567_s0 + $0xd0] sm:$0xff]  ;;  %v30_v63 = vld [vmem:[%s567_s0 + $0x78] sm:$0xff]  ;;  %v69_v2 = vpack.c.bf16 %v25_v59, %v23_v58  ;;  %v27_v6 = vld [vmem:[%s567_s0 + $0x60] sm:$0xff] }
  0x10   :  { %129 = vmatpush1.bf16.msra.mxu0 %v84_v18  ;;  %277 = vmatpush1.bf16.msra.mxu1 %v84_v18  ;;  %v46_v1 = vld [vmem:[%s567_s0 + $0xf8] sm:$0xff]  ;;  %v77_v3 = vpack.c.bf16 %v41_v61, %v39_v60  ;;  %v72_v4 = vpack.c.bf16 %v30_v63, %v28_v62  ;;  %v29_v7 = vld [vmem:[%s567_s0 + $0x70] sm:$0xff]  ;;  %v43_v8 = vld [vmem:[%s567_s0 + $0xe0] sm:$0xff] }
  0x11   :  { %130 = vmatprep.subr.bf16.mxu0 %v284_v0  ;;  %269 = vmatprep.subr.bf16.mxu1 %v284_v0  ;;  %v45_v9 = vld [vmem:[%s567_s0 + $0xf0] sm:$0xff]  ;;  %v71_v10 = vpack.c.bf16 %v29_v7, %v27_v6  ;;  %v484_v12 = vld [vmem:[%s568_s2] ss:$0 sm:$0xff] }
  0x12   :  { %v79_v11 = vpack.c.bf16 %v45_v9, %v43_v8 }
  0x14   :  { %131 = vmatpush1.bf16.msra.mxu0 %v85_v21  ;;  %278 = vmatpush1.bf16.msra.mxu1 %v85_v21 }
  0x15   :  { %132 = vmatprep.subr.bf16.mxu0 %v284_v0  ;;  %270 = vmatprep.subr.bf16.mxu1 %v284_v0 }
  0x18   :  { %133 = vmatpush1.bf16.msra.mxu0 %v86_v24  ;;  %279 = vmatpush1.bf16.msra.mxu1 %v86_v24 }
  0x19   :  { %134 = vmatprep.subr.bf16.mxu0 %v284_v0  ;;  %271 = vmatprep.subr.bf16.mxu1 %v284_v0 }
  0x1c   :  { %135 = vmatpush1.bf16.msra.mxu0 %v87_v27  ;;  %280 = vmatpush1.bf16.msra.mxu1 %v87_v27 }
  0x1d   :  { %136 = vmatprep.subr.bf16.mxu0 %v284_v0  ;;  %272 = vmatprep.subr.bf16.mxu1 %v284_v0 }
  0x20   :  { %137 = vmatpush1.bf16.msra.mxu0 %v88_v30  ;;  %281 = vmatpush1.bf16.msra.mxu1 %v88_v30 }
  0x21   :  { %138 = vmatprep.subr.bf16.mxu0 %v284_v0  ;;  %273 = vmatprep.subr.bf16.mxu1 %v284_v0  ;;  %v44_v0 = vld [vmem:[%s567_s0 + $0xe8] sm:$0xff] }
  0x22   :  { %v80_v5 = vpack.c.bf16 %v46_v1, %v44_v0 }
  0x24   :  { %139 = vmatpush1.bf16.msra.mxu0 %v89_v35  ;;  %282 = vmatpush1.bf16.msra.mxu1 %v89_v35 }
  0x27   :  { %155 = vmatmul.mubr.bf16.vlgmr.msra.gmra.mrb[0].mxu0 %v65_v42  ;;  %187 = vmatmul.mubr.bf16.vlgmr.msra.gmra.mrb[0].mxu1 %v73_v43 }
  0x28   :  { %258 = vmatprep.mubr.msk.bf16.mxu0 %vm97_vm0, %v68_v44  ;;  %262 = vmatprep.mubr.msk.bf16.mxu1 %vm97_vm0, %v76_v45 }
  0x2f   :  { %163 = vmatmul.mubr.bf16.gmra.mrb[4].mxu0 %v67_v54  ;;  %195 = vmatmul.mubr.bf16.gmra.mrb[4].mxu1 %v75_v55 }
  0x30   :  { %259 = vmatprep.mubr.msk.bf16.mxu0 %vm97_vm0, %v70_v56  ;;  %263 = vmatprep.mubr.msk.bf16.mxu1 %vm97_vm0, %v78_v57 }
  0x37   :  { %171 = vmatmul.mubr.bf16.gmra.mrb[8].mxu0 %v69_v2  ;;  %203 = vmatmul.mubr.bf16.gmra.mrb[8].mxu1 %v77_v3 }
  0x38   :  { %260 = vmatprep.mubr.msk.bf16.mxu0 %vm97_vm0, %v72_v4  ;;  %264 = vmatprep.mubr.msk.bf16.mxu1 %vm97_vm0, %v80_v5 }
  0x3f   :  { %179 = vmatmul.mubr.bf16.gmra.mrb[12].mxu0 %v71_v10  ;;  %211 = vmatmul.mubr.bf16.gmra.mrb[12].mxu1 %v79_v11 }
  0xfa   :  { %v156_v13 = vpop.f32.mrb[0].mxu0  ;;  %v188_v14 = vpop.f32.mrb[0].mxu1 }
  0xfb   :  { %v157_v15 = vadd.f32 %v484_v12, %v156_v13  ;;  %v189_v16 = vadd.f32 %v484_v12, %v188_v14  ;;  %v158_v17 = vpop.f32.mrb[1].mxu0  ;;  %v190_v18 = vpop.f32.mrb[1].mxu1 }
  0xfc   :  { %v159_v19 = vpop.f32.mrb[2].mxu0  ;;  %v191_v20 = vpop.f32.mrb[2].mxu1 }
  0xfd   :  { %v219_v21 = vmax.f32 %v157_v15, 0.0  ;;  %v227_v22 = vmax.f32 %v189_v16, 0.0  ;;  %v160_v23 = vadd.f32 %v484_v12, %v159_v19  ;;  %v192_v24 = vadd.f32 %v484_v12, %v191_v20  ;;  %v161_v25 = vpop.f32.mrb[3].mxu0  ;;  %v193_v26 = vpop.f32.mrb[3].mxu1 }
  0xff   :  { %236 = vst.msk [vmem:[%s569_s3] sm:$0xff] %vm235_vm1, %v219_v21  ;;  %244 = vst.msk [vmem:[%s569_s3 + $0x40] sm:$0xff] %vm235_vm1, %v227_v22  ;;  %v220_v27 = vmax.f32 %v160_v23, 0.0  ;;  %v228_v28 = vmax.f32 %v192_v24, 0.0 }
 0x101   :  { %237 = vst.msk [vmem:[%s569_s3 + $0x8] sm:$0xff] %vm235_vm1, %v220_v27  ;;  %245 = vst.msk [vmem:[%s569_s3 + $0x48] sm:$0xff] %vm235_vm1, %v228_v28 }
 0x102   :  { %v164_v29 = vpop.f32.mrb[4].mxu0  ;;  %v196_v30 = vpop.f32.mrb[4].mxu1 }
 0x103   :  { %v165_v31 = vadd.f32 %v484_v12, %v164_v29  ;;  %v197_v32 = vadd.f32 %v484_v12, %v196_v30  ;;  %v166_v33 = vpop.f32.mrb[5].mxu0  ;;  %v198_v34 = vpop.f32.mrb[5].mxu1 }
 0x104   :  { %v167_v35 = vpop.f32.mrb[6].mxu0  ;;  %v199_v36 = vpop.f32.mrb[6].mxu1 }
 0x105   :  { %v221_v37 = vmax.f32 %v165_v31, 0.0  ;;  %v229_v38 = vmax.f32 %v197_v32, 0.0  ;;  %v168_v39 = vadd.f32 %v484_v12, %v167_v35  ;;  %v200_v40 = vadd.f32 %v484_v12, %v199_v36  ;;  %v169_v41 = vpop.f32.mrb[7].mxu0  ;;  %v201_v42 = vpop.f32.mrb[7].mxu1 }
 0x107   :  { %238 = vst.msk [vmem:[%s569_s3 + $0x10] sm:$0xff] %vm235_vm1, %v221_v37  ;;  %246 = vst.msk [vmem:[%s569_s3 + $0x50] sm:$0xff] %vm235_vm1, %v229_v38  ;;  %v222_v43 = vmax.f32 %v168_v39, 0.0  ;;  %v230_v44 = vmax.f32 %v200_v40, 0.0 }
 0x109   :  { %239 = vst.msk [vmem:[%s569_s3 + $0x18] sm:$0xff] %vm235_vm1, %v222_v43  ;;  %247 = vst.msk [vmem:[%s569_s3 + $0x58] sm:$0xff] %vm235_vm1, %v230_v44 }
 0x10a   :  { %v172_v45 = vpop.f32.mrb[8].mxu0  ;;  %v204_v46 = vpop.f32.mrb[8].mxu1 }
 0x10b   :  { %v173_v47 = vadd.f32 %v484_v12, %v172_v45  ;;  %v205_v48 = vadd.f32 %v484_v12, %v204_v46  ;;  %v174_v49 = vpop.f32.mrb[9].mxu0  ;;  %v206_v50 = vpop.f32.mrb[9].mxu1 }
 0x10c   :  { %v175_v51 = vpop.f32.mrb[10].mxu0  ;;  %v207_v52 = vpop.f32.mrb[10].mxu1 }
 0x10d   :  { %v223_v53 = vmax.f32 %v173_v47, 0.0  ;;  %v231_v54 = vmax.f32 %v205_v48, 0.0  ;;  %v176_v55 = vadd.f32 %v484_v12, %v175_v51  ;;  %v208_v56 = vadd.f32 %v484_v12, %v207_v52  ;;  %v177_v57 = vpop.f32.mrb[11].mxu0  ;;  %v209_v58 = vpop.f32.mrb[11].mxu1 }
 0x10f   :  { %240 = vst.msk [vmem:[%s569_s3 + $0x20] sm:$0xff] %vm235_vm1, %v223_v53  ;;  %248 = vst.msk [vmem:[%s569_s3 + $0x60] sm:$0xff] %vm235_vm1, %v231_v54  ;;  %v224_v59 = vmax.f32 %v176_v55, 0.0  ;;  %v232_v60 = vmax.f32 %v208_v56, 0.0 }
 0x111   :  { %241 = vst.msk [vmem:[%s569_s3 + $0x28] sm:$0xff] %vm235_vm1, %v224_v59  ;;  %249 = vst.msk [vmem:[%s569_s3 + $0x68] sm:$0xff] %vm235_vm1, %v232_v60 }
 0x112   :  { %v180_v61 = vpop.f32.mrb[12].mxu0  ;;  %v212_v62 = vpop.f32.mrb[12].mxu1 }
 0x113   :  { %v181_v63 = vadd.f32 %v484_v12, %v180_v61  ;;  %v213_v0 = vadd.f32 %v484_v12, %v212_v62  ;;  %v182_v1 = vpop.f32.mrb[13].mxu0  ;;  %v214_v2 = vpop.f32.mrb[13].mxu1 }
 0x114   :  { %v183_v3 = vpop.f32.mrb[14].mxu0  ;;  %v215_v4 = vpop.f32.mrb[14].mxu1 }
 0x115   :  { %v225_v5 = vmax.f32 %v181_v63, 0.0  ;;  %v233_v6 = vmax.f32 %v213_v0, 0.0  ;;  %v184_v7 = vadd.f32 %v484_v12, %v183_v3  ;;  %v216_v8 = vadd.f32 %v484_v12, %v215_v4  ;;  %v185_v9 = vpop.f32.mrb[15].mxu0  ;;  %v217_v10 = vpop.f32.mrb[15].mxu1 }
 0x117   :  { %242 = vst.msk [vmem:[%s569_s3 + $0x30] sm:$0xff] %vm235_vm1, %v225_v5  ;;  %250 = vst.msk [vmem:[%s569_s3 + $0x70] sm:$0xff] %vm235_vm1, %v233_v6  ;;  %v226_v11 = vmax.f32 %v184_v7, 0.0  ;;  %v234_v13 = vmax.f32 %v216_v8, 0.0 }
 0x119   :  { %243 = vst.msk [vmem:[%s569_s3 + $0x38] sm:$0xff] %vm235_vm1, %v226_v11  ;;  %251 = vst.msk [vmem:[%s569_s3 + $0x78] sm:$0xff] %vm235_vm1, %v234_v13 }

// kernel: henet_forward.9
= control target key start
LH: loop header
LB: loop body
LE: loop exit
PB: predicated region body
PF: predicated region fallthrough
CT: control target
= control target key end

     0   :  { %vm101_vm0 = vcmask 523264   ;;  %s236_s1 = inlined_call_operand.vmem [shape: f32[128,64], index: 1, kind: input, shape index: {}]   ;;  %s237_s0 = inlined_call_operand.vmem [shape: f32[32,128], index: 0, kind: input, shape index: {}]   ;;  %s238_s2 = inlined_call_operand.vmem [shape: f32[1,64], index: 2, kind: input, shape index: {}]   ;;  %s239_s3 = inlined_call_operand.vmem [shape: f32[32,64], index: 3, kind: output, shape index: {}]  }
   0x1   :  { %v19_v0 = vld [vmem:[%s236_s1] sm:$0xff]  ;;  %v20_v1 = vld [vmem:[%s236_s1 + $0x8] sm:$0xff]  ;;  %v21_v2 = vld [vmem:[%s236_s1 + $0x10] sm:$0xff] }
   0x2   :  { %v37_v3 = vpack.c.bf16 %v20_v1, %v19_v0  ;;  %v22_v4 = vld [vmem:[%s236_s1 + $0x18] sm:$0xff]  ;;  %v23_v6 = vld [vmem:[%s236_s1 + $0x20] sm:$0xff]  ;;  %v24_v7 = vld [vmem:[%s236_s1 + $0x28] sm:$0xff] }
   0x3   :  { %v38_v5 = vpack.c.bf16 %v22_v4, %v21_v2  ;;  %v39_v8 = vpack.c.bf16 %v24_v7, %v23_v6  ;;  %v15_v9 = vld [vmem:[%s237_s0] sm:$0xff]  ;;  %v16_v10 = vld [vmem:[%s237_s0 + $0x8] sm:$0xff]  ;;  %v25_v11 = vld [vmem:[%s236_s1 + $0x30] sm:$0xff] }
   0x4   :  { %121 = vmatprep.subr.bf16.mxu0 %v37_v3  ;;  %v26_v12 = vld [vmem:[%s236_s1 + $0x38] sm:$0xff]  ;;  %v35_v13 = vpack.c.bf16 %v16_v10, %v15_v9  ;;  %v27_v15 = vld [vmem:[%s236_s1 + $0x40] sm:$0xff]  ;;  %v28_v16 = vld [vmem:[%s236_s1 + $0x48] sm:$0xff] }
   0x5   :  { %122 = vmatpush3.bf16.msra.mxu0 %v37_v3  ;;  %v40_v14 = vpack.c.bf16 %v26_v12, %v25_v11  ;;  %v41_v17 = vpack.c.bf16 %v28_v16, %v27_v15  ;;  %v29_v18 = vld [vmem:[%s236_s1 + $0x50] sm:$0xff]  ;;  %v30_v19 = vld [vmem:[%s236_s1 + $0x58] sm:$0xff]  ;;  %v31_v21 = vld [vmem:[%s236_s1 + $0x60] sm:$0xff] }
   0x6   :  { %123 = vmatprep.subr.bf16.mxu0 %v38_v5  ;;  %137 = vmatprep.mubr.bf16.mxu0 %v35_v13  ;;  %v42_v20 = vpack.c.bf16 %v30_v19, %v29_v18  ;;  %v32_v22 = vld [vmem:[%s236_s1 + $0x68] sm:$0xff]  ;;  %v33_v24 = vld [vmem:[%s236_s1 + $0x70] sm:$0xff]  ;;  %v34_v25 = vld [vmem:[%s236_s1 + $0x78] sm:$0xff] }
   0x7   :  { %v43_v23 = vpack.c.bf16 %v32_v22, %v31_v21  ;;  %v44_v26 = vpack.c.bf16 %v34_v25, %v33_v24  ;;  %v17_v27 = vld [vmem:[%s237_s0 + $0x10] sm:$0xff]  ;;  %v18_v28 = vld [vmem:[%s237_s0 + $0x18] sm:$0xff]  ;;  %v110_v30 = vld [vmem:[%s238_s2] ss:$0 sm:$0xff] }
   0x8   :  { %v36_v29 = vpack.c.bf16 %v18_v28, %v17_v27 }
   0x9   :  { %124 = vmatpush3.bf16.msra.mxu0 %v38_v5 }
   0xa   :  { %125 = vmatprep.subr.bf16.mxu0 %v39_v8 }
   0xd   :  { %126 = vmatpush3.bf16.msra.mxu0 %v39_v8 }
   0xe   :  { %127 = vmatprep.subr.bf16.mxu0 %v40_v14 }
  0x11   :  { %128 = vmatpush3.bf16.msra.mxu0 %v40_v14 }
  0x12   :  { %129 = vmatprep.subr.bf16.mxu0 %v41_v17 }
  0x15   :  { %130 = vmatpush3.bf16.msra.mxu0 %v41_v17 }
  0x16   :  { %131 = vmatprep.subr.bf16.mxu0 %v42_v20 }
  0x19   :  { %132 = vmatpush3.bf16.msra.mxu0 %v42_v20 }
  0x1a   :  { %133 = vmatprep.subr.bf16.mxu0 %v43_v23 }
  0x1d   :  { %134 = vmatpush3.bf16.msra.mxu0 %v43_v23 }
  0x1e   :  { %135 = vmatprep.subr.bf16.mxu0 %v44_v26 }
  0x21   :  { %136 = vmatpush3.bf16.msra.mxu0 %v44_v26 }
  0x24   :  { %138 = vmatmul.mubr.bf16.vlgmr.msra.gmra.mrb[0].mxu0 %v36_v29 }
  0xf7   :  { %v139_v31 = vpop.f32.mrb[0].mxu0 }
  0xf8   :  { %v95_v32 = vadd.f32 %v139_v31, %v110_v30  ;;  %v86_v33 = vpop.f32.mrb[1].mxu0 }
  0xf9   :  { %v87_v34 = vadd.f32 %v110_v30, %v86_v33  ;;  %v140_v35 = vpop.f32.mrb[2].mxu0 }
  0xfa   :  { %104 = vst.msk [vmem:[%s239_s3 + $0x10] sm:$0xff] %vm101_vm0, %v95_v32  ;;  %v98_v36 = vadd.f32 %v140_v35, %v110_v30  ;;  %v89_v37 = vpop.f32.mrb[3].mxu0 }
  0xfb   :  { %102 = vst.msk [vmem:[%s239_s3] sm:$0xff] %vm101_vm0, %v87_v34  ;;  %v90_v38 = vadd.f32 %v110_v30, %v89_v37 }
  0xfc   :  { %105 = vst.msk [vmem:[%s239_s3 + $0x18] sm:$0xff] %vm101_vm0, %v98_v36 }
  0xfd   :  { %103 = vst.msk [vmem:[%s239_s3 + $0x8] sm:$0xff] %vm101_vm0, %v90_v38 }

// kernel: henet_forward.8
= control target key start
LH: loop header
LB: loop body
LE: loop exit
PB: predicated region body
PF: predicated region fallthrough
CT: control target
= control target key end

     0   :  { %s2100_s18 = smov 0   ;;  %s2979_s0 = inlined_call_operand.vmem [shape: f32[2,64,32], index: 0, kind: input, shape index: {}]   ;;  %s2980_s1 = inlined_call_operand.vmem [shape: f32[64,1], index: 1, kind: input, shape index: {}]   ;;  %s2981_s2 = inlined_call_operand.vmem [shape: f32[64,1], index: 2, kind: input, shape index: {}]   ;;  %s2982_s3 = inlined_call_operand.vmem [shape: f32[9,32], index: 3, kind: input, shape index: {}]   ;;  %s2983_s4 = inlined_call_operand.vmem [shape: f32[1,32], index: 4, kind: input, shape index: {}]   ;;  %s2984_s5 = inlined_call_operand.vmem [shape: f32[32,64], index: 5, kind: input, shape index: {}]   ;;  %s2985_s6 = inlined_call_operand.vmem [shape: f32[1,64], index: 6, kind: input, shape index: {}]   ;;  %s2986_s7 = inlined_call_operand.vmem [shape: f32[64,32], index: 7, kind: input, shape index: {}]   ;;  %s2987_s8 = inlined_call_operand.vmem [shape: f32[1,32], index: 8, kind: input, shape index: {}]   ;;  %s2988_s9 = inlined_call_operand.vmem [shape: f32[9,32], index: 9, kind: input, shape index: {}]   ;;  %s2989_s10 = inlined_call_operand.vmem [shape: f32[1,32], index: 10, kind: input, shape index: {}]   ;;  %s2990_s11 = inlined_call_operand.vmem [shape: f32[32,64], index: 11, kind: input, shape index: {}]   ;;  %s2991_s12 = inlined_call_operand.vmem [shape: f32[1,64], index: 12, kind: input, shape index: {}]   ;;  %s2992_s13 = inlined_call_operand.vmem [shape: f32[64,32], index: 13, kind: input, shape index: {}]   ;;  %s2993_s14 = inlined_call_operand.vmem [shape: f32[1,32], index: 14, kind: input, shape index: {}]   ;;  %s2994_s15 = inlined_call_operand.vmem [shape: f32[2,64,32], index: 15, kind: output, shape index: {}]  }
   0x1 LB: > { %s1826_s19 = sadd.s32 4294967295, %s2016_s18   ;;  %p1830_p0 = scmp.ge.s32.totalorder %s2016_s18, 1  ;;  %s2016_s18 = sphi %s2100_s18, %s25_s18  }
   0x2   : > { %p437_p1 = scmp.lt.s32.totalorder %s2016_s18, 3 }
   0x4   : > { %p438_p2 = pnand %p1830_p0, %p437_p1 }
   0x6   : > { %441 = sbr.rel (%p438_p2) target bundleno = 1180 (0x49c), region = 80 }
   0xd   : > { %v511_v0 = vld [vmem:[%s2980_s1 + $0x10] sm:$0xff]  ;;  %v509_v1 = vld [vmem:[%s2980_s1] sm:$0xff]  ;;  %p485_p3 = scmp.lt.s32.totalorder %s1826_s19, 1  ;;  %vm496_vm0 = vcmask 261120   ;;  %v2018_v2 = vmov 0   ;;  %v2019_v3 = vmov 0.0  }
   0xe   : > { %1974 = vset.pattern.permute.xlu1 %v2018_v2  ;;  %1973 = vset.pattern.permute.xlu0 %v2018_v2  ;;  %499 = vst.msk [vmem:[#allocation2 + $0x10] sm:$0xff] %vm496_vm0, %v2019_v3  ;;  %500 = vst.msk [vmem:[#allocation2 + $0x18] sm:$0xff] %vm496_vm0, %v2019_v3  ;;  %v512_v4 = vld [vmem:[%s2980_s1 + $0x18] sm:$0xff]  ;;  %v510_v5 = vld [vmem:[%s2980_s1 + $0x8] sm:$0xff]  ;;  %vm1113_vm1 = vcmask 523264  }
   0xf   : > { %561 = vperm.xlu1 %1974, %v511_v0   ;;  %551 = vperm.xlu0 %1973, %v509_v1   ;;  %s3096_s19 = smov (!%p485_p3, %s1826_s19), 1  ;;  %501 = vst.msk [vmem:[#allocation2 + $0x20] sm:$0xff] %vm496_vm0, %v2019_v3  ;;  %502 = vst.msk [vmem:[#allocation2 + $0x28] sm:$0xff] %vm496_vm0, %v2019_v3  ;;  %v518_v6 = vld [vmem:[%s2981_s2 + $0x8] sm:$0xff]  ;;  %v517_v7 = vld [vmem:[%s2981_s2] sm:$0xff] }
  0x10   : > { %497 = vst.msk [vmem:[#allocation2] sm:$0xff] %vm496_vm0, %v2019_v3  ;;  %498 = vst.msk [vmem:[#allocation2 + $0x8] sm:$0xff] %vm496_vm0, %v2019_v3  ;;  %s1877_s28 = sshll.u32 %s3096_s19, 6  ;;  %v520_v14 = vld [vmem:[%s2981_s2 + $0x18] sm:$0xff]  ;;  %v519_v15 = vld [vmem:[%s2981_s2 + $0x10] sm:$0xff] }
  0x11   : > { %503 = vst.msk [vmem:[#allocation2 + $0x30] sm:$0xff] %vm496_vm0, %v2019_v3  ;;  %504 = vst.msk [vmem:[#allocation2 + $0x38] sm:$0xff] %vm496_vm0, %v2019_v3  ;;  %s2140_s16 = scalar_lea.vmem %s2979_s0, %s1877_s28  ;;  %v514_v17 = vld [vmem:[%s2980_s1 + $0x28] sm:$0xff]  ;;  %v513_v18 = vld [vmem:[%s2980_s1 + $0x20] sm:$0xff]  ;;  %s494_s26 = scalar_lea.vmem %s2994_s15, %s1877_s28 }
  0x12   : > { %505 = vst.msk [vmem:[#allocation2 + $0x40] sm:$0xff] %vm496_vm0, %v2019_v3  ;;  %506 = vst.msk [vmem:[#allocation2 + $0x48] sm:$0xff] %vm496_vm0, %v2019_v3  ;;  %v2149_v8 = vld [vmem:[%s2140_s16] sm:$0xff]  ;;  %v2152_v9 = vld [vmem:[%s2140_s16 + $0x8] sm:$0xff] }
  0x13   : > { %507 = vst.msk [vmem:[#allocation2 + $0x50] sm:$0xff] %vm496_vm0, %v2019_v3  ;;  %508 = vst.msk [vmem:[#allocation2 + $0x58] sm:$0xff] %vm496_vm0, %v2019_v3  ;;  %566 = vperm.xlu1 %1974, %v512_v4   ;;  %556 = vperm.xlu0 %1973, %v510_v5   ;;  %v2155_v10 = vld [vmem:[%s2140_s16 + $0x10] sm:$0xff]  ;;  %v2158_v11 = vld [vmem:[%s2140_s16 + $0x18] sm:$0xff] }
  0x14   : > { %3035 = vst [vmem:[#allocation3_spill] sm:$0xff] %v2149_v8  ;;  %3036 = vst [vmem:[#allocation4_spill] sm:$0xff] %v2152_v9  ;;  %v2169_v12 = vld [vmem:[%s2140_s16 + $0x20] sm:$0xff]  ;;  %v2174_v13 = vld [vmem:[%s2140_s16 + $0x28] sm:$0xff] }
  0x15   : > { %3037 = vst [vmem:[#allocation5_spill] sm:$0xff] %v2155_v10  ;;  %3038 = vst [vmem:[#allocation6_spill] sm:$0xff] %v2158_v11  ;;  %v2185_v16 = vld [vmem:[%s2140_s16 + $0x30] sm:$0xff]  ;;  %v516_v19 = vld [vmem:[%s2980_s1 + $0x38] sm:$0xff] }
  0x16   : > { %533 = vst.msk [vmem:[#allocation2 + $0x10] sm:$0xff] %vm496_vm0, %v2149_v8  ;;  %534 = vst.msk [vmem:[#allocation2 + $0x18] sm:$0xff] %vm496_vm0, %v2152_v9  ;;  %v515_v20 = vld [vmem:[%s2980_s1 + $0x30] sm:$0xff]  ;;  %v2202_v21 = vld [vmem:[%s2140_s16 + $0x38] sm:$0xff] }
  0x17   : > { %535 = vst.msk [vmem:[#allocation2 + $0x20] sm:$0xff] %vm496_vm0, %v2155_v10  ;;  %536 = vst.msk [vmem:[#allocation2 + $0x28] sm:$0xff] %vm496_vm0, %v2158_v11  ;;  %662 = vperm.xlu1 %1974, %v518_v6   ;;  %657 = vperm.xlu0 %1973, %v517_v7   ;;  %v522_v22 = vld [vmem:[%s2981_s2 + $0x28] sm:$0xff]  ;;  %v521_v23 = vld [vmem:[%s2981_s2 + $0x20] sm:$0xff] }
  0x18   : > { %3039 = vst [vmem:[#allocation7_spill] sm:$0xff] %v2169_v12  ;;  %537 = vst.msk [vmem:[#allocation2 + $0x30] sm:$0xff] %vm496_vm0, %v2169_v12  ;;  %v524_v24 = vld [vmem:[%s2981_s2 + $0x38] sm:$0xff]  ;;  %v523_v25 = vld [vmem:[%s2981_s2 + $0x30] sm:$0xff] }
  0x19   : > { %3040 = vst [vmem:[#allocation8_spill] sm:$0xff] %v2174_v13  ;;  %538 = vst.msk [vmem:[#allocation2 + $0x38] sm:$0xff] %vm496_vm0, %v2174_v13  ;;  %v924_v26 = vld [vmem:[%s2984_s5] sm:$0xff]  ;;  %v925_v27 = vld [vmem:[%s2984_s5 + $0x8] sm:$0xff] }
  0x1a   : > { %3041 = vst [vmem:[#allocation9_spill] sm:$0xff] %v2185_v16  ;;  %539 = vst.msk [vmem:[#allocation2 + $0x40] sm:$0xff] %vm496_vm0, %v2185_v16  ;;  %v932_v28 = vpack.c.bf16 %v925_v27, %v924_v26  ;;  %v926_v29 = vld [vmem:[%s2984_s5 + $0x10] sm:$0xff]  ;;  %v927_v30 = vld [vmem:[%s2984_s5 + $0x18] sm:$0xff] }
  0x1b   : > { %672 = vperm.xlu1 %1974, %v520_v14   ;;  %667 = vperm.xlu0 %1973, %v519_v15   ;;  %3042 = vst [vmem:[#allocation10_spill] sm:$0xff] %v2202_v21  ;;  %540 = vst.msk [vmem:[#allocation2 + $0x48] sm:$0xff] %vm496_vm0, %v2202_v21  ;;  %v933_v31 = vpack.c.bf16 %v927_v30, %v926_v29  ;;  %v1836_v32 = vld [vmem:[%s2982_s3 + $0x1] ss:$0 sm:$0xff]  ;;  %v618_v35 = vld [vmem:[#allocation2 + $0x8] sm:$0xff] }
  0x1c   : > { %1907 = vmatprep.subr.bf16.mxu0 %v932_v28  ;;  %v2236_v33 = vld [vmem:[%s2988_s9 + $0x1] ss:$0 sm:$0xff]  ;;  %v1839_v38 = vld [vmem:[%s2982_s3 + $0x4] ss:$0 sm:$0xff]  ;;  %v2243_v43 = vmul.f32 %v1836_v32, %v618_v35  ;;  %v1842_v47 = vld [vmem:[%s2982_s3 + $0x7] ss:$0 sm:$0xff] }
  0x1d   : > { %1908 = vmatpush3.bf16.msra.mxu0 %v932_v28  ;;  %3043 = vst [vmem:[#allocation11_spill] sm:$0xff] %v2236_v33  ;;  %v620_v34 = vld [vmem:[#allocation2 + $0x18] sm:$0xff]  ;;  %v619_v36 = vld [vmem:[#allocation2 + $0x10] sm:$0xff]  ;;  %v1257_v44 = vmul.f32 %v2236_v33, %v618_v35  ;;  %v541_v49 = vld [vmem:[#allocation2 + $0x7] sm:$0xff] }
  0x1e   : > { %1909 = vmatprep.subr.bf16.mxu0 %v933_v31  ;;  %v621_v37 = vld [vmem:[#allocation2 + $0x20] sm:$0xff]  ;;  %v764_v39 = vld [vmem:[#allocation2 + $0x28] sm:$0xff]  ;;  %v2241_v42 = vmul.f32 %v1836_v32, %v620_v34  ;;  %v2246_v45 = vmul.f32 %v1836_v32, %v619_v36  ;;  %v543_v48 = vld [vmem:[#allocation2 + $0x17] sm:$0xff]  ;;  %v2255_v53 = vmul.f32 %v1839_v38, %v619_v36  ;;  %v2257_v54 = vmul.f32 %v1839_v38, %v620_v34 }
  0x1f   : > { %576 = vperm.xlu1 %1974, %v514_v17   ;;  %571 = vperm.xlu0 %1973, %v513_v18   ;;  %v623_v40 = vld [vmem:[#allocation2 + $0x30] sm:$0xff]  ;;  %v2251_v50 = vmul.f32 %v1836_v32, %v621_v37  ;;  %v2253_v51 = vmul.f32 %v1839_v38, %v764_v39  ;;  %v2261_v56 = vmul.f32 %v1836_v32, %v764_v39  ;;  %v726_v60 = vld [vmem:[#allocation2 + $0x1f] sm:$0xff]  ;;  %v2269_v61 = vld [vmem:[#allocation2 + $0x27] sm:$0xff] }
  0x20   : > { %v766_v46 = vld [vmem:[#allocation2 + $0x38] sm:$0xff]  ;;  %v2259_v55 = vmul.f32 %v1836_v32, %v623_v40  ;;  %v2265_v58 = vmul.f32 %v1839_v38, %v621_v37  ;;  %v724_v63 = vld [vmem:[#allocation2 + $0xf] sm:$0xff]  ;;  %v2275_v1 = vmul.f32 %v1839_v38, %v623_v40  ;;  %v2279_v3 = vmul.f32 %v1842_v47, %v620_v34  ;;  %v2285_v5 = vld [vmem:[%s2988_s9] ss:$0 sm:$0xff] }
  0x21   : > { %1910 = vmatpush3.bf16.msra.mxu0 %v933_v31  ;;  %v625_v41 = vld [vmem:[#allocation2 + $0x40] sm:$0xff]  ;;  %v2273_v0 = vmul.f32 %v1839_v38, %v766_v46  ;;  %v2277_v2 = vmul.f32 %v1836_v32, %v766_v46  ;;  %3046 = vst [vmem:[#allocation14_spill] sm:$0xff] %v2285_v5  ;;  %v2290_v14 = vmul.f32 %v1842_v47, %v621_v37  ;;  %v2308_v26 = vld [vmem:[#allocation2 + $0x2f] sm:$0xff]  ;;  %v729_v9 = vld [vmem:[#allocation2 + $0x37] sm:$0xff] }
  0x22   : > { %v768_v52 = vld [vmem:[#allocation2 + $0x48] sm:$0xff]  ;;  %v2263_v57 = vmul.f32 %v1836_v32, %v625_v41  ;;  %v2295_v15 = vld [vmem:[%s2982_s3] ss:$0 sm:$0xff]  ;;  %v2297_v17 = vmul.f32 %v1839_v38, %v625_v41  ;;  %v2299_v18 = vmul.f32 %v1842_v47, %v764_v39  ;;  %v2313_v27 = vld [vmem:[%s2982_s3 + $0x3] ss:$0 sm:$0xff]  ;;  %v2325_v32 = vmul.f32 %v1842_v47, %v766_v46 }
  0x23   : > { %586 = vperm.xlu1 %1974, %v516_v19   ;;  %581 = vperm.xlu0 %1973, %v515_v20   ;;  %v2288_v7 = vmul.f32 %v1839_v38, %v768_v52  ;;  %v2301_v19 = vmul.f32 %v1842_v47, %v623_v40  ;;  %v857_v20 = vld [vmem:[#allocation2 + $0x50] sm:$0xff]  ;;  %v2318_v28 = vld [vmem:[%s2982_s3 + $0x6] ss:$0 sm:$0xff]  ;;  %v2327_v34 = vmul.f32 %v1842_v47, %v625_v41 }
  0x24   : > { %3049 = vst [vmem:[#allocation17_spill] sm:$0xff] %v2325_v32  ;;  %v2329_v35 = vmul.f32 %v1842_v47, %v768_v52  ;;  %v2334_v39 = vmul.f32 %v1842_v47, %v857_v20  ;;  %v648_v52 = vld [vmem:[#allocation2 + $0x11] sm:$0xff]  ;;  %v650_v21 = vld [vmem:[#allocation2 + $0x21] sm:$0xff] }
  0x25   : > { %3050 = vst [vmem:[#allocation18_spill] sm:$0xff] %v2327_v34  ;;  %v730_v11 = vld [vmem:[#allocation2 + $0x3f] sm:$0xff] }
  0x26   : > { %3051 = vst [vmem:[#allocation19_spill] sm:$0xff] %v2329_v35  ;;  %3052 = vst [vmem:[#allocation20_spill] sm:$0xff] %v2334_v39  ;;  %v795_v34 = vld [vmem:[#allocation2 + $0x39] sm:$0xff] }
  0x27   : > { %682 = vperm.xlu1 %1974, %v522_v22   ;;  %677 = vperm.xlu0 %1973, %v521_v23  }
  0x2b   : > { %692 = vperm.xlu1 %1974, %v524_v24   ;;  %687 = vperm.xlu0 %1973, %v523_v25  }
  0x8e   : > { %v2267_v59 = vpop.permute.xlu1 %561  ;;  %v2271_v62 = vpop.permute.xlu0 %551 }
  0x8f   : > { %3044 = vst [vmem:[#allocation12_spill] sm:$0xff] %v2267_v59  ;;  %3045 = vst [vmem:[#allocation13_spill] sm:$0xff] %v2271_v62  ;;  %v591_v4 = vmul.f32 %v2267_v59, %v543_v48  ;;  %v589_v6 = vmul.f32 %v2271_v62, %v541_v49  ;;  %v734_v22 = vmul.f32 %v726_v60, %v2267_v59 }
  0x90   : > { %v830_v23 = vmul.f32 %v2269_v61, %v2267_v59  ;;  %v732_v24 = vmul.f32 %v724_v63, %v2271_v62  ;;  %v828_v25 = vmul.f32 %v2271_v62, %v543_v48  ;;  %v647_v59 = vld [vmem:[#allocation2 + $0x9] sm:$0xff] }
  0x91   : > { %v1228_v29 = vmul.f32 %v2285_v5, %v589_v6  ;;  %v604_v36 = vmul.f32 %v2295_v15, %v591_v4  ;;  %v602_v37 = vmul.f32 %v2295_v15, %v589_v6  ;;  %v791_v5 = vld [vmem:[#allocation2 + $0x19] sm:$0xff]  ;;  %v2344_v4 = vmul.f32 %v2313_v27, %v734_v22  ;;  %v2360_v22 = vld [vmem:[%s2982_s3 + $0x2] ss:$0 sm:$0xff] }
  0x92   : > { %v2321_v30 = vpop.permute.xlu1 %566  ;;  %v2323_v31 = vpop.permute.xlu0 %556  ;;  %v2347_v6 = vmul.f32 %v2318_v28, %v830_v23  ;;  %v2351_v47 = vmul.f32 %v2318_v28, %v828_v25 }
  0x93   : > { %3047 = vst [vmem:[#allocation15_spill] sm:$0xff] %v2321_v30  ;;  %3048 = vst [vmem:[#allocation16_spill] sm:$0xff] %v2323_v31  ;;  %v592_v38 = vmul.f32 %v726_v60, %v2321_v30  ;;  %v2336_v40 = vadd.f32 %v1257_v44, %v1228_v29  ;;  %v735_v49 = vmul.f32 %v2269_v61, %v2321_v30 }
  0x94   : > { %v831_v46 = vmul.f32 %v2308_v26, %v2321_v30  ;;  %v590_v41 = vmul.f32 %v724_v63, %v2323_v31  ;;  %v745_v44 = vmul.f32 %v2313_v27, %v732_v24  ;;  %v733_v63 = vmul.f32 %v2323_v31, %v543_v48  ;;  %v2373_v48 = vld [vmem:[%s2982_s3 + $0x5] ss:$0 sm:$0xff] }
  0x95   : > { %3053 = vst [vmem:[#allocation21_spill] sm:$0xff] %v2336_v40  ;;  %v605_v20 = vmul.f32 %v2295_v15, %v592_v38  ;;  %v829_v40 = vmul.f32 %v726_v60, %v2323_v31  ;;  %v641_v24 = vadd.f32 %v2241_v42, %v604_v36  ;;  %v639_v60 = vadd.f32 %v2243_v43, %v602_v37  ;;  %v2381_v36 = vld [vmem:[#allocation2 + $0x29] sm:$0xff] }
  0x96   : > { %v603_v29 = vmul.f32 %v2295_v15, %v590_v41  ;;  %v2362_v23 = vpop.permute.xlu1 %662  ;;  %v2364_v30 = vpop.permute.xlu0 %657  ;;  %v748_v62 = vmul.f32 %v2313_v27, %v735_v49  ;;  %v2378_v31 = vmul.f32 %v2318_v28, %v831_v46  ;;  %v746_v37 = vmul.f32 %v2313_v27, %v733_v63  ;;  %v2391_v46 = vld [vmem:[#allocation2 + $0x31] sm:$0xff] }
  0x97   : > { %3054 = vst [vmem:[#allocation22_spill] sm:$0xff] %v2362_v23  ;;  %3055 = vst [vmem:[#allocation23_spill] sm:$0xff] %v2364_v30  ;;  %v696_v25 = vmul.f32 %v2362_v23, %v648_v52  ;;  %v799_v38 = vmul.f32 %v791_v5, %v2362_v23  ;;  %v695_v41 = vmul.f32 %v2364_v30, %v647_v59 }
  0x98   : > { %v798_v42 = vmul.f32 %v2364_v30, %v648_v52  ;;  %v640_v13 = vadd.f32 %v2246_v45, %v603_v29  ;;  %v880_v12 = vmul.f32 %v791_v5, %v2364_v30  ;;  %v642_v43 = vadd.f32 %v2251_v50, %v605_v20  ;;  %v2398_v45 = vld [vmem:[%s2982_s3 + $0x8] ss:$0 sm:$0xff] }
  0x99   : > { %v709_v59 = vmul.f32 %v2360_v22, %v696_v25  ;;  %v708_v33 = vmul.f32 %v2360_v22, %v695_v41  ;;  %v2401_v29 = vmul.f32 %v2373_v48, %v799_v38  ;;  %v2404_v25 = vmul.f32 %v2318_v28, %v829_v40 }
  0x9a   : > { %v2389_v49 = vpop.permute.xlu1 %672  ;;  %v2393_v52 = vpop.permute.xlu0 %667  ;;  %v2412_v8 = vmul.f32 %v2373_v48, %v798_v42  ;;  %v881_v38 = vmul.f32 %v2362_v23, %v650_v21 }
  0x9b   : > { %3056 = vst [vmem:[#allocation24_spill] sm:$0xff] %v2389_v49  ;;  %3057 = vst [vmem:[#allocation25_spill] sm:$0xff] %v2393_v52  ;;  %v717_v50 = vadd.f32 %v709_v59, %v640_v13  ;;  %v716_v20 = vadd.f32 %v708_v33, %v639_v60  ;;  %v698_v63 = vmul.f32 %v2389_v49, %v650_v21 }
  0x9c   : > { %v801_v41 = vmul.f32 %v2381_v36, %v2389_v49  ;;  %v697_v30 = vmul.f32 %v791_v5, %v2393_v52  ;;  %v800_v16 = vmul.f32 %v2393_v52, %v650_v21  ;;  %v2418_v13 = vmul.f32 %v2391_v46, %v2389_v49 }
  0x9d   : > { %v711_v40 = vmul.f32 %v2360_v22, %v698_v63  ;;  %v882_v33 = vmul.f32 %v2381_v36, %v2393_v52  ;;  %v2423_v5 = vmul.f32 %v2398_v45, %v880_v12  ;;  %v753_v21 = vadd.f32 %v745_v44, %v716_v20  ;;  %v731_v44 = vld [vmem:[#allocation2 + $0x47] sm:$0xff]  ;;  %v827_v20 = vld [vmem:[#allocation2 + $0x4f] sm:$0xff] }
  0x9e   : > { %v814_v60 = vmul.f32 %v2373_v48, %v801_v41  ;;  %v710_v59 = vmul.f32 %v2360_v22, %v697_v30  ;;  %v2427_v42 = vpop.permute.xlu1 %576  ;;  %v2429_v10 = vpop.permute.xlu0 %571  ;;  %v754_v63 = vadd.f32 %v746_v37, %v717_v50  ;;  %v2436_v39 = vmul.f32 %v2373_v48, %v800_v16 }
  0x9f   : > { %3058 = vst [vmem:[#allocation26_spill] sm:$0xff] %v2427_v42  ;;  %3059 = vst [vmem:[#allocation27_spill] sm:$0xff] %v2429_v10  ;;  %v719_v23 = vadd.f32 %v711_v40, %v642_v43  ;;  %v594_v49 = vmul.f32 %v2308_v26, %v2427_v42  ;;  %v737_v35 = vmul.f32 %v729_v9, %v2427_v42 }
  0xa0   : > { %v833_v52 = vmul.f32 %v730_v11, %v2427_v42  ;;  %v718_v12 = vadd.f32 %v710_v59, %v641_v24  ;;  %v593_v30 = vmul.f32 %v2269_v61, %v2429_v10  ;;  %v736_v41 = vmul.f32 %v2308_v26, %v2429_v10 }
  0xa1   : > { %v756_v37 = vadd.f32 %v748_v62, %v719_v23  ;;  %v607_v43 = vmul.f32 %v2295_v15, %v594_v49  ;;  %v832_v50 = vmul.f32 %v729_v9, %v2429_v10  ;;  %v2445_v40 = vmul.f32 %v2398_v45, %v881_v38 }
  0xa2   : > { %v750_v24 = vmul.f32 %v2313_v27, %v737_v35  ;;  %v2449_v16 = vmul.f32 %v2318_v28, %v833_v52  ;;  %v606_v61 = vmul.f32 %v2295_v15, %v593_v30  ;;  %v2452_v59 = vpop.permute.xlu1 %586  ;;  %v2454_v26 = vpop.permute.xlu0 %581  ;;  %v2457_v62 = vmul.f32 %v2398_v45, %v882_v33 }
  0xa3   : > { %3060 = vst [vmem:[#allocation28_spill] sm:$0xff] %v2452_v59  ;;  %3061 = vst [vmem:[#allocation29_spill] sm:$0xff] %v2454_v26  ;;  %v785_v23 = vadd.f32 %v2253_v51, %v756_v37  ;;  %v755_v49 = vadd.f32 %v2344_v4, %v718_v12  ;;  %v596_v38 = vmul.f32 %v730_v11, %v2452_v59  ;;  %v796_v12 = vld [vmem:[#allocation2 + $0x41] sm:$0xff] }
  0xa4   : > { %v739_v35 = vmul.f32 %v731_v44, %v2452_v59  ;;  %v749_v52 = vmul.f32 %v2313_v27, %v736_v41  ;;  %v835_v42 = vmul.f32 %v827_v20, %v2452_v59  ;;  %v595_v30 = vmul.f32 %v729_v9, %v2454_v26 }
  0xa5   : > { %v738_v10 = vmul.f32 %v730_v11, %v2454_v26  ;;  %v644_v33 = vadd.f32 %v2259_v55, %v607_v43  ;;  %v2469_v32 = vmul.f32 %v2318_v28, %v832_v50  ;;  %v609_v51 = vmul.f32 %v2295_v15, %v596_v38 }
  0xa6   : > { %v834_v4 = vmul.f32 %v731_v44, %v2454_v26  ;;  %v822_v37 = vadd.f32 %v814_v60, %v785_v23  ;;  %v643_v41 = vadd.f32 %v2261_v56, %v606_v61  ;;  %v752_v20 = vmul.f32 %v2313_v27, %v739_v35  ;;  %v2476_v59 = vpop.permute.xlu1 %682  ;;  %v2478_v11 = vpop.permute.xlu0 %677  ;;  %v797_v61 = vld [vmem:[#allocation2 + $0x49] sm:$0xff] }
  0xa7   : > { %v608_v9 = vmul.f32 %v2295_v15, %v595_v30  ;;  %3062 = vst [vmem:[#allocation30_spill] sm:$0xff] %v2476_v59  ;;  %3063 = vst [vmem:[#allocation31_spill] sm:$0xff] %v2478_v11  ;;  %v2481_v55 = vmul.f32 %v2318_v28, %v835_v42  ;;  %v751_v43 = vmul.f32 %v2313_v27, %v738_v10 }
  0xa8   : > { %v700_v44 = vmul.f32 %v2391_v46, %v2476_v59  ;;  %v803_v60 = vmul.f32 %v795_v34, %v2476_v59  ;;  %v2488_v56 = vmul.f32 %v2318_v28, %v834_v4  ;;  %v2491_v50 = vmul.f32 %v796_v12, %v2476_v59 }
  0xa9   : > { %v699_v15 = vmul.f32 %v2381_v36, %v2478_v11  ;;  %v782_v42 = vadd.f32 %v2255_v53, %v753_v21  ;;  %v802_v10 = vmul.f32 %v2391_v46, %v2478_v11  ;;  %v2500_v27 = vmul.f32 %v795_v34, %v2478_v11  ;;  %v879_v36 = vld [vmem:[#allocation2 + $0x51] sm:$0xff] }
  0xaa   : > { %3064 = vst [vmem:[#allocation32_spill] sm:$0xff] %v2491_v50  ;;  %v713_v23 = vmul.f32 %v2360_v22, %v700_v44  ;;  %v646_v28 = vadd.f32 %v2263_v57, %v609_v51  ;;  %v816_v38 = vmul.f32 %v2373_v48, %v803_v60  ;;  %v2505_v30 = vpop.permute.xlu1 %692  ;;  %v2507_v4 = vpop.permute.xlu0 %687  ;;  %v645_v53 = vadd.f32 %v2277_v2, %v608_v9 }
  0xab   : > { %v712_v35 = vmul.f32 %v2360_v22, %v699_v15  ;;  %v783_v21 = vadd.f32 %v2257_v54, %v754_v63  ;;  %v702_v46 = vmul.f32 %v796_v12, %v2505_v30  ;;  %v805_v59 = vmul.f32 %v797_v61, %v2505_v30 }
  0xac   : > { %v721_v44 = vadd.f32 %v713_v23, %v644_v33  ;;  %v784_v57 = vadd.f32 %v2265_v58, %v755_v49  ;;  %v701_v60 = vmul.f32 %v795_v34, %v2507_v4  ;;  %v804_v15 = vmul.f32 %v796_v12, %v2507_v4 }
  0xad   : > { %v720_v51 = vadd.f32 %v712_v35, %v643_v41  ;;  %v819_v11 = vadd.f32 %v2412_v8, %v782_v42  ;;  %v815_v50 = vmul.f32 %v2373_v48, %v802_v10  ;;  %v715_v2 = vmul.f32 %v2360_v22, %v702_v46  ;;  %v3066_v35 = vld [vmem:[#allocation18_spill] sm:$0xff] }
  0xae   : > { %v758_v26 = vadd.f32 %v750_v24, %v721_v44  ;;  %v2520_v54 = vmul.f32 %v879_v36, %v2505_v30  ;;  %v818_v33 = vmul.f32 %v2373_v48, %v805_v59  ;;  %v714_v58 = vmul.f32 %v2360_v22, %v701_v60 }
  0xaf   : > { %v757_v63 = vadd.f32 %v749_v52, %v720_v51  ;;  %v886_v49 = vmul.f32 %v797_v61, %v2507_v4  ;;  %v723_v12 = vadd.f32 %v715_v2, %v646_v28  ;;  %v817_v8 = vmul.f32 %v2373_v48, %v804_v15  ;;  %v3065_v28 = vld [vmem:[#allocation17_spill] sm:$0xff]  ;;  %v3069_v15 = vld [vmem:[#allocation19_spill] sm:$0xff] }
  0xb0   : > { %v787_v34 = vadd.f32 %v2273_v0, %v758_v26  ;;  %v820_v24 = vadd.f32 %v2401_v29, %v783_v21  ;;  %v722_v9 = vadd.f32 %v714_v58, %v645_v53  ;;  %v849_v42 = vadd.f32 %v2351_v47, %v819_v11 }
  0xb1   : > { %v786_v41 = vadd.f32 %v2275_v1, %v757_v63  ;;  %v821_v52 = vadd.f32 %v2436_v39, %v784_v57  ;;  %v760_v59 = vadd.f32 %v752_v20, %v723_v12  ;;  %v852_v61 = vadd.f32 %v2378_v31, %v822_v37  ;;  %v1844_v39 = vld [vmem:[%s2983_s4] ss:$0 sm:$0xff]  ;;  %v3067_v53 = vld [vmem:[#allocation32_spill] sm:$0xff] }
  0xb2   : > { %v824_v23 = vadd.f32 %v816_v38, %v787_v34  ;;  %v850_v22 = vadd.f32 %v2404_v25, %v820_v24  ;;  %v759_v0 = vadd.f32 %v751_v43, %v722_v9  ;;  %v871_v26 = vadd.f32 %v2279_v3, %v849_v42  ;;  %v1093_v9 = vld [vmem:[%s2986_s7 + $0x18] sm:$0xff] }
  0xb3   : > { %v823_v10 = vadd.f32 %v815_v50, %v786_v41  ;;  %v851_v48 = vadd.f32 %v2347_v6, %v821_v52  ;;  %v789_v29 = vadd.f32 %v2288_v7, %v760_v59  ;;  %v874_v47 = vadd.f32 %v2301_v19, %v852_v61  ;;  %v1092_v41 = vld [vmem:[%s2986_s7 + $0x10] sm:$0xff]  ;;  %v1094_v52 = vld [vmem:[%s2986_s7 + $0x20] sm:$0xff]  ;;  %v1097_v61 = vld [vmem:[%s2986_s7 + $0x38] sm:$0xff] }
  0xb4   : > { %v872_v1 = vadd.f32 %v2290_v14, %v850_v22  ;;  %v896_v25 = vmul.f32 %v2398_v45, %v2418_v13  ;;  %v788_v31 = vadd.f32 %v2297_v17, %v759_v0  ;;  %v901_v37 = vadd.f32 %v2423_v5, %v871_v26  ;;  %v1096_v22 = vld [vmem:[%s2986_s7 + $0x30] sm:$0xff]  ;;  %v1845_v0 = vld [vmem:[%s2985_s6] ss:$0 sm:$0xff] }
  0xb5   : > { %v873_v3 = vadd.f32 %v2299_v18, %v851_v48  ;;  %v853_v6 = vadd.f32 %v2469_v32, %v823_v10  ;;  %v826_v7 = vadd.f32 %v818_v33, %v789_v29  ;;  %v854_v11 = vadd.f32 %v2449_v16, %v824_v23  ;;  %v1095_v23 = vld [vmem:[%s2986_s7 + $0x28] sm:$0xff] }
  0xb6   : > { %v902_v14 = vadd.f32 %v2445_v40, %v872_v1  ;;  %v904_v20 = vadd.f32 %v896_v25, %v874_v47  ;;  %v825_v43 = vadd.f32 %v817_v8, %v788_v31  ;;  %v916_v50 = vadd.f32 %v1844_v39, %v901_v37  ;;  %v1091_v8 = vld [vmem:[%s2986_s7 + $0x8] sm:$0xff] }
  0xb7   : > { %v903_v19 = vadd.f32 %v2457_v62, %v873_v3  ;;  %v875_v13 = vadd.f32 %v3065_v28, %v853_v6  ;;  %v856_v17 = vadd.f32 %v2481_v55, %v826_v7  ;;  %v876_v18 = vadd.f32 %v3066_v35, %v854_v11  ;;  %v3068_v55 = vld [vmem:[#allocation20_spill] sm:$0xff] }
  0xb8   : > { %v917_v38 = vadd.f32 %v1844_v39, %v902_v14  ;;  %v919_v5 = vadd.f32 %v1844_v39, %v904_v20  ;;  %v855_v32 = vadd.f32 %v2488_v56, %v825_v43  ;;  %v897_v40 = vmul.f32 %v2398_v45, %v2500_v27 }
  0xb9   : > { %v918_v36 = vadd.f32 %v1844_v39, %v903_v19  ;;  %v898_v16 = vmul.f32 %v2398_v45, %v3067_v53  ;;  %v900_v62 = vmul.f32 %v2398_v45, %v2520_v54  ;;  %v899_v21 = vmul.f32 %v2398_v45, %v886_v49  ;;  %v1090_v49 = vld [vmem:[%s2986_s7] sm:$0xff] }
  0xba   : > { %v928_v44 = vpack.c.bf16 %v917_v38, %v916_v50  ;;  %v878_v46 = vadd.f32 %v3068_v55, %v856_v17  ;;  %v905_v51 = vadd.f32 %v897_v40, %v875_v13  ;;  %v877_v56 = vadd.f32 %v3069_v15, %v855_v32 }
  0xbb   : > { %v929_v57 = vpack.c.bf16 %v919_v5, %v918_v36  ;;  %v906_v60 = vadd.f32 %v898_v16, %v876_v18  ;;  %v1102_v24 = vpack.c.bf16 %v1091_v8, %v1090_v49  ;;  %v1103_v42 = vpack.c.bf16 %v1093_v9, %v1092_v41 }
  0xbc   : > { %1911 = vmatprep.mubr.msk.bf16.mxu0 %vm496_vm0, %v928_v44  ;;  %v908_v2 = vadd.f32 %v900_v62, %v878_v46  ;;  %v920_v27 = vadd.f32 %v1844_v39, %v905_v51  ;;  %v907_v33 = vadd.f32 %v899_v21, %v877_v56  ;;  %v1104_v59 = vpack.c.bf16 %v1095_v23, %v1094_v52 }
  0xbd   : > { %1912 = vmatmul.mubr.msk.bf16.vlgmr.msra.gmra.mrb[0].mxu0 %vm496_vm0, %v929_v57  ;;  %v921_v63 = vadd.f32 %v1844_v39, %v906_v60  ;;  %1919 = vmatprep.subr.bf16.mxu1 %v1102_v24  ;;  %v1105_v10 = vpack.c.bf16 %v1097_v61, %v1096_v22 }
  0xbe   : > { %v923_v58 = vadd.f32 %v1844_v39, %v908_v2  ;;  %v922_v12 = vadd.f32 %v1844_v39, %v907_v33  ;;  %1920 = vmatpush3.bf16.msra.mxu1 %v1102_v24 }
  0xbf   : > { %v930_v34 = vpack.c.bf16 %v921_v63, %v920_v27  ;;  %1921 = vmatprep.subr.bf16.mxu1 %v1103_v42 }
  0xc0   : > { %v931_v45 = vpack.c.bf16 %v923_v58, %v922_v12 }
  0xc1   : > { %1915 = vmatprep.mubr.msk.bf16.mxu0 %vm496_vm0, %v930_v34 }
  0xc2   : > { %1922 = vmatpush3.bf16.msra.mxu1 %v1103_v42 }
  0xc3   : > { %1923 = vmatprep.subr.bf16.mxu1 %v1104_v59 }
  0xc5   : > { %1916 = vmatmul.mubr.msk.bf16.gmra.mrb[4].mxu0 %vm496_vm0, %v931_v45 }
  0xc6   : > { %1924 = vmatpush3.bf16.msra.mxu1 %v1104_v59 }
  0xc7   : > { %1925 = vmatprep.subr.bf16.mxu1 %v1105_v10 }
  0xca   : > { %1926 = vmatpush3.bf16.msra.mxu1 %v1105_v10 }
 0x190   : > { %v1913_v26 = vpop.f32.mrb[0].mxu0 }
 0x191   : > { %v2594_v48 = vadd.f32 %v1913_v26, %v1845_v0  ;;  %v987_v29 = vpop.f32.mrb[1].mxu0 }
 0x192   : > { %v2596_v1 = vadd.f32 %v1845_v0, %v987_v29  ;;  %v1914_v39 = vpop.f32.mrb[2].mxu0 }
 0x193   : > { %v1028_v47 = vmul.f32 0.044715, %v2594_v48  ;;  %v2599_v25 = vadd.f32 %v1914_v39, %v1845_v0  ;;  %v990_v31 = vpop.f32.mrb[3].mxu0  ;;  %v1020_v29 = vmul.f32 0.5, %v2594_v48 }
 0x194   : > { %v1026_v37 = vmul.f32 0.044715, %v2596_v1  ;;  %v2602_v3 = vadd.f32 %v1845_v0, %v990_v31  ;;  %v1018_v31 = vmul.f32 0.5, %v2596_v1 }
 0x195   : > { %v1036_v6 = vmul.f32 %v1028_v47, %v2594_v48  ;;  %v1029_v7 = vmul.f32 0.044715, %v2599_v25  ;;  %v1021_v39 = vmul.f32 0.5, %v2599_v25 }
 0x196   : > { %v1034_v14 = vmul.f32 %v1026_v37, %v2596_v1  ;;  %v1027_v20 = vmul.f32 0.044715, %v2602_v3  ;;  %v1019_v37 = vmul.f32 0.5, %v2602_v3 }
 0x197   : > { %v1044_v11 = vmul.f32 %v1036_v6, %v2594_v48  ;;  %v1037_v43 = vmul.f32 %v1029_v7, %v2599_v25 }
 0x198   : > { %v1035_v50 = vmul.f32 %v1027_v20, %v2602_v3  ;;  %v1917_v19 = vpop.f32.mrb[4].mxu0  ;;  %v1042_v28 = vmul.f32 %v1034_v14, %v2596_v1 }
 0x199   : > { %v1052_v13 = vadd.f32 %v1044_v11, %v2594_v48  ;;  %v1045_v17 = vmul.f32 %v1037_v43, %v2599_v25  ;;  %v2614_v38 = vadd.f32 %v1917_v19, %v1845_v0  ;;  %v1003_v5 = vpop.f32.mrb[5].mxu0 }
 0x19a   : > { %v2616_v35 = vadd.f32 %v1845_v0, %v1003_v5  ;;  %v1918_v18 = vpop.f32.mrb[6].mxu0  ;;  %v1043_v32 = vmul.f32 %v1035_v50, %v2602_v3  ;;  %v1050_v36 = vadd.f32 %v1042_v28, %v2596_v1 }
 0x19b   : > { %v1060_v40 = vmul.f32 0.7978846, %v1052_v13  ;;  %v1053_v53 = vadd.f32 %v1045_v17, %v2599_v25  ;;  %v1032_v16 = vmul.f32 0.044715, %v2614_v38  ;;  %v1015_v62 = vadd.f32 %v1918_v18, %v1845_v0  ;;  %v1006_v21 = vpop.f32.mrb[7].mxu0 }
 0x19c   : > { %v1030_v44 = vmul.f32 0.044715, %v2616_v35  ;;  %v1007_v55 = vadd.f32 %v1845_v0, %v1006_v21  ;;  %v1051_v46 = vadd.f32 %v1043_v32, %v2602_v3  ;;  %v1058_v57 = vmul.f32 0.7978846, %v1050_v36 }
 0x19d   : > { %1975 = vtanh.f32 %v1060_v40  ;;  %v1061_v51 = vmul.f32 0.7978846, %v1053_v53  ;;  %v1040_v60 = vmul.f32 %v1032_v16, %v2614_v38  ;;  %v1033_v15 = vmul.f32 0.044715, %v1015_v62 }
 0x19e   : > { %v1038_v56 = vmul.f32 %v1030_v44, %v2616_v35  ;;  %v1031_v2 = vmul.f32 0.044715, %v1007_v55  ;;  %v1059_v27 = vmul.f32 0.7978846, %v1051_v46  ;;  %1977 = vtanh.f32 %v1058_v57  ;;  %v1492_v57 = vld [vmem:[%s2990_s11 + $0x18] sm:$0xff] }
 0x19f   : > { %1979 = vtanh.f32 %v1061_v51  ;;  %v1048_v63 = vmul.f32 %v1040_v60, %v2614_v38  ;;  %v1041_v33 = vmul.f32 %v1033_v15, %v1015_v62  ;;  %v1024_v1 = vmul.f32 0.5, %v2614_v38  ;;  %v1850_v60 = vld [vmem:[%s2987_s8] ss:$0 sm:$0xff] }
 0x1a0   : > { %v1046_v58 = vmul.f32 %v1038_v56, %v2616_v35  ;;  %v1039_v34 = vmul.f32 %v1031_v2, %v1007_v55  ;;  %1981 = vtanh.f32 %v1059_v27  ;;  %v1025_v3 = vmul.f32 0.5, %v1015_v62 }
 0x1a1   : > { %v1056_v12 = vadd.f32 %v1048_v63, %v2614_v38  ;;  %v1049_v45 = vmul.f32 %v1041_v33, %v1015_v62  ;;  %v1022_v18 = vmul.f32 0.5, %v2616_v35  ;;  %v1023_v32 = vmul.f32 0.5, %v1007_v55  ;;  %v1489_v38 = vld [vmem:[%s2990_s11] sm:$0xff]  ;;  %v3070_v33 = vld [vmem:[#allocation5_spill] sm:$0xff] }
 0x1a2   : > { %v1054_v49 = vadd.f32 %v1046_v58, %v2616_v35  ;;  %v1047_v8 = vmul.f32 %v1039_v34, %v1007_v55  ;;  %v1490_v35 = vld [vmem:[%s2990_s11 + $0x8] sm:$0xff] }
 0x1a3   : > { %v1064_v24 = vmul.f32 0.7978846, %v1056_v12  ;;  %v1057_v41 = vadd.f32 %v1049_v45, %v1015_v62  ;;  %v1497_v62 = vpack.c.bf16 %v1490_v35, %v1489_v38  ;;  %v3071_v45 = vld [vmem:[#allocation3_spill] sm:$0xff] }
 0x1a4   : > { %v1062_v9 = vmul.f32 0.7978846, %v1054_v49  ;;  %v1055_v42 = vadd.f32 %v1047_v8, %v1007_v55  ;;  %v1491_v55 = vld [vmem:[%s2990_s11 + $0x10] sm:$0xff]  ;;  %v3083_v35 = vld [vmem:[#allocation15_spill] sm:$0xff] }
 0x1a5   : > { %1983 = vtanh.f32 %v1064_v24  ;;  %v1065_v52 = vmul.f32 0.7978846, %v1057_v41  ;;  %1935 = vmatprep.subr.bf16.mxu0 %v1497_v62  ;;  %v1498_v51 = vpack.c.bf16 %v1492_v57, %v1491_v55  ;;  %v3072_v24 = vld [vmem:[#allocation6_spill] sm:$0xff]  ;;  %v3084_v57 = vld [vmem:[#allocation12_spill] sm:$0xff] }
 0x1a6   : > { %1985 = vtanh.f32 %v1062_v9  ;;  %v1063_v23 = vmul.f32 0.7978846, %v1055_v42  ;;  %1936 = vmatpush3.bf16.msra.mxu0 %v1497_v62  ;;  %v3073_v9 = vld [vmem:[#allocation4_spill] sm:$0xff] }
 0x1a7   : > { %v1976_v59 = vpop.eup %1975  ;;  %1987 = vtanh.f32 %v1065_v52  ;;  %1937 = vmatprep.subr.bf16.mxu0 %v1498_v51 }
 0x1a8   : > { %v1978_v22 = vpop.eup %1977  ;;  %1989 = vtanh.f32 %v1063_v23  ;;  %v1076_v61 = vadd.f32 1.0, %v1976_v59 }
 0x1a9   : > { %v1980_v10 = vpop.eup %1979  ;;  %v1074_v0 = vadd.f32 1.0, %v1978_v22 }
 0x1aa   : > { %v1982_v26 = vpop.eup %1981  ;;  %v1077_v47 = vadd.f32 1.0, %v1980_v10  ;;  %v1084_v7 = vmul.f32 %v1076_v61, %v1020_v29  ;;  %1938 = vmatpush3.bf16.msra.mxu0 %v1498_v51  ;;  %v2678_v10 = vld [vmem:[%s2988_s9 + $0x4] ss:$0 sm:$0xff] }
 0x1ab   : > { %v1075_v6 = vadd.f32 1.0, %v1982_v26  ;;  %v1082_v20 = vmul.f32 %v1074_v0, %v1018_v31  ;;  %v3074_v0 = vld [vmem:[#allocation9_spill] sm:$0xff] }
 0x1ac   : > { %v1085_v14 = vmul.f32 %v1077_v47, %v1021_v39  ;;  %v3075_v47 = vld [vmem:[#allocation7_spill] sm:$0xff] }
 0x1ad   : > { %v1083_v11 = vmul.f32 %v1075_v6, %v1019_v37 }
 0x1ae   : > { %v1099_v43 = vpack.c.bf16 %v1085_v14, %v1084_v7  ;;  %v3076_v7 = vld [vmem:[#allocation10_spill] sm:$0xff] }
 0x1af   : > { %v1984_v50 = vpop.eup %1983  ;;  %v1098_v19 = vpack.c.bf16 %v1083_v11, %v1082_v20 }
 0x1b0   : > { %v1986_v28 = vpop.eup %1985  ;;  %v1080_v13 = vadd.f32 1.0, %v1984_v50 }
 0x1b1   : > { %v1988_v17 = vpop.eup %1987  ;;  %1927 = vmatprep.mubr.msk.bf16.mxu1 %vm1113_vm1, %v1098_v19  ;;  %v1078_v48 = vadd.f32 1.0, %v1986_v28 }
 0x1b2   : > { %v1990_v25 = vpop.eup %1989  ;;  %1928 = vmatmul.mubr.msk.bf16.vlgmr.msra.gmra.mrb[0].mxu1 %vm1113_vm1, %v1099_v43  ;;  %v1081_v5 = vadd.f32 1.0, %v1988_v17  ;;  %v1088_v40 = vmul.f32 %v1080_v13, %v1024_v1  ;;  %v3077_v43 = vld [vmem:[#allocation11_spill] sm:$0xff]  ;;  %v3078_v13 = vld [vmem:[#allocation8_spill] sm:$0xff] }
 0x1b3   : > { %v1079_v36 = vadd.f32 1.0, %v1990_v25  ;;  %v1086_v16 = vmul.f32 %v1078_v48, %v1022_v18  ;;  %v3079_v25 = vld [vmem:[#allocation16_spill] sm:$0xff]  ;;  %v3080_v18 = vld [vmem:[#allocation23_spill] sm:$0xff] }
 0x1b4   : > { %v1089_v53 = vmul.f32 %v1081_v5, %v1025_v3 }
 0x1b5   : > { %v1087_v21 = vmul.f32 %v1079_v36, %v1023_v32  ;;  %v2714_v36 = vld [vmem:[%s2988_s9 + $0x2] ss:$0 sm:$0xff] }
 0x1b6   : > { %v1101_v44 = vpack.c.bf16 %v1089_v53, %v1088_v40 }
 0x1b7   : > { %v1100_v46 = vpack.c.bf16 %v1087_v21, %v1086_v16  ;;  %v3081_v21 = vld [vmem:[#allocation24_spill] sm:$0xff] }
 0x1b9   : > { %1931 = vmatprep.mubr.msk.bf16.mxu1 %vm1113_vm1, %v1100_v46  ;;  %v3082_v46 = vld [vmem:[#allocation13_spill] sm:$0xff] }
 0x1ba   : > { %1932 = vmatmul.mubr.msk.bf16.gmra.mrb[4].mxu1 %vm1113_vm1, %v1101_v44 }
 0x285   : > { %v1929_v15 = vpop.f32.mrb[0].mxu1 }
 0x286   : > { %v1169_v56 = vadd.f32 %v1929_v15, %v1850_v60  ;;  %v1160_v2 = vpop.f32.mrb[1].mxu1  ;;  %v3085_v15 = vld [vmem:[#allocation14_spill] sm:$0xff] }
 0x287   : > { %v1161_v27 = vadd.f32 %v1850_v60, %v1160_v2  ;;  %v1930_v63 = vpop.f32.mrb[2].mxu1 }
 0x288   : > { %v2656_v58 = vadd.f32 %v1169_v56, %v3070_v33  ;;  %v1172_v34 = vadd.f32 %v1930_v63, %v1850_v60  ;;  %v1163_v12 = vpop.f32.mrb[3].mxu1  ;;  %v3086_v33 = vld [vmem:[#allocation22_spill] sm:$0xff] }
 0x289   : > { %v2659_v49 = vadd.f32 %v1161_v27, %v3071_v45  ;;  %v1164_v8 = vadd.f32 %v1850_v60, %v1163_v12  ;;  %v3087_v12 = vld [vmem:[#allocation25_spill] sm:$0xff] }
 0x28a   : > { %1201 = vst.msk [vmem:[#allocation2 + $0x20] sm:$0xff] %vm496_vm0, %v2656_v58  ;;  %v2664_v41 = vadd.f32 %v1172_v34, %v3072_v24 }
 0x28b   : > { %1199 = vst.msk [vmem:[#allocation2 + $0x10] sm:$0xff] %vm496_vm0, %v2659_v49  ;;  %v2669_v42 = vadd.f32 %v1164_v8, %v3073_v9  ;;  %v2740_v9 = vld [vmem:[%s2988_s9 + $0x3] ss:$0 sm:$0xff] }
 0x28c   : > { %1202 = vst.msk [vmem:[#allocation2 + $0x28] sm:$0xff] %vm496_vm0, %v2664_v41 }
 0x28d   : > { %1200 = vst.msk [vmem:[#allocation2 + $0x18] sm:$0xff] %vm496_vm0, %v2669_v42  ;;  %v1933_v52 = vpop.f32.mrb[4].mxu1 }
 0x28e   : > { %v1185_v23 = vadd.f32 %v1933_v52, %v1850_v60  ;;  %v1176_v59 = vpop.f32.mrb[5].mxu1 }
 0x28f   : > { %v1177_v22 = vadd.f32 %v1850_v60, %v1176_v59  ;;  %v1934_v61 = vpop.f32.mrb[6].mxu1 }
 0x290   : > { %v2681_v26 = vadd.f32 %v1185_v23, %v3074_v0  ;;  %v1188_v29 = vadd.f32 %v1934_v61, %v1850_v60  ;;  %v1179_v39 = vpop.f32.mrb[7].mxu1 }
 0x291   : > { %v2684_v31 = vadd.f32 %v1177_v22, %v3075_v47  ;;  %v1180_v37 = vadd.f32 %v1850_v60, %v1179_v39  ;;  %v2686_v6 = vld [vmem:[#allocation2 + $0x20] sm:$0xff] }
 0x292   : > { %1205 = vst.msk [vmem:[#allocation2 + $0x40] sm:$0xff] %vm496_vm0, %v2681_v26  ;;  %v2691_v14 = vadd.f32 %v1188_v29, %v3076_v7  ;;  %v1208_v20 = vld [vmem:[#allocation2 + $0xf] sm:$0xff]  ;;  %v1260_v50 = vmul.f32 %v3077_v43, %v2686_v6  ;;  %v2697_v28 = vmul.f32 %v2678_v10, %v2686_v6 }
 0x293   : > { %v1245_v11 = vld [vmem:[#allocation2 + $0x10] sm:$0xff]  ;;  %1203 = vst.msk [vmem:[#allocation2 + $0x30] sm:$0xff] %vm496_vm0, %v2684_v31  ;;  %v2702_v17 = vadd.f32 %v1180_v37, %v3078_v13  ;;  %v2704_v48 = vld [vmem:[#allocation2 + $0x27] sm:$0xff]  ;;  %v1216_v1 = vmul.f32 %v1208_v20, %v3079_v25  ;;  %v1311_v38 = vmul.f32 %v1208_v20, %v3082_v46 }
 0x294   : > { %v1273_v19 = vld [vmem:[#allocation2 + $0x9] sm:$0xff]  ;;  %v1258_v3 = vmul.f32 %v3077_v43, %v1245_v11  ;;  %v2708_v5 = vld [vmem:[#allocation2 + $0x21] sm:$0xff]  ;;  %1206 = vst.msk [vmem:[#allocation2 + $0x48] sm:$0xff] %vm496_vm0, %v2691_v14  ;;  %v1209_v40 = vld [vmem:[#allocation2 + $0x17] sm:$0xff]  ;;  %v1314_v62 = vmul.f32 %v2704_v48, %v3083_v35  ;;  %v1346_v55 = vmul.f32 %v2678_v10, %v1245_v11 }
 0x295   : > { %v1281_v32 = vmul.f32 %v1273_v19, %v3080_v18  ;;  %v1210_v53 = vld [vmem:[#allocation2 + $0x1f] sm:$0xff]  ;;  %v1284_v44 = vmul.f32 %v2708_v5, %v3081_v21  ;;  %1204 = vst.msk [vmem:[#allocation2 + $0x38] sm:$0xff] %vm496_vm0, %v2702_v17  ;;  %v1217_v51 = vmul.f32 %v1209_v40, %v3084_v57  ;;  %v1229_v56 = vmul.f32 %v3085_v15, %v1216_v1  ;;  %v1274_v27 = vld [vmem:[#allocation2 + $0x11] sm:$0xff] }
 0x296   : > { %v2718_v16 = vld [vmem:[#allocation2 + $0x18] sm:$0xff]  ;;  %v1218_v60 = vmul.f32 %v1210_v53, %v3083_v35  ;;  %v1282_v34 = vmul.f32 %v1274_v27, %v3086_v33  ;;  %v1312_v22 = vmul.f32 %v1209_v40, %v3079_v25  ;;  %v3088_v29 = vld [vmem:[#allocation21_spill] sm:$0xff]  ;;  %v1313_v47 = vmul.f32 %v1210_v53, %v3084_v57 }
 0x297   : > { %v1259_v2 = vmul.f32 %v3077_v43, %v2718_v16  ;;  %v1275_v63 = vld [vmem:[#allocation2 + $0x19] sm:$0xff]  ;;  %v1294_v8 = vmul.f32 %v2714_v36, %v1281_v32  ;;  %v1297_v24 = vmul.f32 %v2714_v36, %v1284_v44  ;;  %v1230_v52 = vmul.f32 %v3085_v15, %v1217_v51 }
 0x298   : > { %v1283_v45 = vmul.f32 %v1275_v63, %v3087_v12  ;;  %v1231_v23 = vmul.f32 %v3085_v15, %v1218_v60  ;;  %v1266_v59 = vadd.f32 %v1258_v3, %v1229_v56  ;;  %v1295_v61 = vmul.f32 %v2714_v36, %v1282_v34  ;;  %v2758_v3 = vld [vmem:[%s2988_s9 + $0x5] ss:$0 sm:$0xff] }
 0x299   : > { %v1302_v39 = vadd.f32 %v1294_v8, %v3088_v29  ;;  %v1267_v37 = vadd.f32 %v1259_v2, %v1230_v52  ;;  %v1324_v20 = vmul.f32 %v2740_v9, %v1311_v38  ;;  %v1325_v11 = vmul.f32 %v2740_v9, %v1312_v22  ;;  %v2773_v2 = vld [vmem:[%s2988_s9 + $0x6] ss:$0 sm:$0xff]  ;;  %v1248_v22 = vld [vmem:[#allocation2 + $0x28] sm:$0xff] }
 0x29a   : > { %v1296_v0 = vmul.f32 %v2714_v36, %v1283_v45  ;;  %v1268_v7 = vadd.f32 %v1260_v50, %v1231_v23  ;;  %v1303_v43 = vadd.f32 %v1295_v61, %v1266_v59  ;;  %v1326_v19 = vmul.f32 %v2740_v9, %v1313_v47  ;;  %v2763_v50 = vld [vmem:[%s2988_s9 + $0x7] ss:$0 sm:$0xff] }
 0x29b   : > { %v1327_v13 = vmul.f32 %v2740_v9, %v1314_v62  ;;  %v1347_v1 = vmul.f32 %v2678_v10, %v2718_v16  ;;  %v1332_v38 = vadd.f32 %v1324_v20, %v1302_v39  ;;  %v1363_v51 = vmul.f32 %v1274_v27, %v3080_v18 }
 0x29c   : > { %v1304_v32 = vadd.f32 %v1296_v0, %v1267_v37  ;;  %v1305_v44 = vadd.f32 %v1297_v24, %v1268_v7  ;;  %v1333_v60 = vadd.f32 %v1325_v11, %v1303_v43  ;;  %v1364_v62 = vmul.f32 %v1275_v63, %v3086_v33  ;;  %v2789_v37 = vld [vmem:[#allocation2 + $0x2f] sm:$0xff] }
 0x29d   : > { %v1365_v15 = vmul.f32 %v2708_v5, %v3087_v12  ;;  %v1393_v56 = vmul.f32 %v1209_v40, %v3082_v46  ;;  %v1354_v45 = vadd.f32 %v1346_v55, %v1332_v38  ;;  %v1376_v8 = vmul.f32 %v2758_v3, %v1363_v51  ;;  %v2780_v40 = vld [vmem:[#allocation2 + $0x29] sm:$0xff]  ;;  %v2804_v43 = vld [vmem:[#allocation2 + $0x31] sm:$0xff] }
 0x29e   : > { %v1334_v34 = vadd.f32 %v1326_v19, %v1304_v32  ;;  %v1429_v27 = vmul.f32 %v2763_v50, %v2686_v6  ;;  %v1335_v24 = vadd.f32 %v1327_v13, %v1305_v44  ;;  %v1355_v52 = vadd.f32 %v1347_v1, %v1333_v60  ;;  %v2810_v44 = vld [vmem:[#allocation2 + $0x30] sm:$0xff] }
 0x29f   : > { %v1377_v23 = vmul.f32 %v2758_v3, %v1364_v62  ;;  %v1394_v59 = vmul.f32 %v1210_v53, %v3079_v25  ;;  %v1378_v61 = vmul.f32 %v2758_v3, %v1365_v15  ;;  %v1384_v0 = vadd.f32 %v1376_v8, %v1354_v45  ;;  %v2794_v25 = vld [vmem:[%s2988_s9 + $0x8] ss:$0 sm:$0xff] }
 0x2a0   : > { %v1356_v46 = vadd.f32 %v2697_v28, %v1334_v34  ;;  %v1406_v55 = vmul.f32 %v2773_v2, %v1393_v56  ;;  %v1445_v6 = vmul.f32 %v1275_v63, %v3080_v18  ;;  %v1446_v47 = vmul.f32 %v2708_v5, %v3086_v33  ;;  %v2822_v56 = vld [vmem:[#allocation2 + $0x37] sm:$0xff] }
 0x2a1   : > { %v1385_v29 = vadd.f32 %v1377_v23, %v1355_v52  ;;  %v1407_v39 = vmul.f32 %v2773_v2, %v1394_v59  ;;  %v1428_v53 = vmul.f32 %v2763_v50, %v2718_v16  ;;  %v1349_v7 = vmul.f32 %v2678_v10, %v1248_v22 }
 0x2a2   : > { %v1414_v28 = vadd.f32 %v1406_v55, %v1384_v0  ;;  %v1366_v20 = vmul.f32 %v2780_v40, %v3081_v21  ;;  %v1386_v18 = vadd.f32 %v1378_v61, %v1356_v46  ;;  %v1458_v5 = vmul.f32 %v2794_v25, %v1445_v6  ;;  %v3090_v61 = vld [vmem:[#allocation26_spill] sm:$0xff] }
 0x2a3   : > { %v1415_v63 = vadd.f32 %v1407_v39, %v1385_v29  ;;  %v1395_v33 = vmul.f32 %v2704_v48, %v3084_v57  ;;  %v1357_v19 = vadd.f32 %v1349_v7, %v1335_v24  ;;  %v1396_v16 = vmul.f32 %v2789_v37, %v3083_v35  ;;  %v2817_v57 = vld [vmem:[%s2989_s10] ss:$0 sm:$0xff] }
 0x2a4   : > { %v1436_v11 = vadd.f32 %v1428_v53, %v1414_v28  ;;  %v1379_v13 = vmul.f32 %v2758_v3, %v1366_v20  ;;  %v1459_v32 = vmul.f32 %v2794_v25, %v1446_v47  ;;  %v1430_v51 = vmul.f32 %v2763_v50, %v1248_v22  ;;  %v3089_v24 = vld [vmem:[#allocation27_spill] sm:$0xff]  ;;  %v3092_v47 = vld [vmem:[#allocation28_spill] sm:$0xff]  ;;  %v2845_v20 = vld [vmem:[#allocation2 + $0x38] sm:$0xff] }
 0x2a5   : > { %v1437_v1 = vadd.f32 %v1429_v27, %v1415_v63  ;;  %v1408_v38 = vmul.f32 %v2773_v2, %v1395_v33  ;;  %v1409_v15 = vmul.f32 %v2773_v2, %v1396_v16  ;;  %v1447_v35 = vmul.f32 %v2780_v40, %v3087_v12  ;;  %v2826_v27 = vld [vmem:[#allocation2 + $0x3f] sm:$0xff] }
 0x2a6   : > { %v1466_v60 = vadd.f32 %v1458_v5, %v1436_v11  ;;  %v1387_v62 = vadd.f32 %v1379_v13, %v1357_v19  ;;  %v1448_v8 = vmul.f32 %v2804_v43, %v3081_v21  ;;  %v1219_v52 = vmul.f32 %v2704_v48, %v3089_v24  ;;  %v3091_v21 = vld [vmem:[#allocation29_spill] sm:$0xff]  ;;  %v2007_v53 = vld [vmem:[%s2988_s9] ss:$0 sm:$0xff]  ;;  %v2008_v13 = vld [vmem:[%s2988_s9 + $0x1] ss:$0 sm:$0xff] }
 0x2a7   : > { %v1467_v34 = vadd.f32 %v1459_v32, %v1437_v1  ;;  %v1416_v45 = vadd.f32 %v1408_v38, %v1386_v18  ;;  %v1431_v59 = vmul.f32 %v2763_v50, %v2810_v44  ;;  %v1460_v46 = vmul.f32 %v2794_v25, %v1447_v35  ;;  %v1251_v33 = vld [vmem:[#allocation2 + $0x40] sm:$0xff] }
 0x2a8   : > { %v1417_v23 = vadd.f32 %v1409_v15, %v1387_v62  ;;  %v1220_v12 = vmul.f32 %v2789_v37, %v3090_v61  ;;  %v1481_v0 = vadd.f32 %v2817_v57, %v1466_v60  ;;  %v1221_v39 = vmul.f32 %v2822_v56, %v3091_v21  ;;  %v1279_v32 = vld [vmem:[#allocation2 + $0x39] sm:$0xff]  ;;  %v1280_v38 = vld [vmem:[#allocation2 + $0x41] sm:$0xff] }
 0x2a9   : > { %v1482_v55 = vadd.f32 %v2817_v57, %v1467_v34  ;;  %v1438_v29 = vadd.f32 %v1430_v51, %v1416_v45  ;;  %v1461_v48 = vmul.f32 %v2794_v25, %v1448_v8  ;;  %v1222_v28 = vmul.f32 %v2826_v27, %v3092_v47  ;;  %v3093_v15 = vld [vmem:[#allocation31_spill] sm:$0xff] }
 0x2aa   : > { %v1439_v6 = vadd.f32 %v1431_v59, %v1417_v23  ;;  %v1233_v7 = vmul.f32 %v2007_v53, %v1220_v12  ;;  %v1232_v5 = vmul.f32 %v2007_v53, %v1219_v52  ;;  %v1234_v19 = vmul.f32 %v2007_v53, %v1221_v39  ;;  %v3094_v52 = vld [vmem:[#allocation30_spill] sm:$0xff] }
 0x2ab   : > { %v1493_v18 = vpack.c.bf16 %v1482_v55, %v1481_v0  ;;  %v1468_v63 = vadd.f32 %v1460_v46, %v1438_v29  ;;  %v1261_v16 = vmul.f32 %v2008_v13, %v1248_v22  ;;  %v1262_v1 = vmul.f32 %v2008_v13, %v2810_v44 }
 0x2ac   : > { %v1469_v11 = vadd.f32 %v1461_v48, %v1439_v6  ;;  %v1235_v60 = vmul.f32 %v2007_v53, %v1222_v28  ;;  %v1263_v62 = vmul.f32 %v2008_v13, %v2845_v20  ;;  %v1285_v35 = vmul.f32 %v2780_v40, %v3093_v15 }
 0x2ad   : > { %1939 = vmatprep.mubr.msk.bf16.mxu0 %vm496_vm0, %v1493_v18  ;;  %v1483_v51 = vadd.f32 %v2817_v57, %v1468_v63  ;;  %v1264_v45 = vmul.f32 %v2008_v13, %v1251_v33  ;;  %v1270_v8 = vadd.f32 %v1262_v1, %v1233_v7  ;;  %v1286_v22 = vmul.f32 %v2804_v43, %v3094_v52 }
 0x2ae   : > { %v1484_v34 = vadd.f32 %v2817_v57, %v1469_v11  ;;  %v1269_v23 = vadd.f32 %v1261_v16, %v1232_v5  ;;  %v1287_v59 = vmul.f32 %v1279_v32, %v2507_v4  ;;  %v1288_v46 = vmul.f32 %v1280_v38, %v2505_v30 }
 0x2af   : > { %v1298_v12 = vmul.f32 %v2714_v36, %v1285_v35  ;;  %v1299_v55 = vmul.f32 %v2714_v36, %v1286_v22  ;;  %v1315_v40 = vmul.f32 %v2789_v37, %v3089_v24  ;;  %v1316_v29 = vmul.f32 %v2822_v56, %v3090_v61 }
 0x2b0   : > { %v1494_v0 = vpack.c.bf16 %v1484_v34, %v1483_v51  ;;  %v1271_v39 = vadd.f32 %v1263_v62, %v1234_v19  ;;  %v1272_v6 = vadd.f32 %v1264_v45, %v1235_v60  ;;  %v1300_v48 = vmul.f32 %v2714_v36, %v1287_v59  ;;  %v1362_v59 = vld [vmem:[#allocation2 + $0x49] sm:$0xff] }
 0x2b1   : > { %v1306_v28 = vadd.f32 %v1298_v12, %v1269_v23  ;;  %v1301_v53 = vmul.f32 %v2714_v36, %v1288_v46  ;;  %v1307_v7 = vadd.f32 %v1299_v55, %v1270_v8  ;;  %v1328_v18 = vmul.f32 %v2740_v9, %v1315_v40 }
 0x2b2   : > { %1940 = vmatmul.mubr.msk.bf16.vlgmr.msra.gmra.mrb[8].mxu0 %vm496_vm0, %v1494_v0  ;;  %v1329_v63 = vmul.f32 %v2740_v9, %v1316_v29  ;;  %v1317_v37 = vmul.f32 %v2826_v27, %v3091_v21  ;;  %v1350_v5 = vmul.f32 %v2678_v10, %v2810_v44  ;;  %v1367_v11 = vmul.f32 %v2804_v43, %v3093_v15  ;;  %v1310_v43 = vld [vmem:[#allocation2 + $0x47] sm:$0xff] }
 0x2b3   : > { %v1368_v19 = vmul.f32 %v1279_v32, %v3094_v52  ;;  %v1336_v13 = vadd.f32 %v1328_v18, %v1306_v28  ;;  %v1351_v36 = vmul.f32 %v2678_v10, %v2845_v20  ;;  %v1397_v1 = vmul.f32 %v2822_v56, %v3089_v24 }
 0x2b4   : > { %v1337_v16 = vadd.f32 %v1329_v63, %v1307_v7  ;;  %v1352_v51 = vmul.f32 %v2678_v10, %v1251_v33  ;;  %v1369_v60 = vmul.f32 %v1280_v38, %v2507_v4  ;;  %v1380_v62 = vmul.f32 %v2758_v3, %v1367_v11 }
 0x2b5   : > { %v1398_v44 = vmul.f32 %v2826_v27, %v3090_v61  ;;  %v1358_v35 = vadd.f32 %v1350_v5, %v1336_v13  ;;  %v1381_v45 = vmul.f32 %v2758_v3, %v1368_v19  ;;  %v1410_v8 = vmul.f32 %v2773_v2, %v1397_v1  ;;  %v1340_v61 = vld [vmem:[#allocation2 + $0x48] sm:$0xff] }
 0x2b6   : > { %v1359_v34 = vadd.f32 %v1351_v36, %v1337_v16  ;;  %v1449_v56 = vmul.f32 %v1279_v32, %v3093_v15  ;;  %v1450_v24 = vmul.f32 %v1280_v38, %v3094_v52  ;;  %v1308_v23 = vadd.f32 %v1300_v48, %v1271_v39  ;;  %v1392_v32 = vld [vmem:[#allocation2 + $0x4f] sm:$0xff] }
 0x2b7   : > { %v1411_v22 = vmul.f32 %v2773_v2, %v1398_v44  ;;  %v1388_v46 = vadd.f32 %v1380_v62, %v1358_v35  ;;  %v1309_v0 = vadd.f32 %v1301_v53, %v1272_v6  ;;  %v1318_v27 = vmul.f32 %v1310_v43, %v3092_v47  ;;  %v2009_v36 = vld [vmem:[#allocation2 + $0x50] sm:$0xff] }
 0x2b8   : > { %v1389_v12 = vadd.f32 %v1381_v45, %v1359_v34  ;;  %v1432_v55 = vmul.f32 %v2763_v50, %v2845_v20  ;;  %v1433_v40 = vmul.f32 %v2763_v50, %v1251_v33  ;;  %v1462_v29 = vmul.f32 %v2794_v25, %v1449_v56 }
 0x2b9   : > { %v1330_v28 = vmul.f32 %v2740_v9, %v1317_v37  ;;  %v1418_v15 = vadd.f32 %v1410_v8, %v1388_v46  ;;  %v1331_v52 = vmul.f32 %v2740_v9, %v1318_v27  ;;  %v1370_v39 = vmul.f32 %v1362_v59, %v2505_v30  ;;  %v1659_v46 = vld [vmem:[%s2992_s13 + $0x20] sm:$0xff]  ;;  %v1661_v27 = vld [vmem:[%s2992_s13 + $0x30] sm:$0xff] }
 0x2ba   : > { %v1419_v38 = vadd.f32 %v1411_v22, %v1389_v12  ;;  %v1463_v6 = vmul.f32 %v2794_v25, %v1450_v24  ;;  %v1353_v53 = vmul.f32 %v2678_v10, %v1340_v61  ;;  %v1399_v20 = vmul.f32 %v1310_v43, %v3091_v21  ;;  %v1660_v12 = vld [vmem:[%s2992_s13 + $0x28] sm:$0xff] }
 0x2bb   : > { %v1338_v48 = vadd.f32 %v1330_v28, %v1308_v23  ;;  %v1440_v7 = vadd.f32 %v1432_v55, %v1418_v15  ;;  %v1339_v18 = vadd.f32 %v1331_v52, %v1309_v0  ;;  %v1400_v63 = vmul.f32 %v1392_v32, %v3092_v47 }
 0x2bc   : > { %v1441_v33 = vadd.f32 %v1433_v40, %v1419_v38  ;;  %v1382_v5 = vmul.f32 %v2758_v3, %v1369_v60  ;;  %v1383_v30 = vmul.f32 %v2758_v3, %v1370_v39  ;;  %v1412_v16 = vmul.f32 %v2773_v2, %v1399_v20  ;;  %v1865_v40 = vld [vmem:[%s2991_s12] ss:$0 sm:$0xff] }
 0x2bd   : > { %v1360_v37 = vadd.f32 %v1352_v51, %v1338_v48  ;;  %v1470_v11 = vadd.f32 %v1462_v29, %v1440_v7  ;;  %v1361_v9 = vadd.f32 %v1353_v53, %v1339_v18  ;;  %v1435_v10 = vmul.f32 %v2009_v36, %v2763_v50 }
 0x2be   : > { %v1471_v19 = vadd.f32 %v1463_v6, %v1441_v33  ;;  %v1451_v21 = vmul.f32 %v1362_v59, %v2507_v4  ;;  %v1413_v60 = vmul.f32 %v2773_v2, %v1400_v63  ;;  %v1434_v44 = vmul.f32 %v2763_v50, %v1340_v61  ;;  %v1655_v50 = vld [vmem:[%s2992_s13] sm:$0xff]  ;;  %v1662_v61 = vld [vmem:[%s2992_s13 + $0x38] sm:$0xff] }
 0x2bf   : > { %v1390_v13 = vadd.f32 %v1382_v5, %v1360_v37  ;;  %v1485_v1 = vadd.f32 %v2817_v57, %v1470_v11  ;;  %v1391_v51 = vadd.f32 %v1383_v30, %v1361_v9  ;;  %v1465_v45 = vmul.f32 %v2794_v25, %v2520_v54  ;;  %v1656_v54 = vld [vmem:[%s2992_s13 + $0x8] sm:$0xff] }
 0x2c0   : > { %v1486_v47 = vadd.f32 %v2817_v57, %v1471_v19  ;;  %v1464_v34 = vmul.f32 %v2794_v25, %v1451_v21  ;;  %v1657_v25 = vld [vmem:[%s2992_s13 + $0x10] sm:$0xff]  ;;  %v1667_v23 = vpack.c.bf16 %v1656_v54, %v1655_v50  ;;  %v1669_v0 = vpack.c.bf16 %v1660_v12, %v1659_v46 }
 0x2c1   : > { %v1420_v62 = vadd.f32 %v1412_v16, %v1390_v13  ;;  %v1421_v3 = vadd.f32 %v1413_v60, %v1391_v51  ;;  %v1670_v55 = vpack.c.bf16 %v1662_v61, %v1661_v27 }
 0x2c2   : > { %v1495_v43 = vpack.c.bf16 %v1486_v47, %v1485_v1  ;;  %1947 = vmatprep.subr.bf16.mxu1 %v1667_v23 }
 0x2c3   : > { %v1442_v35 = vadd.f32 %v1434_v44, %v1420_v62  ;;  %v1443_v4 = vadd.f32 %v1435_v10, %v1421_v3  ;;  %1948 = vmatpush3.bf16.msra.mxu1 %v1667_v23 }
 0x2c4   : > { %1943 = vmatprep.mubr.msk.bf16.mxu0 %vm496_vm0, %v1495_v43 }
 0x2c5   : > { %v1472_v8 = vadd.f32 %v1464_v34, %v1442_v35  ;;  %v1473_v22 = vadd.f32 %v1465_v45, %v1443_v4 }
 0x2c7   : > { %v1487_v56 = vadd.f32 %v2817_v57, %v1472_v8  ;;  %v1488_v2 = vadd.f32 %v2817_v57, %v1473_v22  ;;  %v1658_v57 = vld [vmem:[%s2992_s13 + $0x18] sm:$0xff] }
 0x2c8   : > { %v1668_v59 = vpack.c.bf16 %v1658_v57, %v1657_v25 }
 0x2c9   : > { %v1496_v24 = vpack.c.bf16 %v1488_v2, %v1487_v56 }
 0x2ca   : > { %1949 = vmatprep.subr.bf16.mxu1 %v1668_v59 }
 0x2cb   : > { %1944 = vmatmul.mubr.msk.bf16.gmra.mrb[12].mxu0 %vm496_vm0, %v1496_v24  ;;  %1950 = vmatpush3.bf16.msra.mxu1 %v1668_v59 }
 0x2cc   : > { %1951 = vmatprep.subr.bf16.mxu1 %v1669_v0 }
 0x2cf   : > { %1952 = vmatpush3.bf16.msra.mxu1 %v1669_v0 }
 0x2d0   : > { %1953 = vmatprep.subr.bf16.mxu1 %v1670_v55 }
 0x2d3   : > { %1954 = vmatpush3.bf16.msra.mxu1 %v1670_v55 }
 0x385   : > { %v1941_v29 = vpop.f32.mrb[8].mxu0 }
 0x386   : > { %v1561_v28 = vadd.f32 %v1941_v29, %v1865_v40  ;;  %v1552_v32 = vpop.f32.mrb[9].mxu0 }
 0x387   : > { %v1553_v15 = vadd.f32 %v1865_v40, %v1552_v32  ;;  %v1942_v38 = vpop.f32.mrb[10].mxu0 }
 0x388   : > { %v1593_v52 = vmul.f32 0.044715, %v1561_v28  ;;  %v1564_v39 = vadd.f32 %v1942_v38, %v1865_v40  ;;  %v1555_v6 = vpop.f32.mrb[11].mxu0  ;;  %v1585_v35 = vmul.f32 0.5, %v1561_v28 }
 0x389   : > { %v1591_v48 = vmul.f32 0.044715, %v1553_v15  ;;  %v1556_v53 = vadd.f32 %v1865_v40, %v1555_v6  ;;  %v1583_v56 = vmul.f32 0.5, %v1553_v15 }
 0x38a   : > { %v1601_v20 = vmul.f32 %v1593_v52, %v1561_v28  ;;  %v1594_v7 = vmul.f32 0.044715, %v1564_v39  ;;  %v1586_v34 = vmul.f32 0.5, %v1564_v39 }
 0x38b   : > { %v1599_v33 = vmul.f32 %v1591_v48, %v1553_v15  ;;  %v1592_v18 = vmul.f32 0.044715, %v1556_v53  ;;  %v1584_v2 = vmul.f32 0.5, %v1556_v53 }
 0x38c   : > { %v1609_v63 = vmul.f32 %v1601_v20, %v1561_v28  ;;  %v1602_v37 = vmul.f32 %v1594_v7, %v1564_v39 }
 0x38d   : > { %v1607_v5 = vmul.f32 %v1599_v33, %v1553_v15  ;;  %v1600_v11 = vmul.f32 %v1592_v18, %v1556_v53 }
 0x38e   : > { %v1617_v19 = vadd.f32 %v1609_v63, %v1561_v28  ;;  %v1610_v9 = vmul.f32 %v1602_v37, %v1564_v39 }
 0x38f   : > { %v1615_v30 = vadd.f32 %v1607_v5, %v1553_v15  ;;  %v1608_v13 = vmul.f32 %v1600_v11, %v1556_v53 }
 0x390   : > { %v1625_v16 = vmul.f32 0.7978846, %v1617_v19  ;;  %v1618_v36 = vadd.f32 %v1610_v9, %v1564_v39 }
 0x391   : > { %v1623_v10 = vmul.f32 0.7978846, %v1615_v30  ;;  %v1616_v21 = vadd.f32 %v1608_v13, %v1556_v53 }
 0x392   : > { %1991 = vtanh.f32 %v1625_v16  ;;  %v1626_v1 = vmul.f32 0.7978846, %v1618_v36 }
 0x393   : > { %1993 = vtanh.f32 %v1623_v10  ;;  %v1624_v47 = vmul.f32 0.7978846, %v1616_v21 }
 0x394   : > { %1995 = vtanh.f32 %v1626_v1 }
 0x395   : > { %1997 = vtanh.f32 %v1624_v47 }
 0x39c   : > { %v1992_v51 = vpop.eup %1991 }
 0x39d   : > { %v1994_v60 = vpop.eup %1993  ;;  %v1641_v62 = vadd.f32 1.0, %v1992_v51 }
 0x39e   : > { %v1996_v44 = vpop.eup %1995  ;;  %v1639_v43 = vadd.f32 1.0, %v1994_v60  ;;  %v1945_v4 = vpop.f32.mrb[12].mxu0 }
 0x39f   : > { %v1998_v3 = vpop.eup %1997  ;;  %v1642_v45 = vadd.f32 1.0, %v1996_v44  ;;  %v1577_v8 = vadd.f32 %v1945_v4, %v1865_v40  ;;  %v1568_v22 = vpop.f32.mrb[13].mxu0  ;;  %v1649_v50 = vmul.f32 %v1641_v62, %v1585_v35 }
 0x3a0   : > { %v1640_v24 = vadd.f32 1.0, %v1998_v3  ;;  %v1569_v25 = vadd.f32 %v1865_v40, %v1568_v22  ;;  %v1946_v23 = vpop.f32.mrb[14].mxu0  ;;  %v1647_v12 = vmul.f32 %v1639_v43, %v1583_v56 }
 0x3a1   : > { %v1650_v54 = vmul.f32 %v1642_v45, %v1586_v34  ;;  %v1597_v57 = vmul.f32 0.044715, %v1577_v8  ;;  %v1580_v59 = vadd.f32 %v1946_v23, %v1865_v40  ;;  %v1571_v46 = vpop.f32.mrb[15].mxu0  ;;  %v1589_v10 = vmul.f32 0.5, %v1577_v8  ;;  %v1870_v45 = vld [vmem:[%s2993_s14] ss:$0 sm:$0xff] }
 0x3a2   : > { %v1648_v0 = vmul.f32 %v1640_v24, %v1584_v2  ;;  %v1595_v61 = vmul.f32 0.044715, %v1569_v25  ;;  %v1572_v55 = vadd.f32 %v1865_v40, %v1571_v46  ;;  %v1587_v47 = vmul.f32 0.5, %v1569_v25 }
 0x3a3   : > { %v1664_v27 = vpack.c.bf16 %v1650_v54, %v1649_v50  ;;  %v1605_v29 = vmul.f32 %v1597_v57, %v1577_v8  ;;  %v1598_v28 = vmul.f32 0.044715, %v1580_v59  ;;  %v1590_v21 = vmul.f32 0.5, %v1580_v59 }
 0x3a4   : > { %v1663_v32 = vpack.c.bf16 %v1648_v0, %v1647_v12  ;;  %v1603_v38 = vmul.f32 %v1595_v61, %v1569_v25  ;;  %v1596_v52 = vmul.f32 0.044715, %v1572_v55  ;;  %v1588_v51 = vmul.f32 0.5, %v1572_v55 }
 0x3a5   : > { %v1613_v15 = vmul.f32 %v1605_v29, %v1577_v8  ;;  %v1606_v39 = vmul.f32 %v1598_v28, %v1580_v59 }
 0x3a6   : > { %1955 = vmatprep.mubr.msk.bf16.mxu1 %vm1113_vm1, %v1663_v32  ;;  %v1611_v6 = vmul.f32 %v1603_v38, %v1569_v25  ;;  %v1604_v48 = vmul.f32 %v1596_v52, %v1572_v55 }
 0x3a7   : > { %1956 = vmatmul.mubr.msk.bf16.vlgmr.msra.gmra.mrb[8].mxu1 %vm1113_vm1, %v1664_v27  ;;  %v1621_v53 = vadd.f32 %v1613_v15, %v1577_v8  ;;  %v1614_v20 = vmul.f32 %v1606_v39, %v1580_v59 }
 0x3a8   : > { %v1619_v7 = vadd.f32 %v1611_v6, %v1569_v25  ;;  %v1612_v33 = vmul.f32 %v1604_v48, %v1572_v55 }
 0x3a9   : > { %v1629_v18 = vmul.f32 0.7978846, %v1621_v53  ;;  %v1622_v63 = vadd.f32 %v1614_v20, %v1580_v59 }
 0x3aa   : > { %v1627_v40 = vmul.f32 0.7978846, %v1619_v7  ;;  %v1620_v37 = vadd.f32 %v1612_v33, %v1572_v55 }
 0x3ab   : > { %1999 = vtanh.f32 %v1629_v18  ;;  %v1630_v5 = vmul.f32 0.7978846, %v1622_v63 }
 0x3ac   : > { %2001 = vtanh.f32 %v1627_v40  ;;  %v1628_v11 = vmul.f32 0.7978846, %v1620_v37 }
 0x3ad   : > { %2003 = vtanh.f32 %v1630_v5 }
 0x3ae   : > { %2005 = vtanh.f32 %v1628_v11 }
 0x3b5   : > { %v2000_v19 = vpop.eup %1999 }
 0x3b6   : > { %v2002_v9 = vpop.eup %2001  ;;  %v1645_v30 = vadd.f32 1.0, %v2000_v19 }
 0x3b7   : > { %v2004_v13 = vpop.eup %2003  ;;  %v1643_v16 = vadd.f32 1.0, %v2002_v9 }
 0x3b8   : > { %v2006_v36 = vpop.eup %2005  ;;  %v1646_v1 = vadd.f32 1.0, %v2004_v13  ;;  %v1653_v62 = vmul.f32 %v1645_v30, %v1589_v10 }
 0x3b9   : > { %v1644_v60 = vadd.f32 1.0, %v2006_v36  ;;  %v1651_v43 = vmul.f32 %v1643_v16, %v1587_v47 }
 0x3ba   : > { %v1654_v44 = vmul.f32 %v1646_v1, %v1590_v21 }
 0x3bb   : > { %v1652_v3 = vmul.f32 %v1644_v60, %v1588_v51 }
 0x3bc   : > { %v1666_v35 = vpack.c.bf16 %v1654_v44, %v1653_v62 }
 0x3bd   : > { %v1665_v34 = vpack.c.bf16 %v1652_v3, %v1651_v43 }
 0x3bf   : > { %1959 = vmatprep.mubr.msk.bf16.mxu1 %vm1113_vm1, %v1665_v34 }
 0x3c0   : > { %1960 = vmatmul.mubr.msk.bf16.gmra.mrb[12].mxu1 %vm1113_vm1, %v1666_v35 }
 0x47a   : > { %v1957_v4 = vpop.f32.mrb[8].mxu1 }
 0x47b   : > { %v1733_v8 = vadd.f32 %v1957_v4, %v1870_v45  ;;  %v1724_v22 = vpop.f32.mrb[9].mxu1 }
 0x47c   : > { %v1725_v56 = vadd.f32 %v1870_v45, %v1724_v22  ;;  %v1958_v2 = vpop.f32.mrb[10].mxu1 }
 0x47d   : > { %v1757_v24 = vadd.f32 %v1733_v8, %v2656_v58  ;;  %v1736_v50 = vadd.f32 %v1958_v2, %v1870_v45  ;;  %v1727_v54 = vpop.f32.mrb[11].mxu1 }
 0x47e   : > { %v1755_v25 = vadd.f32 %v1725_v56, %v2659_v49  ;;  %v1728_v23 = vadd.f32 %v1870_v45, %v1727_v54 }
 0x47f   : > { %1765 = vst.msk [vmem:[%s494_s26 + $0x10] sm:$0xff] %vm496_vm0, %v1757_v24  ;;  %v1758_v57 = vadd.f32 %v1736_v50, %v2664_v41 }
 0x480   : > { %1763 = vst.msk [vmem:[%s494_s26] sm:$0xff] %vm496_vm0, %v1755_v25  ;;  %v1756_v59 = vadd.f32 %v1728_v23, %v2669_v42 }
 0x481   : > { %1766 = vst.msk [vmem:[%s494_s26 + $0x18] sm:$0xff] %vm496_vm0, %v1758_v57 }
 0x482   : > { %1764 = vst.msk [vmem:[%s494_s26 + $0x8] sm:$0xff] %vm496_vm0, %v1756_v59 }
 0x493   : > { %v1961_v46 = vpop.f32.mrb[12].mxu1 }
 0x494   : > { %v1749_v12 = vadd.f32 %v1961_v46, %v1870_v45  ;;  %v1740_v58 = vpop.f32.mrb[13].mxu1 }
 0x495   : > { %v1741_v0 = vadd.f32 %v1870_v45, %v1740_v58  ;;  %v1962_v27 = vpop.f32.mrb[14].mxu1 }
 0x496   : > { %v1761_v49 = vadd.f32 %v1749_v12, %v2681_v26  ;;  %v1752_v61 = vadd.f32 %v1962_v27, %v1870_v45  ;;  %v1743_v55 = vpop.f32.mrb[15].mxu1 }
 0x497   : > { %v1759_v29 = vadd.f32 %v1741_v0, %v2684_v31  ;;  %v1744_v41 = vadd.f32 %v1870_v45, %v1743_v55 }
 0x498   : > { %1769 = vst.msk [vmem:[%s494_s26 + $0x30] sm:$0xff] %vm496_vm0, %v1761_v49  ;;  %v1762_v42 = vadd.f32 %v1752_v61, %v2691_v14 }
 0x499   : > { %1767 = vst.msk [vmem:[%s494_s26 + $0x20] sm:$0xff] %vm496_vm0, %v1759_v29  ;;  %v1760_v28 = vadd.f32 %v1744_v41, %v2702_v17 }
 0x49a   : > { %1770 = vst.msk [vmem:[%s494_s26 + $0x38] sm:$0xff] %vm496_vm0, %v1762_v42 }
 0x49b   : > { %1768 = vst.msk [vmem:[%s494_s26 + $0x28] sm:$0xff] %vm496_vm0, %v1760_v28 }
 0x49c PF: > { %s25_s18 = sadd.s32 1, %s2016_s18  }
 0x49d   : > { %p22_p4 = scmp.ge.s32.totalorder %s25_s18, 4  }
 0x49f   :  { %24 = sbr.rel (!%p22_p4) target bundleno = 1 (0x1), region = 110 }

// kernel: henet_forward.11
= control target key start
LH: loop header
LB: loop body
LE: loop exit
PB: predicated region body
PF: predicated region fallthrough
CT: control target
= control target key end

     0   :  { %vm20_vm0 = vcmask 523264   ;;  %v175_v3 = vmov 0.0   ;;  %vm176_vm1 = vmmov 0   ;;  %s254_s0 = inlined_call_operand.vmem [shape: f32[2,16,64], index: 0, kind: input, shape index: {}]   ;;  %s255_s1 = inlined_call_operand.vmem [shape: f32[64,10], index: 1, kind: input, shape index: {}]   ;;  %s256_s2 = inlined_call_operand.vmem [shape: f32[1,10], index: 2, kind: input, shape index: {}]   ;;  %s257_s3 = inlined_call_operand.hbm [shape: f32[2,10], index: 3, kind: output, shape index: {}]  }
   0x1   :  { %v42_v0 = vld [vmem:[%s255_s1] sm:$0xff]  ;;  %v43_v1 = vld [vmem:[%s255_s1 + $0x8] sm:$0xff]  ;;  %v44_v2 = vld [vmem:[%s255_s1 + $0x10] sm:$0xff]  ;;  %136 = vmatprep.subr.bf16.mxu0 %v175_v3  ;;  %144 = vmatprep.mubr.msk.bf16.mxu0 %vm176_vm1, %v175_v3 }
   0x2   :  { %v52_v4 = vpack.c.bf16 %v43_v1, %v42_v0  ;;  %v45_v5 = vld [vmem:[%s255_s1 + $0x18] sm:$0xff]  ;;  %v16_v6 = vld [vmem:[%s254_s0] sm:$0xff]  ;;  %v17_v8 = vld [vmem:[%s254_s0 + $0x8] sm:$0xff] }
   0x3   :  { %v53_v7 = vpack.c.bf16 %v45_v5, %v44_v2  ;;  %v18_v9 = vld [vmem:[%s254_s0 + $0x10] sm:$0xff]  ;;  %v19_v10 = vld [vmem:[%s254_s0 + $0x18] sm:$0xff]  ;;  %v21_v11 = vsel %vm20_vm0, %v16_v6, 0.0  ;;  %v46_v12 = vld [vmem:[%s255_s1 + $0x20] sm:$0xff]  ;;  %v22_v14 = vsel %vm20_vm0, %v17_v8, 0.0 }
   0x4   :  { %137 = vmatpush3.bf16.msra.mxu0 %v52_v4  ;;  %v47_v13 = vld [vmem:[%s255_s1 + $0x28] sm:$0xff]  ;;  %v30_v15 = vsel %vm20_vm0, %v18_v9, 0.0  ;;  %v31_v16 = vsel %vm20_vm0, %v19_v10, 0.0  ;;  %v23_v17 = vadd.f32 %v22_v14, %v21_v11 }
   0x5   :  { %138 = vmatprep.subr.bf16.mxu0 %v175_v3  ;;  %v32_v18 = vadd.f32 %v31_v16, %v30_v15 }
   0x6   :  { %8 = vsyncpa [#allocation3], 0  ;;  %v54_v19 = vpack.c.bf16 %v47_v13, %v46_v12  ;;  %v24_v20 = vrot.slane %v23_v17, 4  ;;  %v48_v22 = vld [vmem:[%s255_s1 + $0x30] sm:$0xff]  ;;  %v49_v23 = vld [vmem:[%s255_s1 + $0x38] sm:$0xff]  ;;  %vm67_vm2 = vcmask 1041409  }
   0x7   :  { %v33_v21 = vrot.slane %v32_v18, 4  ;;  %v55_v26 = vpack.c.bf16 %v49_v23, %v48_v22  ;;  %v129_v43 = vld [vmem:[%s256_s2] ss:$0 sm:$0xff]  ;;  %s177_s9 = smov [#allocation2]   ;;  %vm113_vm3 = vcmask 74752  }
   0x8   :  { %139 = vmatpush3.bf16.msra.mxu0 %v53_v7  ;;  %v25_v24 = vadd.f32 %v24_v20, %v23_v17  ;;  %s121_s10 = sshll.u32 %s177_s9, 4  ;;  %s122_s10 = int_to_ptr.vmem [resolvable:$true] %s121_s10 }
   0x9   :  { %140 = vmatprep.subr.bf16.mxu0 %v175_v3  ;;  %v34_v25 = vadd.f32 %v33_v21, %v32_v18  ;;  %s151_s11 = scalar_lea.vmem %s122_s10, 32  ;;  %p156_p1 = scmp.lt.s32.totalorder %s122_s10, %s122_s10 }
   0xa   :  { %v26_v27 = vrot.slane %v25_v24, 2  ;;  %p152_p0 = scmp.ne.s32.totalorder %s122_s10, %s151_s11  ;;  %p157_p2 = scmp.lt.s32.totalorder %s151_s11, %s151_s11 }
   0xb   :  { %v35_v28 = vrot.slane %v34_v25, 2 }
   0xc   :  { %141 = vmatpush3.bf16.msra.mxu0 %v54_v19  ;;  %v27_v29 = vadd.f32 %v26_v27, %v25_v24  ;;  %p158_p3 = por %p157_p2, %p156_p1 }
   0xd   :  { %142 = vmatprep.subr.bf16.mxu0 %v175_v3  ;;  %v36_v30 = vadd.f32 %v35_v28, %v34_v25 }
   0xe   :  { %v28_v31 = vrot.slane %v27_v29, 1  ;;  %p159_p4 = pnand %p158_p3, %p152_p0 }
   0xf   :  { %v37_v32 = vrot.slane %v36_v30, 1 }
  0x10   :  { %143 = vmatpush3.bf16.msra.mxu0 %v55_v26  ;;  %v29_v33 = vadd.f32 %v28_v31, %v27_v29 }
  0x11   :  { %v38_v34 = vadd.f32 %v37_v32, %v36_v30 }
  0x12   :  { %v40_v35 = vmul.f32 0.0625, %v29_v33 }
  0x13   :  { %v41_v36 = vmul.f32 0.0625, %v38_v34 }
  0x14   :  { %v50_v37 = vpack.c.bf16 %v40_v35, %v40_v35 }
  0x15   :  { %v51_v38 = vpack.c.bf16 %v41_v36, %v41_v36 }
  0x16   :  { %v65_v39 = vunpack.c.l.b16 %v50_v37 }
  0x17   :  { %v66_v40 = vunpack.c.l.b16 %v51_v38 }
  0x19   :  { %v68_v41 = vsel %vm67_vm2, %v66_v40, %v65_v39 }
  0x1a   :  { %v69_v42 = vpack.c.b16 %v68_v41, %v68_v41 }
  0x1c   :  { %145 = vmatmul.mubr.msk.bf16.vlgmr.msra.gmra.mrb[0].mxu0 %vm20_vm0, %v69_v42 }
  0xef   :  { %v107_v44 = vpop.f32.mrb[0].mxu0 }
  0xf0   :  { %v108_v45 = vadd.f32 %v129_v43, %v107_v44  ;;  %v146_v46 = vpop.f32.mrb[1].mxu0 }
  0xf1   :  { %v110_v47 = vpop.f32.mrb[2].mxu0 }
  0xf2   :  { %v147_v48 = vpop.f32.mrb[3].mxu0  ;;  %114 = vst.msk [vmem:[#allocation2] sm:$0x3] %vm113_vm3, %v108_v45 }
  0xf3   :  { %162 = shalt.err (!%p159_p4)
}
  0xf4   :  { %s163_s2 = scalar_lea.hbm %s257_s3, 32 }
  0xf5   :  { %p164_p5 = scmp.ne.s32.totalorder %s257_s3, %s163_s2  ;;  %p167_p6 = scmp.lt.u32.totalorder %s163_s2, %s257_s3 }
  0xf7   :  { %p169_p7 = pnand %p167_p6, %p164_p5 }
  0xf9   :  { %172 = shalt.err (!%p169_p7)
}
  0xfa   :  { %124 = dma.vmem_to_hbm [thread:$0]  %s122_s10, 32, %s257_s3, [#allocation3]  }
  0xfb   :  { %173 = dma.done.wait [#allocation3], 32  }
  0xfc   :  { %174 = vsyncadd [#allocation3], 4294967264 }
  0xfd   :  { %128 = vsyncpa [#allocation3], 1 }

// kernel: henet_forward.10
= control target key start
LH: loop header
LB: loop body
LE: loop exit
PB: predicated region body
PF: predicated region fallthrough
CT: control target
= control target key end

     0   :  { %s1382_s18 = smov 0   ;;  %s1730_s0 = inlined_call_operand.vmem [shape: f32[2,16,64], index: 0, kind: input, shape index: {}]   ;;  %s1731_s1 = inlined_call_operand.vmem [shape: f32[16,1], index: 1, kind: input, shape index: {}]   ;;  %s1732_s2 = inlined_call_operand.vmem [shape: f32[16,1], index: 2, kind: input, shape index: {}]   ;;  %s1733_s3 = inlined_call_operand.vmem [shape: f32[9,64], index: 3, kind: input, shape index: {}]   ;;  %s1734_s4 = inlined_call_operand.vmem [shape: f32[1,64], index: 4, kind: input, shape index: {}]   ;;  %s1735_s5 = inlined_call_operand.vmem [shape: f32[64,128], index: 5, kind: input, shape index: {}]   ;;  %s1736_s6 = inlined_call_operand.vmem [shape: f32[1,128], index: 6, kind: input, shape index: {}]   ;;  %s1737_s7 = inlined_call_operand.vmem [shape: f32[128,64], index: 7, kind: input, shape index: {}]   ;;  %s1738_s8 = inlined_call_operand.vmem [shape: f32[1,64], index: 8, kind: input, shape index: {}]   ;;  %s1739_s9 = inlined_call_operand.vmem [shape: f32[9,64], index: 9, kind: input, shape index: {}]   ;;  %s1740_s10 = inlined_call_operand.vmem [shape: f32[1,64], index: 10, kind: input, shape index: {}]   ;;  %s1741_s11 = inlined_call_operand.vmem [shape: f32[64,128], index: 11, kind: input, shape index: {}]   ;;  %s1742_s12 = inlined_call_operand.vmem [shape: f32[1,128], index: 12, kind: input, shape index: {}]   ;;  %s1743_s13 = inlined_call_operand.vmem [shape: f32[128,64], index: 13, kind: input, shape index: {}]   ;;  %s1744_s14 = inlined_call_operand.vmem [shape: f32[1,64], index: 14, kind: input, shape index: {}]   ;;  %s1745_s15 = inlined_call_operand.vmem [shape: f32[2,16,64], index: 15, kind: output, shape index: {}]  }
   0x1 LB: > { %s1139_s19 = sadd.s32 4294967295, %s1297_s18   ;;  %p1143_p0 = scmp.ge.s32.totalorder %s1297_s18, 1  ;;  %s1297_s18 = sphi %s1382_s18, %s25_s18  }
   0x2   : > { %p437_p1 = scmp.lt.s32.totalorder %s1297_s18, 3 }
   0x4   : > { %p438_p2 = pnand %p1143_p0, %p437_p1 }
   0x5   : > { %v503_v0 = vld [vmem:[%s1732_s2] sm:$0xff] (!%p438_p2)  ;;  %p485_p3 = scmp.lt.s32.totalorder (!%p438_p2), %s1139_s19, 1  ;;  %vm496_vm0 = vcmask (!%p438_p2), 523264   ;;  %v1299_v2 = vmov (!%p438_p2), 0   ;;  %v1300_v3 = vmov (!%p438_p2), 0.0   ;;  %v504_v4 = vld [vmem:[%s1732_s2 + $0x8] sm:$0xff] (!%p438_p2) }
   0x6   : > { %441 = sbr.rel (%p438_p2) target bundleno = 1120 (0x460), region = 80  ;;  %v501_v1 = vld [vmem:[%s1731_s1] sm:$0xff] (!%p438_p2)  ;;  %1282 = vset.pattern.permute.xlu1 (!%p438_p2), %v1299_v2  ;;  %1281 = vset.pattern.permute.xlu0 (!%p438_p2), %v1299_v2  ;;  %497 = vst.msk [vmem:[#allocation2] sm:$0xff] (!%p438_p2), %vm496_vm0, %v1300_v3  ;;  %498 = vst.msk [vmem:[#allocation2 + $0x8] sm:$0xff] (!%p438_p2), %vm496_vm0, %v1300_v3  ;;  %v502_v5 = vld [vmem:[%s1731_s1 + $0x8] sm:$0xff] (!%p438_p2)  ;;  %vm1301_vm1 = vmmov (!%p438_p2), 0  }
   0x7   : > { %547 = vperm.xlu1 (!%p438_p2), %1282, %v503_v0   ;;  %513 = vperm.xlu0 (!%p438_p2), %1281, %v501_v1   ;;  %499 = vst.msk [vmem:[#allocation2 + $0x10] sm:$0xff] (!%p438_p2), %vm496_vm0, %v1300_v3  ;;  %500 = vst.msk [vmem:[#allocation2 + $0x18] sm:$0xff] (!%p438_p2), %vm496_vm0, %v1300_v3  ;;  %v649_v8 = vld [vmem:[%s1735_s5] sm:$0xff] (!%p438_p2)  ;;  %v650_v9 = vld [vmem:[%s1735_s5 + $0x8] sm:$0xff] (!%p438_p2) }
   0x8   : > { %1206 = vmatprep.subr.bf16.mxu1 (!%p438_p2), %v1300_v3  ;;  %1238 = vmatprep.subr.bf16.mxu0 (!%p438_p2), %v1300_v3  ;;  %v658_v10 = vpack.c.bf16 (!%p438_p2), %v650_v9, %v649_v8  ;;  %v651_v11 = vld [vmem:[%s1735_s5 + $0x10] sm:$0xff] (!%p438_p2)  ;;  %v652_v12 = vld [vmem:[%s1735_s5 + $0x18] sm:$0xff] (!%p438_p2)  ;;  %v653_v14 = vld [vmem:[%s1735_s5 + $0x20] sm:$0xff] (!%p438_p2) }
   0x9   : > { %v659_v13 = vpack.c.bf16 (!%p438_p2), %v652_v12, %v651_v11  ;;  %v654_v15 = vld [vmem:[%s1735_s5 + $0x28] sm:$0xff] (!%p438_p2)  ;;  %1214 = vmatprep.mubr.msk.bf16.mxu1 (!%p438_p2), %vm1301_vm1, %v1300_v3  ;;  %1246 = vmatprep.mubr.msk.bf16.mxu0 (!%p438_p2), %vm1301_vm1, %v1300_v3  ;;  %v655_v17 = vld [vmem:[%s1735_s5 + $0x30] sm:$0xff] (!%p438_p2)  ;;  %v656_v18 = vld [vmem:[%s1735_s5 + $0x38] sm:$0xff] (!%p438_p2) }
   0xa   : > { %1207 = vmatpush3.bf16.msra.mxu1 (!%p438_p2), %v658_v10  ;;  %v660_v16 = vpack.c.bf16 (!%p438_p2), %v654_v15, %v653_v14  ;;  %v661_v19 = vpack.c.bf16 (!%p438_p2), %v656_v18, %v655_v17  ;;  %v1149_v22 = vld [vmem:[%s1733_s3 + $0x1] ss:$0 sm:$0xff] (!%p438_p2)  ;;  %v1148_v26 = vld [vmem:[%s1733_s3] ss:$0 sm:$0xff] (!%p438_p2)  ;;  %v1150_v30 = vld [vmem:[%s1733_s3 + $0x2] ss:$0 sm:$0xff] (!%p438_p2) }
   0xb   : > { %552 = vperm.xlu1 (!%p438_p2), %1282, %v504_v4   ;;  %518 = vperm.xlu0 (!%p438_p2), %1281, %v502_v5   ;;  %v1151_v33 = vld [vmem:[%s1733_s3 + $0x3] ss:$0 sm:$0xff] (!%p438_p2)  ;;  %v1152_v44 = vld [vmem:[%s1733_s3 + $0x4] ss:$0 sm:$0xff] (!%p438_p2)  ;;  %v1153_v57 = vld [vmem:[%s1733_s3 + $0x5] ss:$0 sm:$0xff] (!%p438_p2) }
   0xc   : > { %1208 = vmatprep.subr.bf16.mxu1 (!%p438_p2), %v1300_v3  ;;  %v1154_v0 = vld [vmem:[%s1733_s3 + $0x6] ss:$0 sm:$0xff] (!%p438_p2)  ;;  %v1155_v5 = vld [vmem:[%s1733_s3 + $0x7] ss:$0 sm:$0xff] (!%p438_p2) }
   0xd   : > { %s1747_s19 = smov (!%p485_p3, %s1139_s19), 1 }
   0xe   : > { %s1176_s28 = sshll.u32 %s1747_s19, 4  ;;  %1209 = vmatpush3.bf16.msra.mxu1 %v659_v13 }
   0xf   : > { %s489_s16 = scalar_lea.vmem %s1730_s0, %s1176_s28  ;;  %1210 = vmatprep.subr.bf16.mxu1 %v1300_v3  ;;  %s494_s21 = scalar_lea.vmem %s1745_s15, %s1176_s28 }
  0x10   : > { %v1420_v6 = vld [vmem:[%s489_s16] sm:$0xff]  ;;  %v1422_v7 = vld [vmem:[%s489_s16 + $0x8] sm:$0xff] }
  0x11   : > { %507 = vst.msk [vmem:[#allocation2 + $0x8] sm:$0xff] %vm496_vm0, %v1420_v6  ;;  %508 = vst.msk [vmem:[#allocation2 + $0x10] sm:$0xff] %vm496_vm0, %v1422_v7 }
  0x12   : > { %1211 = vmatpush3.bf16.msra.mxu1 %v660_v16 }
  0x13   : > { %1212 = vmatprep.subr.bf16.mxu1 %v1300_v3 }
  0x16   : > { %1213 = vmatpush3.bf16.msra.mxu1 %v661_v19 }
  0x17   : > { %1218 = vmatprep.subr.bf16.mxu1 %v1300_v3 }
  0x18   : > { %v543_v20 = vld [vmem:[#allocation2 + $0x5] sm:$0xff]  ;;  %v627_v35 = vld [vmem:[#allocation2 + $0xd] sm:$0xff]  ;;  %v628_v12 = vld [vmem:[#allocation2 + $0x15] sm:$0xff] }
  0x19   : > { %v509_v21 = vld [vmem:[#allocation2 + $0x3] sm:$0xff]  ;;  %v533_v31 = vld [vmem:[#allocation2 + $0xc] sm:$0xff]  ;;  %v617_v15 = vld [vmem:[#allocation2 + $0x14] sm:$0xff] }
  0x1a   : > { %v532_v23 = vld [vmem:[#allocation2 + $0x4] sm:$0xff]  ;;  %v567_v41 = vld [vmem:[#allocation2 + $0xf] sm:$0xff]  ;;  %v540_v46 = vmul.f32 %v1149_v22, %v533_v31  ;;  %v623_v16 = vmul.f32 %v1155_v5, %v533_v31 }
  0x1b   : > { %v566_v29 = vld [vmem:[#allocation2 + $0x7] sm:$0xff]  ;;  %v539_v32 = vmul.f32 %v1149_v22, %v532_v23  ;;  %v591_v52 = vld [vmem:[#allocation2 + $0x11] sm:$0xff] }
  0x1c   : > { %v603_v37 = vld [vmem:[#allocation2 + $0xb] sm:$0xff]  ;;  %v604_v62 = vld [vmem:[#allocation2 + $0x13] sm:$0xff] }
  0x1d   : > { %v590_v42 = vld [vmem:[#allocation2 + $0x9] sm:$0xff] }
  0x1e   : > { %v579_v47 = vld [vmem:[#allocation2 + $0x8] sm:$0xff]  ;;  %v580_v55 = vld [vmem:[#allocation2 + $0x10] sm:$0xff] }
  0x1f   : > { %v586_v56 = vmul.f32 %v1152_v44, %v579_v47  ;;  %v587_v4 = vmul.f32 %v1152_v44, %v580_v55  ;;  %v733_v44 = vld [vmem:[%s1737_s7 + $0x10] sm:$0xff]  ;;  %v735_v47 = vld [vmem:[%s1737_s7 + $0x20] sm:$0xff] }
  0x20   : > { %v741_v55 = vld [vmem:[%s1737_s7 + $0x50] sm:$0xff] }
  0x86   : > { %v1463_v24 = vpop.permute.xlu1 %547  ;;  %v1465_v25 = vpop.permute.xlu0 %513 }
  0x87   : > { %v555_v27 = vmul.f32 %v1463_v24, %v543_v20  ;;  %v521_v28 = vmul.f32 %v1465_v25, %v509_v21  ;;  %v568_v36 = vmul.f32 %v566_v29, %v1465_v25  ;;  %v592_v51 = vmul.f32 %v590_v42, %v1463_v24  ;;  %v1156_v20 = vld [vmem:[%s1733_s3 + $0x8] ss:$0 sm:$0xff] }
  0x88   : > { %v605_v60 = vmul.f32 %v603_v37, %v1465_v25  ;;  %v629_v17 = vmul.f32 %v627_v35, %v1463_v24  ;;  %v732_v42 = vld [vmem:[%s1737_s7 + $0x8] sm:$0xff] }
  0x89   : > { %v528_v34 = vmul.f32 %v1148_v26, %v521_v28  ;;  %v562_v39 = vmul.f32 %v1150_v30, %v555_v27  ;;  %v575_v54 = vmul.f32 %v1151_v33, %v568_v36  ;;  %v599_v8 = vmul.f32 %v1153_v57, %v592_v51  ;;  %v738_v51 = vld [vmem:[%s1737_s7 + $0x38] sm:$0xff] }
  0x8a   : > { %v1479_v38 = vpop.permute.xlu1 %552  ;;  %v1481_v40 = vpop.permute.xlu0 %518  ;;  %v612_v14 = vmul.f32 %v1154_v0, %v605_v60  ;;  %v624_v27 = vmul.f32 %v1155_v5, %v617_v15  ;;  %v636_v29 = vmul.f32 %v1156_v20, %v629_v17  ;;  %v744_v60 = vld [vmem:[%s1737_s7 + $0x68] sm:$0xff] }
  0x8b   : > { %v556_v43 = vmul.f32 %v627_v35, %v1479_v38  ;;  %v522_v45 = vmul.f32 %v603_v37, %v1481_v40  ;;  %v541_v48 = vadd.f32 %v539_v32, %v528_v34  ;;  %v569_v50 = vmul.f32 %v567_v41, %v1481_v40  ;;  %v1157_v34 = vld [vmem:[%s1734_s4] ss:$0 sm:$0xff] }
  0x8c   : > { %v593_v63 = vmul.f32 %v591_v52, %v1479_v38  ;;  %v606_v11 = vmul.f32 %v604_v62, %v1481_v40  ;;  %v630_v22 = vmul.f32 %v628_v12, %v1479_v38  ;;  %v731_v41 = vld [vmem:[%s1737_s7] sm:$0xff]  ;;  %v745_v62 = vld [vmem:[%s1737_s7 + $0x70] sm:$0xff] }
  0x8d   : > { %v529_v49 = vmul.f32 %v1148_v26, %v522_v45  ;;  %v564_v53 = vadd.f32 %v562_v39, %v541_v48  ;;  %v563_v58 = vmul.f32 %v1150_v30, %v556_v43  ;;  %v576_v2 = vmul.f32 %v1151_v33, %v569_v50  ;;  %v734_v45 = vld [vmem:[%s1737_s7 + $0x18] sm:$0xff]  ;;  %v736_v48 = vld [vmem:[%s1737_s7 + $0x28] sm:$0xff]  ;;  %v737_v50 = vld [vmem:[%s1737_s7 + $0x30] sm:$0xff] }
  0x8e   : > { %v600_v18 = vmul.f32 %v1153_v57, %v593_v63  ;;  %v613_v26 = vmul.f32 %v1154_v0, %v606_v11  ;;  %v637_v32 = vmul.f32 %v1156_v20, %v630_v22  ;;  %v748_v43 = vpack.c.bf16 %v732_v42, %v731_v41  ;;  %v742_v57 = vld [vmem:[%s1737_s7 + $0x58] sm:$0xff]  ;;  %v930_v41 = vld [vmem:[%s1741_s11 + $0x28] sm:$0xff] }
  0x8f   : > { %v542_v59 = vadd.f32 %v540_v46, %v529_v49  ;;  %v577_v61 = vadd.f32 %v575_v54, %v564_v53  ;;  %v749_v46 = vpack.c.bf16 %v734_v45, %v733_v44  ;;  %v750_v49 = vpack.c.bf16 %v736_v48, %v735_v47  ;;  %v739_v53 = vld [vmem:[%s1737_s7 + $0x40] sm:$0xff]  ;;  %v740_v54 = vld [vmem:[%s1737_s7 + $0x48] sm:$0xff]  ;;  %v746_v63 = vld [vmem:[%s1737_s7 + $0x78] sm:$0xff] }
  0x90   : > { %v751_v52 = vpack.c.bf16 %v738_v51, %v737_v50  ;;  %v755_v0 = vpack.c.bf16 %v746_v63, %v745_v62  ;;  %v932_v44 = vld [vmem:[%s1741_s11 + $0x38] sm:$0xff] }
  0x91   : > { %v565_v1 = vadd.f32 %v563_v58, %v542_v59  ;;  %v588_v9 = vadd.f32 %v586_v56, %v577_v61  ;;  %v752_v56 = vpack.c.bf16 %v740_v54, %v739_v53  ;;  %v753_v58 = vpack.c.bf16 %v742_v57, %v741_v55  ;;  %v743_v59 = vld [vmem:[%s1737_s7 + $0x60] sm:$0xff] }
  0x92   : > { %v754_v61 = vpack.c.bf16 %v744_v60, %v743_v59  ;;  %v1161_v55 = vld [vmem:[%s1739_s9] ss:$0 sm:$0xff] }
  0x93   : > { %v578_v10 = vadd.f32 %v576_v2, %v565_v1  ;;  %v601_v13 = vadd.f32 %v599_v8, %v588_v9  ;;  %v1158_v1 = vld [vmem:[%s1736_s6] ss:$0 sm:$0xff] }
  0x95   : > { %v589_v19 = vadd.f32 %v587_v4, %v578_v10  ;;  %v614_v21 = vadd.f32 %v612_v14, %v601_v13 }
  0x97   : > { %v602_v23 = vadd.f32 %v600_v18, %v589_v19  ;;  %v625_v28 = vadd.f32 %v623_v16, %v614_v21 }
  0x99   : > { %v615_v30 = vadd.f32 %v613_v26, %v602_v23  ;;  %v638_v31 = vadd.f32 %v636_v29, %v625_v28 }
  0x9b   : > { %v626_v33 = vadd.f32 %v624_v27, %v615_v30  ;;  %v647_v36 = vadd.f32 %v1157_v34, %v638_v31  ;;  %v926_v31 = vld [vmem:[%s1741_s11 + $0x8] sm:$0xff] }
  0x9d   : > { %v639_v35 = vadd.f32 %v637_v32, %v626_v33  ;;  %v925_v33 = vld [vmem:[%s1741_s11] sm:$0xff] }
  0x9f   : > { %v648_v37 = vadd.f32 %v1157_v34, %v639_v35  ;;  %v927_v34 = vld [vmem:[%s1741_s11 + $0x10] sm:$0xff]  ;;  %v934_v35 = vpack.c.bf16 %v926_v31, %v925_v33 }
  0xa1   : > { %v657_v39 = vpack.c.bf16 %v648_v37, %v647_v36  ;;  %v928_v36 = vld [vmem:[%s1741_s11 + $0x18] sm:$0xff]  ;;  %1239 = vmatpush3.bf16.msra.mxu0 %v934_v35 }
  0xa2   : > { %v935_v37 = vpack.c.bf16 %v928_v36, %v927_v34  ;;  %1240 = vmatprep.subr.bf16.mxu0 %v1300_v3 }
  0xa3   : > { %1215 = vmatmul.mubr.msk.bf16.vlgmr.msra.gmra.mrb[0].mxu1 %vm496_vm0, %v657_v39  ;;  %v929_v39 = vld [vmem:[%s1741_s11 + $0x20] sm:$0xff] }
  0xa4   : > { %1234 = vmatprep.mubr.msk.bf16.mxu1 %vm1301_vm1, %v1300_v3  ;;  %1219 = vmatpush3.bf16.msra.mxu1 %v748_v43  ;;  %v936_v42 = vpack.c.bf16 %v930_v41, %v929_v39  ;;  %v931_v43 = vld [vmem:[%s1741_s11 + $0x30] sm:$0xff] }
  0xa5   : > { %1220 = vmatprep.subr.bf16.mxu1 %v1300_v3  ;;  %1241 = vmatpush3.bf16.msra.mxu0 %v935_v37  ;;  %v937_v45 = vpack.c.bf16 %v932_v44, %v931_v43  ;;  %v1167_v37 = vld [vmem:[%s1739_s9 + $0x6] ss:$0 sm:$0xff]  ;;  %v1168_v44 = vld [vmem:[%s1739_s9 + $0x7] ss:$0 sm:$0xff] }
  0xa6   : > { %1242 = vmatprep.subr.bf16.mxu0 %v1300_v3 }
  0xa8   : > { %1221 = vmatpush3.bf16.msra.mxu1 %v749_v46  ;;  %v1160_v46 = vld [vmem:[%s1738_s8] ss:$0 sm:$0xff] }
  0xa9   : > { %1222 = vmatprep.subr.bf16.mxu1 %v1300_v3  ;;  %1243 = vmatpush3.bf16.msra.mxu0 %v936_v42 }
  0xaa   : > { %1244 = vmatprep.subr.bf16.mxu0 %v1300_v3 }
  0xac   : > { %1223 = vmatpush3.bf16.msra.mxu1 %v750_v49 }
  0xad   : > { %1224 = vmatprep.subr.bf16.mxu1 %v1300_v3  ;;  %1245 = vmatpush3.bf16.msra.mxu0 %v937_v45 }
  0xae   : > { %1250 = vmatprep.subr.bf16.mxu0 %v1300_v3 }
  0xb0   : > { %1225 = vmatpush3.bf16.msra.mxu1 %v751_v52 }
  0xb1   : > { %1226 = vmatprep.subr.bf16.mxu1 %v1300_v3 }
  0xb4   : > { %1227 = vmatpush3.bf16.msra.mxu1 %v752_v56 }
  0xb5   : > { %1228 = vmatprep.subr.bf16.mxu1 %v1300_v3 }
  0xb8   : > { %1229 = vmatpush3.bf16.msra.mxu1 %v753_v58 }
  0xb9   : > { %1230 = vmatprep.subr.bf16.mxu1 %v1300_v3 }
  0xbc   : > { %1231 = vmatpush3.bf16.msra.mxu1 %v754_v61 }
  0xbd   : > { %1232 = vmatprep.subr.bf16.mxu1 %v1300_v3 }
  0xc0   : > { %1233 = vmatpush3.bf16.msra.mxu1 %v755_v0 }
 0x176   : > { %v706_v2 = vpop.f32.mrb[0].mxu1 }
 0x177   : > { %v707_v4 = vadd.f32 %v1158_v1, %v706_v2  ;;  %v1216_v5 = vpop.f32.mrb[1].mxu1 }
 0x178   : > { %v709_v8 = vpop.f32.mrb[2].mxu1 }
 0x179   : > { %v715_v9 = vmul.f32 0.044715, %v707_v4  ;;  %v710_v10 = vadd.f32 %v1158_v1, %v709_v8  ;;  %v1217_v11 = vpop.f32.mrb[3].mxu1  ;;  %v713_v26 = vmul.f32 0.5, %v707_v4 }
 0x17b   : > { %v717_v12 = vmul.f32 %v715_v9, %v707_v4  ;;  %v716_v13 = vmul.f32 0.044715, %v710_v10  ;;  %v714_v27 = vmul.f32 0.5, %v710_v10 }
 0x17d   : > { %v719_v14 = vmul.f32 %v717_v12, %v707_v4  ;;  %v718_v15 = vmul.f32 %v716_v13, %v710_v10 }
 0x17f   : > { %v721_v16 = vadd.f32 %v719_v14, %v707_v4  ;;  %v720_v17 = vmul.f32 %v718_v15, %v710_v10 }
 0x181   : > { %v723_v18 = vmul.f32 0.7978846, %v721_v16  ;;  %v722_v19 = vadd.f32 %v720_v17, %v710_v10  ;;  %v1164_v10 = vld [vmem:[%s1739_s9 + $0x3] ss:$0 sm:$0xff] }
 0x183   : > { %1283 = vtanh.f32 %v723_v18  ;;  %v724_v20 = vmul.f32 0.7978846, %v722_v19  ;;  %v1165_v18 = vld [vmem:[%s1739_s9 + $0x4] ss:$0 sm:$0xff] }
 0x185   : > { %1285 = vtanh.f32 %v724_v20 }
 0x18d   : > { %v1284_v21 = vpop.eup %1283 }
 0x18e   : > { %v727_v22 = vadd.f32 1.0, %v1284_v21 }
 0x18f   : > { %v1286_v23 = vpop.eup %1285 }
 0x190   : > { %v728_v28 = vadd.f32 1.0, %v1286_v23  ;;  %v729_v29 = vmul.f32 %v727_v22, %v713_v26 }
 0x192   : > { %v730_v30 = vmul.f32 %v728_v28, %v714_v27 }
 0x194   : > { %v747_v32 = vpack.c.bf16 %v730_v30, %v729_v29  ;;  %v1166_v30 = vld [vmem:[%s1739_s9 + $0x5] ss:$0 sm:$0xff] }
 0x196   : > { %1235 = vmatmul.mubr.bf16.vlgmr.msra.gmra.mrb[4].mxu1 %v747_v32 }
 0x269   : > { %v797_v47 = vpop.f32.mrb[4].mxu1 }
 0x26a   : > { %v798_v48 = vadd.f32 %v1160_v46, %v797_v47  ;;  %v1236_v49 = vpop.f32.mrb[5].mxu1 }
 0x26b   : > { %v800_v50 = vpop.f32.mrb[6].mxu1 }
 0x26c   : > { %v1603_v51 = vadd.f32 %v798_v48, %v1420_v6  ;;  %v801_v52 = vadd.f32 %v1160_v46, %v800_v50  ;;  %v1237_v53 = vpop.f32.mrb[7].mxu1  ;;  %v1162_v6 = vld [vmem:[%s1739_s9 + $0x1] ss:$0 sm:$0xff] }
 0x26d   : > { %v1169_v53 = vld [vmem:[%s1739_s9 + $0x8] ss:$0 sm:$0xff] }
 0x26e   : > { %806 = vst.msk [vmem:[#allocation2 + $0x8] sm:$0xff] %vm496_vm0, %v1603_v51  ;;  %v1608_v54 = vadd.f32 %v801_v52, %v1422_v7  ;;  %v1163_v7 = vld [vmem:[%s1739_s9 + $0x2] ss:$0 sm:$0xff] }
 0x270   : > { %807 = vst.msk [vmem:[#allocation2 + $0x10] sm:$0xff] %vm496_vm0, %v1608_v54 }
 0x275   : > { %v808_v56 = vld [vmem:[#allocation2 + $0x3] sm:$0xff] }
 0x276   : > { %v821_v57 = vld [vmem:[#allocation2 + $0x4] sm:$0xff]  ;;  %v810_v59 = vmul.f32 %v808_v56, %v1465_v25 }
 0x277   : > { %v832_v58 = vld [vmem:[#allocation2 + $0x5] sm:$0xff]  ;;  %v833_v0 = vld [vmem:[#allocation2 + $0xd] sm:$0xff]  ;;  %v828_v5 = vmul.f32 %v1162_v6, %v821_v57  ;;  %v904_v46 = vld [vmem:[#allocation2 + $0x15] sm:$0xff] }
 0x278   : > { %v834_v60 = vmul.f32 %v832_v58, %v1463_v24  ;;  %v845_v61 = vld [vmem:[#allocation2 + $0x7] sm:$0xff]  ;;  %v817_v4 = vmul.f32 %v1161_v55, %v810_v59  ;;  %v835_v8 = vmul.f32 %v833_v0, %v1479_v38  ;;  %v846_v9 = vld [vmem:[#allocation2 + $0xf] sm:$0xff]  ;;  %v906_v56 = vmul.f32 %v904_v46, %v1479_v38 }
 0x279   : > { %v809_v62 = vld [vmem:[#allocation2 + $0xb] sm:$0xff]  ;;  %v847_v1 = vmul.f32 %v845_v61, %v1465_v25  ;;  %v848_v16 = vmul.f32 %v846_v9, %v1481_v40  ;;  %v882_v32 = vld [vmem:[#allocation2 + $0x13] sm:$0xff] }
 0x27a   : > { %v822_v63 = vld [vmem:[#allocation2 + $0xc] sm:$0xff]  ;;  %v811_v2 = vmul.f32 %v809_v62, %v1481_v40  ;;  %v830_v14 = vadd.f32 %v828_v5, %v817_v4  ;;  %v841_v15 = vmul.f32 %v1163_v7, %v834_v60  ;;  %v842_v22 = vmul.f32 %v1163_v7, %v835_v8  ;;  %v894_v50 = vld [vmem:[#allocation2 + $0x14] sm:$0xff] }
 0x27b   : > { %v829_v11 = vmul.f32 %v1162_v6, %v822_v63  ;;  %v869_v12 = vld [vmem:[#allocation2 + $0x9] sm:$0xff]  ;;  %v870_v19 = vld [vmem:[#allocation2 + $0x11] sm:$0xff]  ;;  %v854_v20 = vmul.f32 %v1164_v10, %v847_v1  ;;  %v855_v31 = vmul.f32 %v1164_v10, %v848_v16  ;;  %v883_v35 = vmul.f32 %v809_v62, %v1465_v25 }
 0x27c   : > { %v818_v13 = vmul.f32 %v1161_v55, %v811_v2  ;;  %v858_v17 = vld [vmem:[#allocation2 + $0x8] sm:$0xff]  ;;  %v843_v23 = vadd.f32 %v841_v15, %v830_v14  ;;  %v859_v26 = vld [vmem:[#allocation2 + $0x10] sm:$0xff]  ;;  %v871_v27 = vmul.f32 %v869_v12, %v1463_v24  ;;  %v872_v29 = vmul.f32 %v870_v19, %v1479_v38  ;;  %v1007_v38 = vld [vmem:[%s1743_s13] sm:$0xff] }
 0x27d   : > { %v865_v28 = vmul.f32 %v1165_v18, %v858_v17  ;;  %v866_v36 = vmul.f32 %v1165_v18, %v859_v26  ;;  %v884_v43 = vmul.f32 %v882_v32, %v1481_v40  ;;  %v890_v49 = vmul.f32 %v1167_v37, %v883_v35  ;;  %v1008_v4 = vld [vmem:[%s1743_s13 + $0x8] sm:$0xff]  ;;  %v1009_v8 = vld [vmem:[%s1743_s13 + $0x10] sm:$0xff]  ;;  %v1010_v9 = vld [vmem:[%s1743_s13 + $0x18] sm:$0xff] }
 0x27e   : > { %v831_v21 = vadd.f32 %v829_v11, %v818_v13  ;;  %v856_v34 = vadd.f32 %v854_v20, %v843_v23  ;;  %v878_v42 = vmul.f32 %v1166_v30, %v871_v27  ;;  %v879_v45 = vmul.f32 %v1166_v30, %v872_v29  ;;  %v1011_v11 = vld [vmem:[%s1743_s13 + $0x20] sm:$0xff]  ;;  %v1012_v12 = vld [vmem:[%s1743_s13 + $0x28] sm:$0xff]  ;;  %v1013_v14 = vld [vmem:[%s1743_s13 + $0x30] sm:$0xff] }
 0x27f   : > { %v905_v25 = vmul.f32 %v833_v0, %v1463_v24  ;;  %v900_v52 = vmul.f32 %v1168_v44, %v822_v63  ;;  %v891_v6 = vmul.f32 %v1167_v37, %v884_v43  ;;  %v901_v58 = vmul.f32 %v1168_v44, %v894_v50  ;;  %v1170_v24 = vld [vmem:[%s1740_s10] ss:$0 sm:$0xff]  ;;  %v1014_v15 = vld [vmem:[%s1743_s13 + $0x38] sm:$0xff]  ;;  %v1016_v18 = vld [vmem:[%s1743_s13 + $0x48] sm:$0xff] }
 0x280   : > { %v844_v33 = vadd.f32 %v842_v22, %v831_v21  ;;  %v867_v41 = vadd.f32 %v865_v28, %v856_v34  ;;  %v913_v61 = vmul.f32 %v1169_v53, %v906_v56  ;;  %v1024_v5 = vpack.c.bf16 %v1008_v4, %v1007_v38  ;;  %v1015_v17 = vld [vmem:[%s1743_s13 + $0x40] sm:$0xff]  ;;  %v1017_v20 = vld [vmem:[%s1743_s13 + $0x50] sm:$0xff]  ;;  %v1018_v21 = vld [vmem:[%s1743_s13 + $0x58] sm:$0xff] }
 0x281   : > { %v912_v60 = vmul.f32 %v1169_v53, %v905_v25  ;;  %v1025_v10 = vpack.c.bf16 %v1010_v9, %v1009_v8  ;;  %v1026_v13 = vpack.c.bf16 %v1012_v12, %v1011_v11  ;;  %v1027_v16 = vpack.c.bf16 %v1014_v15, %v1013_v14  ;;  %v1019_v23 = vld [vmem:[%s1743_s13 + $0x60] sm:$0xff]  ;;  %v1020_v26 = vld [vmem:[%s1743_s13 + $0x68] sm:$0xff]  ;;  %v1021_v28 = vld [vmem:[%s1743_s13 + $0x70] sm:$0xff] }
 0x282   : > { %v857_v39 = vadd.f32 %v855_v31, %v844_v33  ;;  %v880_v48 = vadd.f32 %v878_v42, %v867_v41  ;;  %v1028_v19 = vpack.c.bf16 %v1016_v18, %v1015_v17  ;;  %v1029_v22 = vpack.c.bf16 %v1018_v21, %v1017_v20  ;;  %v1022_v29 = vld [vmem:[%s1743_s13 + $0x78] sm:$0xff]  ;;  %v1171_v32 = vld [vmem:[%s1742_s12] ss:$0 sm:$0xff] }
 0x283   : > { %v1030_v27 = vpack.c.bf16 %v1020_v26, %v1019_v23  ;;  %v1031_v30 = vpack.c.bf16 %v1022_v29, %v1021_v28 }
 0x284   : > { %v868_v47 = vadd.f32 %v866_v36, %v857_v39  ;;  %v892_v40 = vadd.f32 %v890_v49, %v880_v48 }
 0x286   : > { %v881_v55 = vadd.f32 %v879_v45, %v868_v47  ;;  %v902_v59 = vadd.f32 %v900_v52, %v892_v40 }
 0x288   : > { %v893_v57 = vadd.f32 %v891_v6, %v881_v55  ;;  %v914_v62 = vadd.f32 %v912_v60, %v902_v59 }
 0x28a   : > { %v903_v7 = vadd.f32 %v901_v58, %v893_v57  ;;  %v923_v0 = vadd.f32 %v1170_v24, %v914_v62  ;;  %v1173_v57 = vld [vmem:[%s1744_s14] ss:$0 sm:$0xff] }
 0x28c   : > { %v915_v63 = vadd.f32 %v913_v61, %v903_v7 }
 0x28e   : > { %v924_v1 = vadd.f32 %v1170_v24, %v915_v63 }
 0x290   : > { %v933_v2 = vpack.c.bf16 %v924_v1, %v923_v0 }
 0x292   : > { %1247 = vmatmul.mubr.msk.bf16.vlgmr.msra.gmra.mrb[0].mxu0 %vm496_vm0, %v933_v2 }
 0x293   : > { %1266 = vmatprep.mubr.msk.bf16.mxu0 %vm1301_vm1, %v1300_v3  ;;  %1251 = vmatpush3.bf16.msra.mxu0 %v1024_v5 }
 0x294   : > { %1252 = vmatprep.subr.bf16.mxu0 %v1300_v3 }
 0x297   : > { %1253 = vmatpush3.bf16.msra.mxu0 %v1025_v10 }
 0x298   : > { %1254 = vmatprep.subr.bf16.mxu0 %v1300_v3 }
 0x29b   : > { %1255 = vmatpush3.bf16.msra.mxu0 %v1026_v13 }
 0x29c   : > { %1256 = vmatprep.subr.bf16.mxu0 %v1300_v3 }
 0x29f   : > { %1257 = vmatpush3.bf16.msra.mxu0 %v1027_v16 }
 0x2a0   : > { %1258 = vmatprep.subr.bf16.mxu0 %v1300_v3 }
 0x2a3   : > { %1259 = vmatpush3.bf16.msra.mxu0 %v1028_v19 }
 0x2a4   : > { %1260 = vmatprep.subr.bf16.mxu0 %v1300_v3 }
 0x2a7   : > { %1261 = vmatpush3.bf16.msra.mxu0 %v1029_v22 }
 0x2a8   : > { %1262 = vmatprep.subr.bf16.mxu0 %v1300_v3 }
 0x2ab   : > { %1263 = vmatpush3.bf16.msra.mxu0 %v1030_v27 }
 0x2ac   : > { %1264 = vmatprep.subr.bf16.mxu0 %v1300_v3 }
 0x2af   : > { %1265 = vmatpush3.bf16.msra.mxu0 %v1031_v30 }
 0x365   : > { %v982_v33 = vpop.f32.mrb[0].mxu0 }
 0x366   : > { %v983_v31 = vadd.f32 %v1171_v32, %v982_v33  ;;  %v1248_v34 = vpop.f32.mrb[1].mxu0 }
 0x367   : > { %v985_v35 = vpop.f32.mrb[2].mxu0 }
 0x368   : > { %v991_v36 = vmul.f32 0.044715, %v983_v31  ;;  %v986_v37 = vadd.f32 %v1171_v32, %v985_v35  ;;  %v1249_v39 = vpop.f32.mrb[3].mxu0  ;;  %v989_v52 = vmul.f32 0.5, %v983_v31 }
 0x36a   : > { %v993_v41 = vmul.f32 %v991_v36, %v983_v31  ;;  %v992_v42 = vmul.f32 0.044715, %v986_v37  ;;  %v990_v53 = vmul.f32 0.5, %v986_v37 }
 0x36c   : > { %v995_v43 = vmul.f32 %v993_v41, %v983_v31  ;;  %v994_v44 = vmul.f32 %v992_v42, %v986_v37 }
 0x36e   : > { %v997_v45 = vadd.f32 %v995_v43, %v983_v31  ;;  %v996_v46 = vmul.f32 %v994_v44, %v986_v37 }
 0x370   : > { %v999_v47 = vmul.f32 0.7978846, %v997_v45  ;;  %v998_v3 = vadd.f32 %v996_v46, %v986_v37 }
 0x372   : > { %1287 = vtanh.f32 %v999_v47  ;;  %v1000_v48 = vmul.f32 0.7978846, %v998_v3 }
 0x374   : > { %1289 = vtanh.f32 %v1000_v48 }
 0x37c   : > { %v1288_v49 = vpop.eup %1287 }
 0x37d   : > { %v1003_v25 = vadd.f32 1.0, %v1288_v49 }
 0x37e   : > { %v1290_v50 = vpop.eup %1289 }
 0x37f   : > { %v1004_v55 = vadd.f32 1.0, %v1290_v50  ;;  %v1005_v6 = vmul.f32 %v1003_v25, %v989_v52 }
 0x381   : > { %v1006_v40 = vmul.f32 %v1004_v55, %v990_v53 }
 0x383   : > { %v1023_v56 = vpack.c.bf16 %v1006_v40, %v1005_v6 }
 0x385   : > { %1267 = vmatmul.mubr.bf16.vlgmr.msra.gmra.mrb[4].mxu0 %v1023_v56 }
 0x458   : > { %v1073_v58 = vpop.f32.mrb[4].mxu0 }
 0x459   : > { %v1074_v59 = vadd.f32 %v1173_v57, %v1073_v58  ;;  %v1268_v60 = vpop.f32.mrb[5].mxu0 }
 0x45a   : > { %v1076_v7 = vpop.f32.mrb[6].mxu0 }
 0x45b   : > { %v1080_v61 = vadd.f32 %v1074_v59, %v1603_v51  ;;  %v1077_v62 = vadd.f32 %v1173_v57, %v1076_v7  ;;  %v1269_v24 = vpop.f32.mrb[7].mxu0 }
 0x45d   : > { %1082 = vst.msk [vmem:[%s494_s21] sm:$0xff] %vm496_vm0, %v1080_v61  ;;  %v1081_v63 = vadd.f32 %v1077_v62, %v1608_v54 }
 0x45f   : > { %1083 = vst.msk [vmem:[%s494_s21 + $0x8] sm:$0xff] %vm496_vm0, %v1081_v63 }
 0x460 PF: > { %s25_s18 = sadd.s32 1, %s1297_s18  }
 0x461   : > { %p22_p4 = scmp.ge.s32.totalorder %s25_s18, 4  }
 0x463   :  { %24 = sbr.rel (!%p22_p4) target bundleno = 1 (0x1), region = 110 }

</bundles_post_ra>
